<compile_context>
chip_gen: v6e
topology: v6e:2x2x1
jax: 0.10.0
libtpu: 0.0.40
codegen_flags: <defaults>
</compile_context>

<pallas_src>
import functools

import jax
import jax.numpy as jnp
from jax.experimental import pallas as pl
from jax.experimental.pallas import tpu as pltpu

# FastSpeech hparams: hp.fft_conv1d_kernel = (9, 1), hp.fft_conv1d_padding = (4, 0)
K1, K2 = 9, 1
PAD1, PAD2 = 4, 0
LN_EPS = 1e-5
_VMEM_LIMIT_BYTES = 48 * 1024 * 1024  # fits v7x (64 MiB physical) with headroom


def _round_up(n, m):
    return ((n + m - 1) // m) * m


def ffn_kernel(xc_ref, xr_ref, w1_ref, b1_ref, w2_ref, b2_ref, g_ref, beta_ref,
               o_ref, *, fuse_taps):
    """Grid = (batch, time-tile).

    xc_ref   : (1, T_pad + 2*PAD1, d_in) bf16  halo-padded conv input, batch-resident
    xr_ref   : (1, TT, d_in)             f32   residual, per-tile aligned block
    w1_ref   : (K1*d_in, d_hid) or (K1, d_in, d_hid)  bf16  conv1 weights
    b1_ref   : (1, d_hid)                f32
    w2_ref   : (d_hid, d_in)             bf16  conv2 (k=1) weights
    b2_ref   : (1, d_in)                 f32
    g_ref    : (1, d_in)                 f32   layer-norm gamma
    beta_ref : (1, d_in)                 f32   layer-norm beta
    o_ref    : (1, TT, d_in)
    """
    TT = o_ref.shape[1]
    d_in = o_ref.shape[2]
    t = pl.program_id(1)

    # Halo window of this time tile: padded rows [t*TT, t*TT + TT + 2*PAD1).
    # TT is a multiple of 8 -> 8-aligned sublane offset.  Already bf16.
    start = pl.multiple_of(t * TT, 8)
    xt = xc_ref[0, pl.ds(start, TT + 2 * PAD1), :]              # (TT+8, d_in) bf16

    # ---- Conv1d #1 (k=9, pad=4) on the MXU ------------------------------------
    if fuse_taps:
        # One wide-K matmul: the 9 time-shifted bf16 views concatenated on the
        # lane axis (no f32 pass, no late full-slab cast).
        slab = jnp.concatenate([xt[k:k + TT, :] for k in range(K1)], axis=1)
        h = jnp.dot(slab, w1_ref[...], preferred_element_type=jnp.float32)
    else:
        # Per-tap accumulating matmuls (K = d_in each): no slab build at all.
        h = jnp.dot(xt[0:TT, :], w1_ref[0], preferred_element_type=jnp.float32)
        for k in range(1, K1):
            h = h + jnp.dot(xt[k:k + TT, :], w1_ref[k],
                            preferred_element_type=jnp.float32)
    h = jnp.maximum(h + b1_ref[...], 0.0)                       # bias + ReLU, f32

    # ---- Conv1d #2 (k=1) == pointwise matmul ----------------------------------
    y = jnp.dot(h.astype(jnp.bfloat16), w2_ref[...],
                preferred_element_type=jnp.float32) + b2_ref[...]

    # ---- dropout (inference) -> identity; residual + LayerNorm in f32 ---------
    z = y + xr_ref[0]                                           # aligned f32 residual
    inv_d = jnp.float32(1.0 / d_in)
    mu = jnp.sum(z, axis=-1, keepdims=True) * inv_d
    zc = z - mu                                                 # two-pass variance
    var = jnp.sum(zc * zc, axis=-1, keepdims=True) * inv_d
    zhat = zc * jax.lax.rsqrt(var + LN_EPS)
    o_ref[0] = (zhat * g_ref[...] + beta_ref[...]).astype(o_ref.dtype)


def pack_ffn_params(w1, b1, w2, b2, gamma, beta, *, fuse_taps=True):
    """One-time (model-init) repack: PyTorch conv layouts -> matmul layouts (bf16).

    w1: [d_hid, d_in, K1], w2: [d_in, d_hid, 1] (PyTorch Conv1d weight layout).
    """
    d_hid, d_in, k1 = w1.shape
    assert k1 == K1 and w2.shape[2] == K2
    w1_t = jnp.transpose(w1, (2, 1, 0)).astype(jnp.bfloat16)    # (K1, d_in, d_hid)
    if fuse_taps:
        w1_t = w1_t.reshape(K1 * d_in, d_hid)                   # tap-fused wide-K
    w2_t = jnp.transpose(w2[:, :, 0], (1, 0)).astype(jnp.bfloat16)
    return dict(
        w1=w1_t,
        b1=b1.reshape(1, d_hid).astype(jnp.float32),
        w2=w2_t,
        b2=b2.reshape(1, d_in).astype(jnp.float32),
        gamma=gamma.reshape(1, d_in).astype(jnp.float32),
        beta=beta.reshape(1, d_in).astype(jnp.float32),
        fuse_taps=fuse_taps,
        d_in=d_in,
        d_hid=d_hid,
    )


def positionwise_ffn(x, params, *, block_t=256):
    """x: [B, T, d_in] f32; params from pack_ffn_params()."""
    B, T, d_in = x.shape
    d_hid = params["d_hid"]
    fuse_taps = params["fuse_taps"]
    assert params["d_in"] == d_in

    # Time tile: multiple of 8; 256 default keeps the MXU M-dim busy and fits
    # v7x VMEM; 512 is a good choice on v5e/v6e (128 MiB VMEM).
    TT = _round_up(min(block_t, _round_up(T, 8)), 8)
    T_pad = _round_up(T, TT)
    nT = T_pad // TT
    Tp = T_pad + 2 * PAD1

    # Conv-path input: bf16 cast fused into the halo pad (halves the resident
    # block's VMEM; no in-kernel full-slab cast).
    x_conv = jnp.pad(x.astype(jnp.bfloat16),
                     ((0, 0), (PAD1, PAD1 + (T_pad - T)), (0, 0)))
    # Residual: f32, tail-padded only (aligned per-tile block).
    x_res = x if T_pad == T else jnp.pad(x, ((0, 0), (0, T_pad - T), (0, 0)))

    w1_shape = (K1 * d_in, d_hid) if fuse_taps else (K1, d_in, d_hid)
    w1_map = (lambda b, t: (0, 0)) if fuse_taps else (lambda b, t: (0, 0, 0))
    kernel = functools.partial(ffn_kernel, fuse_taps=fuse_taps)

    def build_call(single_buffer_consts):
        def const_spec(shape, index_map):
            # Grid-invariant operands: constant index map -> never re-DMA'd;
            # single-buffer them to avoid duplicating the bf16 w1 block in VMEM.
            if single_buffer_consts:
                return pl.BlockSpec(shape, index_map, pipeline_mode=pl.Buffered(1))
            return pl.BlockSpec(shape, index_map)

        return pl.pallas_call(
            kernel,
            out_shape=jax.ShapeDtypeStruct((B, T_pad, d_in), x.dtype),
            grid_spec=pltpu.PrefetchScalarGridSpec(
                num_scalar_prefetch=0,
                grid=(B, nT),
                in_specs=[
                    # Padded conv input: resident per batch element (index map
                    # ignores t, so it is only re-DMA'd when b changes).
                    pl.BlockSpec((1, Tp, d_in), lambda b, t: (b, 0, 0)),
                    # Residual: per-tile aligned block, pipelined.
                    pl.BlockSpec((1, TT, d_in), lambda b, t: (b, t, 0)),
                    # Weights / biases / LN params: constant, single-buffered.
                    const_spec(w1_shape, w1_map),
                    const_spec((1, d_hid), lambda b, t: (0, 0)),
                    const_spec((d_hid, d_in), lambda b, t: (0, 0)),
                    const_spec((1, d_in), lambda b, t: (0, 0)),
                    const_spec((1, d_in), lambda b, t: (0, 0)),
                    const_spec((1, d_in), lambda b, t: (0, 0)),
                ],
                out_specs=pl.BlockSpec((1, TT, d_in), lambda b, t: (b, t, 0)),
            ),
            compiler_params=pltpu.CompilerParams(
                dimension_semantics=("parallel", "parallel"),
                vmem_limit_bytes=_VMEM_LIMIT_BYTES,
            ),
        )

    args = (x_conv, x_res, params["w1"], params["b1"], params["w2"],
            params["b2"], params["gamma"], params["beta"])
    try:
        out = build_call(single_buffer_consts=True)(*args)
    except Exception:
        # Fallback for JAX builds without BlockSpec pipeline_mode support.
        out = build_call(single_buffer_consts=False)(*args)

    return out if T_pad == T else out[:, :T, :]


def ref_ffn(x, w1, b1, w2, b2, gamma, beta, mm_dtype=jnp.bfloat16):
    """Pure-JAX reference mirroring the PyTorch module (dropout as identity).

    mm_dtype controls conv operand precision so the reference can match the
    kernel's bf16-operand / f32-accumulate strategy, or run in full f32.
    """
    xt = jnp.transpose(x, (0, 2, 1))  # [B, d_in, T]
    h = jax.lax.conv_general_dilated(
        xt.astype(mm_dtype), w1.astype(mm_dtype), window_strides=(1,),
        padding=[(PAD1, PAD1)], dimension_numbers=("NCH", "OIH", "NCH"),
        preferred_element_type=jnp.float32) + b1[None, :, None]
    h = jnp.maximum(h, 0.0)
    y = jax.lax.conv_general_dilated(
        h.astype(mm_dtype), w2.astype(mm_dtype), window_strides=(1,),
        padding=[(PAD2, PAD2)], dimension_numbers=("NCH", "OIH", "NCH"),
        preferred_element_type=jnp.float32) + b2[None, :, None]
    y = jnp.transpose(y, (0, 2, 1))
    z = y + x
    mu = jnp.mean(z, -1, keepdims=True)
    var = jnp.mean((z - mu) ** 2, -1, keepdims=True)
    return (z - mu) / jnp.sqrt(var + LN_EPS) * gamma + beta


if __name__ == "__main__":
    # Small shapes: T=56 with block_t=32 -> 2 time tiles (halo crosses the tile
    # boundary) plus tail padding (T not a multiple of the tile).
    B, T, D_IN, D_HID = 2, 56, 128, 256

    key = jax.random.PRNGKey(0)
    kx, kw1, kb1, kw2, kb2 = jax.random.split(key, 5)

    x = jax.random.normal(kx, (B, T, D_IN), dtype=jnp.float32)
    # PyTorch Conv1d parameter layouts: weight [out, in, k], bias [out].
    w1 = jax.random.normal(kw1, (D_HID, D_IN, K1), dtype=jnp.float32) * 0.05
    b1 = jax.random.normal(kb1, (D_HID,), dtype=jnp.float32) * 0.05
    w2 = jax.random.normal(kw2, (D_IN, D_HID, K2), dtype=jnp.float32) * 0.05
    b2 = jax.random.normal(kb2, (D_IN,), dtype=jnp.float32) * 0.05
    gamma = jnp.ones((D_IN,), dtype=jnp.float32)   # LayerNorm default init
    beta = jnp.zeros((D_IN,), dtype=jnp.float32)

    # Same precision strategy as the kernel (bf16 matmul operands, f32 accumulate),
    # plus a loose check against full-f32 module semantics.
    ref_bf16 = ref_ffn(x, w1, b1, w2, b2, gamma, beta, mm_dtype=jnp.bfloat16)
    ref_f32 = ref_ffn(x, w1, b1, w2, b2, gamma, beta, mm_dtype=jnp.float32)

    for fuse in (True, False):   # wide-K (v6e/v7x, d_in<256) and per-tap (v5e) paths
        params = pack_ffn_params(w1, b1, w2, b2, gamma, beta, fuse_taps=fuse)
        out = positionwise_ffn(x, params, block_t=32)
        out = jax.block_until_ready(out)
        assert out.shape == (B, T, D_IN)
        assert jnp.allclose(out, ref_bf16, atol=5e-3, rtol=5e-3), \
            f"mismatch vs bf16 reference (fuse_taps={fuse})"
        assert jnp.allclose(out, ref_f32, atol=3e-2, rtol=3e-2), \
            f"mismatch vs f32 reference (fuse_taps={fuse})"

    print("KERNEL_OK")
</pallas_src>

<mosaic_0001>
module attributes {stable_mosaic.version = 11 : i64} {
  func.func @ffn_kernel(%arg0: i32, %arg1: i32, %arg2: memref<1x72x128xbf16, #tpu.memory_space<vmem>>, %arg3: memref<1x32x128xf32, #tpu.memory_space<vmem>>, %arg4: memref<1152x256xbf16, #tpu.memory_space<vmem>>, %arg5: memref<1x256xf32, #tpu.memory_space<vmem>>, %arg6: memref<256x128xbf16, #tpu.memory_space<vmem>>, %arg7: memref<1x128xf32, #tpu.memory_space<vmem>>, %arg8: memref<1x128xf32, #tpu.memory_space<vmem>>, %arg9: memref<1x128xf32, #tpu.memory_space<vmem>>, %arg10: memref<1x32x128xf32, #tpu.memory_space<vmem>>) attributes {dimension_semantics = [#tpu.dimension_semantics<parallel>, #tpu.dimension_semantics<parallel>], iteration_bounds = array<i64: 2, 2>, scalar_prefetch = 0 : i64, scratch_operands = 0 : i64, tpu.core_type = #tpu.core_type<tc>, window_params = [{transform_indices = @transform_0, window_bounds = array<i64: 1, 72, 128>}, {transform_indices = @transform_1, window_bounds = array<i64: 1, 32, 128>}, {pipeline_mode = #tpu.pipeline_mode<synchronous>, transform_indices = @transform_2, window_bounds = array<i64: 1152, 256>}, {pipeline_mode = #tpu.pipeline_mode<synchronous>, transform_indices = @transform_3, window_bounds = array<i64: 1, 256>}, {pipeline_mode = #tpu.pipeline_mode<synchronous>, transform_indices = @transform_4, window_bounds = array<i64: 256, 128>}, {pipeline_mode = #tpu.pipeline_mode<synchronous>, transform_indices = @transform_5, window_bounds = array<i64: 1, 128>}, {pipeline_mode = #tpu.pipeline_mode<synchronous>, transform_indices = @transform_6, window_bounds = array<i64: 1, 128>}, {pipeline_mode = #tpu.pipeline_mode<synchronous>, transform_indices = @transform_7, window_bounds = array<i64: 1, 128>}, {transform_indices = @transform_8, window_bounds = array<i64: 1, 32, 128>}]} {
    %c32_i32 = arith.constant 32 : i32
    %0 = arith.muli %arg1, %c32_i32 : i32
    %1 = tpu.assume_multiple %0, 8 : i32
    %c0 = arith.constant 0 : index
    %2 = arith.index_cast %1 : i32 to index
    %c0_0 = arith.constant 0 : index
    %3 = vector.load %arg2[%c0, %2, %c0_0] : memref<1x72x128xbf16, #tpu.memory_space<vmem>>, vector<1x40x128xbf16>
    %4 = vector.shape_cast %3 : vector<1x40x128xbf16> to vector<40x128xbf16>
    %5 = vector.extract_strided_slice %4 {offsets = [0, 0], sizes = [32, 128], strides = [1, 1]} : vector<40x128xbf16> to vector<32x128xbf16>
    %6 = vector.extract_strided_slice %4 {offsets = [1, 0], sizes = [32, 128], strides = [1, 1]} : vector<40x128xbf16> to vector<32x128xbf16>
    %7 = vector.extract_strided_slice %4 {offsets = [2, 0], sizes = [32, 128], strides = [1, 1]} : vector<40x128xbf16> to vector<32x128xbf16>
    %8 = vector.extract_strided_slice %4 {offsets = [3, 0], sizes = [32, 128], strides = [1, 1]} : vector<40x128xbf16> to vector<32x128xbf16>
    %9 = vector.extract_strided_slice %4 {offsets = [4, 0], sizes = [32, 128], strides = [1, 1]} : vector<40x128xbf16> to vector<32x128xbf16>
    %10 = vector.extract_strided_slice %4 {offsets = [5, 0], sizes = [32, 128], strides = [1, 1]} : vector<40x128xbf16> to vector<32x128xbf16>
    %11 = vector.extract_strided_slice %4 {offsets = [6, 0], sizes = [32, 128], strides = [1, 1]} : vector<40x128xbf16> to vector<32x128xbf16>
    %12 = vector.extract_strided_slice %4 {offsets = [7, 0], sizes = [32, 128], strides = [1, 1]} : vector<40x128xbf16> to vector<32x128xbf16>
    %13 = vector.extract_strided_slice %4 {offsets = [8, 0], sizes = [32, 128], strides = [1, 1]} : vector<40x128xbf16> to vector<32x128xbf16>
    %14 = tpu.concatenate %5, %6, %7, %8, %9, %10, %11, %12, %13 in 1 : vector<32x128xbf16>, vector<32x128xbf16>, vector<32x128xbf16>, vector<32x128xbf16>, vector<32x128xbf16>, vector<32x128xbf16>, vector<32x128xbf16>, vector<32x128xbf16>, vector<32x128xbf16> -> vector<32x1152xbf16>
    %c0_1 = arith.constant 0 : index
    %c0_2 = arith.constant 0 : index
    %15 = vector.load %arg4[%c0_1, %c0_2] : memref<1152x256xbf16, #tpu.memory_space<vmem>>, vector<1152x256xbf16>
    %cst = arith.constant dense<0.000000e+00> : vector<32x256xf32>
    %16 = tpu.matmul %14, %15, %cst {dimension_numbers = #tpu.dot_dimension_numbers<[1], [0], [0], [1], [0, 0, 1, 1], [], []>} : vector<32x1152xbf16>, vector<1152x256xbf16>, vector<32x256xf32> -> vector<32x256xf32>
    %c0_3 = arith.constant 0 : index
    %c0_4 = arith.constant 0 : index
    %17 = vector.load %arg5[%c0_3, %c0_4] : memref<1x256xf32, #tpu.memory_space<vmem>>, vector<1x256xf32>
    %18 = vector.broadcast %17 : vector<1x256xf32> to vector<32x256xf32>
    %19 = arith.addf %16, %18 : vector<32x256xf32>
    %cst_5 = arith.constant 0.000000e+00 : f32
    %20 = vector.broadcast %cst_5 : f32 to vector<32x256xf32>
    %21 = arith.maximumf %19, %20 : vector<32x256xf32>
    %22 = arith.truncf %21 : vector<32x256xf32> to vector<32x256xbf16>
    %c0_6 = arith.constant 0 : index
    %c0_7 = arith.constant 0 : index
    %23 = vector.load %arg6[%c0_6, %c0_7] : memref<256x128xbf16, #tpu.memory_space<vmem>>, vector<256x128xbf16>
    %cst_8 = arith.constant dense<0.000000e+00> : vector<32x128xf32>
    %24 = tpu.matmul %22, %23, %cst_8 {dimension_numbers = #tpu.dot_dimension_numbers<[1], [0], [0], [1], [0, 0, 1, 1], [], []>} : vector<32x256xbf16>, vector<256x128xbf16>, vector<32x128xf32> -> vector<32x128xf32>
    %c0_9 = arith.constant 0 : index
    %c0_10 = arith.constant 0 : index
    %25 = vector.load %arg7[%c0_9, %c0_10] : memref<1x128xf32, #tpu.memory_space<vmem>>, vector<1x128xf32>
    %26 = vector.broadcast %25 : vector<1x128xf32> to vector<32x128xf32>
    %27 = arith.addf %24, %26 : vector<32x128xf32>
    %c0_11 = arith.constant 0 : index
    %c0_12 = arith.constant 0 : index
    %c0_13 = arith.constant 0 : index
    %28 = vector.load %arg3[%c0_11, %c0_12, %c0_13] : memref<1x32x128xf32, #tpu.memory_space<vmem>>, vector<1x32x128xf32>
    %29 = vector.shape_cast %28 : vector<1x32x128xf32> to vector<32x128xf32>
    %30 = arith.addf %27, %29 : vector<32x128xf32>
    %cst_14 = arith.constant dense<0.000000e+00> : vector<32xf32>
    %31 = vector.multi_reduction <add>, %30, %cst_14 [1] : vector<32x128xf32> to vector<32xf32>
    %32 = vector.shape_cast %31 : vector<32xf32> to vector<32x1xf32>
    %cst_15 = arith.constant 7.812500e-03 : f32
    %33 = vector.broadcast %cst_15 : f32 to vector<32x1xf32>
    %34 = arith.mulf %32, %33 : vector<32x1xf32>
    %35 = vector.broadcast %34 : vector<32x1xf32> to vector<32x128xf32>
    %36 = arith.subf %30, %35 : vector<32x128xf32>
    %37 = arith.mulf %36, %36 : vector<32x128xf32>
    %cst_16 = arith.constant dense<0.000000e+00> : vector<32xf32>
    %38 = vector.multi_reduction <add>, %37, %cst_16 [1] : vector<32x128xf32> to vector<32xf32>
    %39 = vector.shape_cast %38 : vector<32xf32> to vector<32x1xf32>
    %cst_17 = arith.constant 7.812500e-03 : f32
    %40 = vector.broadcast %cst_17 : f32 to vector<32x1xf32>
    %41 = arith.mulf %39, %40 : vector<32x1xf32>
    %cst_18 = arith.constant 9.99999974E-6 : f32
    %42 = vector.broadcast %cst_18 : f32 to vector<32x1xf32>
    %43 = arith.addf %41, %42 : vector<32x1xf32>
    %44 = math.rsqrt %43 : vector<32x1xf32>
    %45 = vector.broadcast %44 : vector<32x1xf32> to vector<32x128xf32>
    %46 = arith.mulf %36, %45 : vector<32x128xf32>
    %c0_19 = arith.constant 0 : index
    %c0_20 = arith.constant 0 : index
    %47 = vector.load %arg8[%c0_19, %c0_20] : memref<1x128xf32, #tpu.memory_space<vmem>>, vector<1x128xf32>
    %48 = vector.broadcast %47 : vector<1x128xf32> to vector<32x128xf32>
    %49 = arith.mulf %46, %48 : vector<32x128xf32>
    %c0_21 = arith.constant 0 : index
    %c0_22 = arith.constant 0 : index
    %50 = vector.load %arg9[%c0_21, %c0_22] : memref<1x128xf32, #tpu.memory_space<vmem>>, vector<1x128xf32>
    %51 = vector.broadcast %50 : vector<1x128xf32> to vector<32x128xf32>
    %52 = arith.addf %49, %51 : vector<32x128xf32>
    %c0_23 = arith.constant 0 : index
    %c0_24 = arith.constant 0 : index
    %c0_25 = arith.constant 0 : index
    %53 = vector.load %arg10[%c0_23, %c0_24, %c0_25] : memref<1x32x128xf32, #tpu.memory_space<vmem>>, vector<1x32x128xf32>
    %54 = vector.shape_cast %53 : vector<1x32x128xf32> to vector<32x128xf32>
    %55 = vector.shape_cast %52 : vector<32x128xf32> to vector<1x32x128xf32>
    tpu.vector_store %arg10[%c0_23, %c0_24, %c0_25], %55 {strides = array<i32>} : memref<1x32x128xf32, #tpu.memory_space<vmem>>, vector<1x32x128xf32>,
    return
  }
  func.func @transform_0(%arg0: i32, %arg1: i32) -> (i32, i32, i32) {
    %c0_i32 = arith.constant 0 : i32
    %c0_i32_0 = arith.constant 0 : i32
    %c0_i32_1 = arith.constant 0 : i32
    return %arg0, %c0_i32, %c0_i32_0 : i32, i32, i32
  }
  func.func @transform_1(%arg0: i32, %arg1: i32) -> (i32, i32, i32) {
    %c0_i32 = arith.constant 0 : i32
    %c0_i32_0 = arith.constant 0 : i32
    return %arg0, %arg1, %c0_i32 : i32, i32, i32
  }
  func.func @transform_2(%arg0: i32, %arg1: i32) -> (i32, i32) {
    %c0_i32 = arith.constant 0 : i32
    %c0_i32_0 = arith.constant 0 : i32
    %c0_i32_1 = arith.constant 0 : i32
    return %c0_i32, %c0_i32_0 : i32, i32
  }
  func.func @transform_3(%arg0: i32, %arg1: i32) -> (i32, i32) {
    %c0_i32 = arith.constant 0 : i32
    %c0_i32_0 = arith.constant 0 : i32
    %c0_i32_1 = arith.constant 0 : i32
    return %c0_i32, %c0_i32_0 : i32, i32
  }
  func.func @transform_4(%arg0: i32, %arg1: i32) -> (i32, i32) {
    %c0_i32 = arith.constant 0 : i32
    %c0_i32_0 = arith.constant 0 : i32
    %c0_i32_1 = arith.constant 0 : i32
    return %c0_i32, %c0_i32_0 : i32, i32
  }
  func.func @transform_5(%arg0: i32, %arg1: i32) -> (i32, i32) {
    %c0_i32 = arith.constant 0 : i32
    %c0_i32_0 = arith.constant 0 : i32
    %c0_i32_1 = arith.constant 0 : i32
    return %c0_i32, %c0_i32_0 : i32, i32
  }
  func.func @transform_6(%arg0: i32, %arg1: i32) -> (i32, i32) {
    %c0_i32 = arith.constant 0 : i32
    %c0_i32_0 = arith.constant 0 : i32
    %c0_i32_1 = arith.constant 0 : i32
    return %c0_i32, %c0_i32_0 : i32, i32
  }
  func.func @transform_7(%arg0: i32, %arg1: i32) -> (i32, i32) {
    %c0_i32 = arith.constant 0 : i32
    %c0_i32_0 = arith.constant 0 : i32
    %c0_i32_1 = arith.constant 0 : i32
    return %c0_i32, %c0_i32_0 : i32, i32
  }
  func.func @transform_8(%arg0: i32, %arg1: i32) -> (i32, i32, i32) {
    %c0_i32 = arith.constant 0 : i32
    %c0_i32_0 = arith.constant 0 : i32
    return %arg0, %arg1, %c0_i32 : i32, i32, i32
  }
}

module attributes {stable_mosaic.version = 11 : i64} {
  func.func @ffn_kernel(%arg0: i32, %arg1: i32, %arg2: memref<1x72x128xbf16, #tpu.memory_space<vmem>>, %arg3: memref<1x32x128xf32, #tpu.memory_space<vmem>>, %arg4: memref<1152x256xbf16, #tpu.memory_space<vmem>>, %arg5: memref<1x256xf32, #tpu.memory_space<vmem>>, %arg6: memref<256x128xbf16, #tpu.memory_space<vmem>>, %arg7: memref<1x128xf32, #tpu.memory_space<vmem>>, %arg8: memref<1x128xf32, #tpu.memory_space<vmem>>, %arg9: memref<1x128xf32, #tpu.memory_space<vmem>>, %arg10: memref<1x32x128xf32, #tpu.memory_space<vmem>>) attributes {dimension_semantics = [#tpu.dimension_semantics<parallel>, #tpu.dimension_semantics<parallel>], iteration_bounds = array<i64: 2, 2>, scalar_prefetch = 0 : i64, scratch_operands = 0 : i64, tpu.core_type = #tpu.core_type<tc>, window_params = [{transform_indices = @transform_0, window_bounds = array<i64: 1, 72, 128>}, {transform_indices = @transform_1, window_bounds = array<i64: 1, 32, 128>}, {pipeline_mode = #tpu.pipeline_mode<synchronous>, transform_indices = @transform_2, window_bounds = array<i64: 1152, 256>}, {pipeline_mode = #tpu.pipeline_mode<synchronous>, transform_indices = @transform_3, window_bounds = array<i64: 1, 256>}, {pipeline_mode = #tpu.pipeline_mode<synchronous>, transform_indices = @transform_4, window_bounds = array<i64: 256, 128>}, {pipeline_mode = #tpu.pipeline_mode<synchronous>, transform_indices = @transform_5, window_bounds = array<i64: 1, 128>}, {pipeline_mode = #tpu.pipeline_mode<synchronous>, transform_indices = @transform_6, window_bounds = array<i64: 1, 128>}, {pipeline_mode = #tpu.pipeline_mode<synchronous>, transform_indices = @transform_7, window_bounds = array<i64: 1, 128>}, {transform_indices = @transform_8, window_bounds = array<i64: 1, 32, 128>}]} {
    %c32_i32 = arith.constant 32 : i32
    %0 = arith.muli %arg1, %c32_i32 : i32
    %1 = tpu.assume_multiple %0, 8 : i32
    %c0 = arith.constant 0 : index
    %2 = arith.index_cast %1 : i32 to index
    %c0_0 = arith.constant 0 : index
    %3 = vector.load %arg2[%c0, %2, %c0_0] : memref<1x72x128xbf16, #tpu.memory_space<vmem>>, vector<1x40x128xbf16>
    %4 = vector.shape_cast %3 : vector<1x40x128xbf16> to vector<40x128xbf16>
    %5 = vector.extract_strided_slice %4 {offsets = [0, 0], sizes = [32, 128], strides = [1, 1]} : vector<40x128xbf16> to vector<32x128xbf16>
    %6 = vector.extract_strided_slice %4 {offsets = [1, 0], sizes = [32, 128], strides = [1, 1]} : vector<40x128xbf16> to vector<32x128xbf16>
    %7 = vector.extract_strided_slice %4 {offsets = [2, 0], sizes = [32, 128], strides = [1, 1]} : vector<40x128xbf16> to vector<32x128xbf16>
    %8 = vector.extract_strided_slice %4 {offsets = [3, 0], sizes = [32, 128], strides = [1, 1]} : vector<40x128xbf16> to vector<32x128xbf16>
    %9 = vector.extract_strided_slice %4 {offsets = [4, 0], sizes = [32, 128], strides = [1, 1]} : vector<40x128xbf16> to vector<32x128xbf16>
    %10 = vector.extract_strided_slice %4 {offsets = [5, 0], sizes = [32, 128], strides = [1, 1]} : vector<40x128xbf16> to vector<32x128xbf16>
    %11 = vector.extract_strided_slice %4 {offsets = [6, 0], sizes = [32, 128], strides = [1, 1]} : vector<40x128xbf16> to vector<32x128xbf16>
    %12 = vector.extract_strided_slice %4 {offsets = [7, 0], sizes = [32, 128], strides = [1, 1]} : vector<40x128xbf16> to vector<32x128xbf16>
    %13 = vector.extract_strided_slice %4 {offsets = [8, 0], sizes = [32, 128], strides = [1, 1]} : vector<40x128xbf16> to vector<32x128xbf16>
    %14 = tpu.concatenate %5, %6, %7, %8, %9, %10, %11, %12, %13 in 1 : vector<32x128xbf16>, vector<32x128xbf16>, vector<32x128xbf16>, vector<32x128xbf16>, vector<32x128xbf16>, vector<32x128xbf16>, vector<32x128xbf16>, vector<32x128xbf16>, vector<32x128xbf16> -> vector<32x1152xbf16>
    %c0_1 = arith.constant 0 : index
    %c0_2 = arith.constant 0 : index
    %15 = vector.load %arg4[%c0_1, %c0_2] : memref<1152x256xbf16, #tpu.memory_space<vmem>>, vector<1152x256xbf16>
    %cst = arith.constant dense<0.000000e+00> : vector<32x256xf32>
    %16 = tpu.matmul %14, %15, %cst {dimension_numbers = #tpu.dot_dimension_numbers<[1], [0], [0], [1], [0, 0, 1, 1], [], []>} : vector<32x1152xbf16>, vector<1152x256xbf16>, vector<32x256xf32> -> vector<32x256xf32>
    %c0_3 = arith.constant 0 : index
    %c0_4 = arith.constant 0 : index
    %17 = vector.load %arg5[%c0_3, %c0_4] : memref<1x256xf32, #tpu.memory_space<vmem>>, vector<1x256xf32>
    %18 = vector.broadcast %17 : vector<1x256xf32> to vector<32x256xf32>
    %19 = arith.addf %16, %18 : vector<32x256xf32>
    %cst_5 = arith.constant 0.000000e+00 : f32
    %20 = vector.broadcast %cst_5 : f32 to vector<32x256xf32>
    %21 = arith.maximumf %19, %20 : vector<32x256xf32>
    %22 = arith.truncf %21 : vector<32x256xf32> to vector<32x256xbf16>
    %c0_6 = arith.constant 0 : index
    %c0_7 = arith.constant 0 : index
    %23 = vector.load %arg6[%c0_6, %c0_7] : memref<256x128xbf16, #tpu.memory_space<vmem>>, vector<256x128xbf16>
    %cst_8 = arith.constant dense<0.000000e+00> : vector<32x128xf32>
    %24 = tpu.matmul %22, %23, %cst_8 {dimension_numbers = #tpu.dot_dimension_numbers<[1], [0], [0], [1], [0, 0, 1, 1], [], []>} : vector<32x256xbf16>, vector<256x128xbf16>, vector<32x128xf32> -> vector<32x128xf32>
    %c0_9 = arith.constant 0 : index
    %c0_10 = arith.constant 0 : index
    %25 = vector.load %arg7[%c0_9, %c0_10] : memref<1x128xf32, #tpu.memory_space<vmem>>, vector<1x128xf32>
    %26 = vector.broadcast %25 : vector<1x128xf32> to vector<32x128xf32>
    %27 = arith.addf %24, %26 : vector<32x128xf32>
    %c0_11 = arith.constant 0 : index
    %c0_12 = arith.constant 0 : index
    %c0_13 = arith.constant 0 : index
    %28 = vector.load %arg3[%c0_11, %c0_12, %c0_13] : memref<1x32x128xf32, #tpu.memory_space<vmem>>, vector<1x32x128xf32>
    %29 = vector.shape_cast %28 : vector<1x32x128xf32> to vector<32x128xf32>
    %30 = arith.addf %27, %29 : vector<32x128xf32>
    %cst_14 = arith.constant dense<0.000000e+00> : vector<32xf32>
    %31 = vector.multi_reduction <add>, %30, %cst_14 [1] : vector<32x128xf32> to vector<32xf32>
    %32 = vector.shape_cast %31 : vector<32xf32> to vector<32x1xf32>
    %cst_15 = arith.constant 7.812500e-03 : f32
    %33 = vector.broadcast %cst_15 : f32 to vector<32x1xf32>
    %34 = arith.mulf %32, %33 : vector<32x1xf32>
    %35 = vector.broadcast %34 : vector<32x1xf32> to vector<32x128xf32>
    %36 = arith.subf %30, %35 : vector<32x128xf32>
    %37 = arith.mulf %36, %36 : vector<32x128xf32>
    %cst_16 = arith.constant dense<0.000000e+00> : vector<32xf32>
    %38 = vector.multi_reduction <add>, %37, %cst_16 [1] : vector<32x128xf32> to vector<32xf32>
    %39 = vector.shape_cast %38 : vector<32xf32> to vector<32x1xf32>
    %cst_17 = arith.constant 7.812500e-03 : f32
    %40 = vector.broadcast %cst_17 : f32 to vector<32x1xf32>
    %41 = arith.mulf %39, %40 : vector<32x1xf32>
    %cst_18 = arith.constant 9.99999974E-6 : f32
    %42 = vector.broadcast %cst_18 : f32 to vector<32x1xf32>
    %43 = arith.addf %41, %42 : vector<32x1xf32>
    %44 = math.rsqrt %43 : vector<32x1xf32>
    %45 = vector.broadcast %44 : vector<32x1xf32> to vector<32x128xf32>
    %46 = arith.mulf %36, %45 : vector<32x128xf32>
    %c0_19 = arith.constant 0 : index
    %c0_20 = arith.constant 0 : index
    %47 = vector.load %arg8[%c0_19, %c0_20] : memref<1x128xf32, #tpu.memory_space<vmem>>, vector<1x128xf32>
    %48 = vector.broadcast %47 : vector<1x128xf32> to vector<32x128xf32>
    %49 = arith.mulf %46, %48 : vector<32x128xf32>
    %c0_21 = arith.constant 0 : index
    %c0_22 = arith.constant 0 : index
    %50 = vector.load %arg9[%c0_21, %c0_22] : memref<1x128xf32, #tpu.memory_space<vmem>>, vector<1x128xf32>
    %51 = vector.broadcast %50 : vector<1x128xf32> to vector<32x128xf32>
    %52 = arith.addf %49, %51 : vector<32x128xf32>
    %c0_23 = arith.constant 0 : index
    %c0_24 = arith.constant 0 : index
    %c0_25 = arith.constant 0 : index
    %53 = vector.load %arg10[%c0_23, %c0_24, %c0_25] : memref<1x32x128xf32, #tpu.memory_space<vmem>>, vector<1x32x128xf32>
    %54 = vector.shape_cast %53 : vector<1x32x128xf32> to vector<32x128xf32>
    %55 = vector.shape_cast %52 : vector<32x128xf32> to vector<1x32x128xf32>
    tpu.vector_store %arg10[%c0_23, %c0_24, %c0_25], %55 {strides = array<i32>} : memref<1x32x128xf32, #tpu.memory_space<vmem>>, vector<1x32x128xf32>,
    return
  }
  func.func @transform_0(%arg0: i32, %arg1: i32) -> (i32, i32, i32) {
    %c0_i32 = arith.constant 0 : i32
    %c0_i32_0 = arith.constant 0 : i32
    %c0_i32_1 = arith.constant 0 : i32
    return %arg0, %c0_i32, %c0_i32_0 : i32, i32, i32
  }
  func.func @transform_1(%arg0: i32, %arg1: i32) -> (i32, i32, i32) {
    %c0_i32 = arith.constant 0 : i32
    %c0_i32_0 = arith.constant 0 : i32
    return %arg0, %arg1, %c0_i32 : i32, i32, i32
  }
  func.func @transform_2(%arg0: i32, %arg1: i32) -> (i32, i32) {
    %c0_i32 = arith.constant 0 : i32
    %c0_i32_0 = arith.constant 0 : i32
    %c0_i32_1 = arith.constant 0 : i32
    return %c0_i32, %c0_i32_0 : i32, i32
  }
  func.func @transform_3(%arg0: i32, %arg1: i32) -> (i32, i32) {
    %c0_i32 = arith.constant 0 : i32
    %c0_i32_0 = arith.constant 0 : i32
    %c0_i32_1 = arith.constant 0 : i32
    return %c0_i32, %c0_i32_0 : i32, i32
  }
  func.func @transform_4(%arg0: i32, %arg1: i32) -> (i32, i32) {
    %c0_i32 = arith.constant 0 : i32
    %c0_i32_0 = arith.constant 0 : i32
    %c0_i32_1 = arith.constant 0 : i32
    return %c0_i32, %c0_i32_0 : i32, i32
  }
  func.func @transform_5(%arg0: i32, %arg1: i32) -> (i32, i32) {
    %c0_i32 = arith.constant 0 : i32
    %c0_i32_0 = arith.constant 0 : i32
    %c0_i32_1 = arith.constant 0 : i32
    return %c0_i32, %c0_i32_0 : i32, i32
  }
  func.func @transform_6(%arg0: i32, %arg1: i32) -> (i32, i32) {
    %c0_i32 = arith.constant 0 : i32
    %c0_i32_0 = arith.constant 0 : i32
    %c0_i32_1 = arith.constant 0 : i32
    return %c0_i32, %c0_i32_0 : i32, i32
  }
  func.func @transform_7(%arg0: i32, %arg1: i32) -> (i32, i32) {
    %c0_i32 = arith.constant 0 : i32
    %c0_i32_0 = arith.constant 0 : i32
    %c0_i32_1 = arith.constant 0 : i32
    return %c0_i32, %c0_i32_0 : i32, i32
  }
  func.func @transform_8(%arg0: i32, %arg1: i32) -> (i32, i32, i32) {
    %c0_i32 = arith.constant 0 : i32
    %c0_i32_0 = arith.constant 0 : i32
    return %arg0, %arg1, %c0_i32 : i32, i32, i32
  }
}

</mosaic_0001>

<bundles_post_ra>
// kernel: tpu_custom_call.1
= control target key start
LH: loop header
LB: loop body
LE: loop exit
PB: predicated region body
PF: predicated region fallthrough
CT: control target
= control target key end

     0   :  { %s3456_s0 = inlined_call_operand.hbm [shape: bf16[2,72,128], index: 0, kind: input, shape index: {}]   ;;  %s3457_s1 = inlined_call_operand.hbm [shape: f32[2,64,128], index: 1, kind: input, shape index: {}]   ;;  %s3458_s2 = inlined_call_operand.hbm [shape: bf16[1152,256], index: 2, kind: input, shape index: {}]   ;;  %s3459_s3 = inlined_call_operand.vmem [shape: f32[1,256], index: 3, kind: input, shape index: {}]   ;;  %s3460_s4 = inlined_call_operand.hbm [shape: bf16[256,128], index: 4, kind: input, shape index: {}]   ;;  %s3461_s5 = inlined_call_operand.vmem [shape: f32[1,128], index: 5, kind: input, shape index: {}]   ;;  %s3462_s6 = inlined_call_operand.vmem [shape: f32[1,128], index: 6, kind: input, shape index: {}]   ;;  %s3463_s7 = inlined_call_operand.vmem [shape: f32[1,128], index: 7, kind: input, shape index: {}]   ;;  %s3464_s8 = inlined_call_operand.hbm [shape: f32[2,64,128], index: 8, kind: output, shape index: {}]  }
   0x1   :  { %3483 = sst [smem:[#allocation24_spill]] %s3456_s0 }
   0x2   :  { %3484 = sst [smem:[#allocation25_spill]] %s3458_s2 }
   0x3   :  { %3485 = sst [smem:[#allocation26_spill]] %s3459_s3 }
   0x4   :  { %3486 = sst [smem:[#allocation27_spill]] %s3460_s4 }
   0x5   :  { %3487 = sst [smem:[#allocation28_spill]] %s3461_s5 }
   0x6   :  { %3488 = sst [smem:[#allocation29_spill]] %s3462_s6 }
   0x7   :  { %3489 = sst [smem:[#allocation30_spill]] %s3463_s7 }
   0x8   :  { %3490 = sst [smem:[#allocation31_spill]] %s3464_s8 }
   0x9   :  { %13 = vsyncpa [#allocation3], 0 }
   0xa   :  { %15 = vsyncpa [#allocation3 + $0x1], 0 }
   0xb   :  { %16 = vsyncpa [#allocation6], 0 }
   0xc   :  { %18 = vsyncpa [#allocation6 + $0x1], 0 }
   0xd   :  { %19 = vsyncpa [#allocation9], 0 }
   0xe   :  { %20 = vsyncpa [#allocation4], 0 }
   0xf   :  { %22 = vsyncpa [#allocation4 + $0x1], 0  ;;  %s3001_s27 = smov 0   ;;  %s3003_s28 = smov 0  }
  0x10   :  { %s3005_s29 = smov 0   ;;  %s3007_s30 = smov 0  }
  0x11   :  { %s3009_s9 = smov 0   ;;  %s3011_s10 = smov 0  }
  0x12   :  { %s3013_s11 = smov 0   ;;  %s3015_s12 = smov 0  }
  0x13   :  { %s3017_s13 = smov 0   ;;  %s3019_s14 = smov 0  }
  0x14   :  { %s3021_s15 = smov 0  }
  0x15 LB: > { %3491 = sst [smem:[#allocation16_spill]] %s2902_s27  ;;  %s3055_s16 = sadd.s32 4294967295, %s2942_s15   ;;  %s2942_s15 = sphi %s3021_s15, %s28_s15   ;;  %s2938_s14 = sphi %s3019_s14, %s3547_s14   ;;  %s2934_s13 = sphi %s3017_s13, %s3546_s13   ;;  %s2930_s12 = sphi %s3015_s12, %s3545_s12   ;;  %s2926_s11 = sphi %s3013_s11, %s3544_s11   ;;  %s2922_s10 = sphi %s3011_s10, %s3543_s10   ;;  %s2918_s9 = sphi %s3009_s9, %s3542_s9   ;;  %s2914_s30 = sphi %s3007_s30, %s3541_s30   ;;  %s2910_s29 = sphi %s3005_s29, %s3540_s29   ;;  %s2906_s28 = sphi %s3003_s28, %s3539_s28   ;;  %s2902_s27 = sphi %s3001_s27, %s3538_s27  }
  0x16   : > { %3492 = sst [smem:[#allocation17_spill]] %s2926_s11  ;;  %s2100_s17 = sadd.s32 4294967294, %s2942_s15  }
  0x17   : > { %3493 = sst [smem:[#allocation18_spill]] %s2930_s12  ;;  %p60_p0 = scmp.ne.s32.totalorder %s2918_s9, %s2914_s30 }
  0x18   : > { %p3472_p1 = scmp.eq.s32.totalorder %s3055_s16, 0  ;;  %p88_p2 = scmp.ne.s32.totalorder %s2906_s28, %s2902_s27 }
  0x19   : > { %p246_p4 = scmp.eq.s32.totalorder %s2100_s17, 3  ;;  %p2101_p6 = scmp.ge.s32.totalorder %s2942_s15, 1 }
  0x1a   : > { %p3064_p3 = por %p3472_p1, %p60_p0  ;;  %p3070_p5 = por %p88_p2, %p3472_p1 }
  0x1b   : > { %p3075_p7 = por %p246_p4, %p88_p2  ;;  %p253_p8 = scmp.lt.s32.totalorder %s2942_s15, 5 }
  0x1c   : > { %s3495_s19 = scalar_select %p3070_p5, 1, 0 }
  0x1d   : > { %s3497_s20 = scalar_select %p3075_p7, 1, 0 }
  0x1e   : > { %3496 = sst [smem:[#allocation19_spill]] %s3495_s19  ;;  %p3080_p9 = pnand %p2101_p6, %p253_p8 }
  0x1f   : > { %3498 = sst [smem:[#allocation20_spill]] %s3497_s20  ;;  %s2944_s22 = smov [#allocation7]  }
  0x20   : > { %s265_s23 = sshll.u32 %s2944_s22, 4  ;;  %p2336_p10 = pneg %p3080_p9  ;;  %s266_s23 = int_to_ptr.vmem [resolvable:$true] %s265_s23 }
  0x21   : > { %s2945_s25 = smov [#allocation8]   ;;  %s2713_s30 = scalar_lea.vmem %s266_s23, 18432 }
  0x22   : > { %p3088_p11 = pnand %p2336_p10, %p3472_p1  ;;  %s281_s26 = sshll.u32 %s2945_s25, 4  ;;  %s282_s26 = int_to_ptr.vmem [resolvable:$true] %s281_s26 }
  0x23   : > { %p2714_p13 = scmp.ne.s32.totalorder %s266_s23, %s2713_s30  ;;  %p2721_p4 = scmp.lt.s32.totalorder %s266_s23, %s266_s23 }
  0x24   : > { %p2704_p12 = pneg %p3088_p11  ;;  %p2722_p6 = scmp.lt.s32.totalorder %s2713_s30, %s2713_s30 }
  0x26   : > { %p2716_p0 = pnand %p2714_p13, %p2704_p12  ;;  %p2723_p8 = por %p2722_p6, %p2721_p4 }
  0x28   : > { %p2717_p2 = pneg %p2716_p0 }
  0x2a   : > { %p2724_p10 = pnand %p2723_p8, %p2717_p2 }
  0x2c   : > { %2727 = shalt.err (!%p2724_p10)
}
  0x2d   : > { %s3467_s17 = smov 128   ;;  %s3468_s22 = smov 8  }
  0x2e   : > { %s3501_s2 = sld [smem:[#allocation25_spill]]  ;;  %s2739_s27 = scalar_lea.vmem %s282_s26, 2048 }
  0x2f   : > { %p2740_p13 = scmp.ne.s32.totalorder %s282_s26, %s2739_s27  ;;  %p2747_p2 = scmp.lt.s32.totalorder %s282_s26, %s282_s26 }
  0x30   : > { %p2748_p6 = scmp.lt.s32.totalorder %s2739_s27, %s2739_s27 }
  0x31   : > { %p2742_p0 = pnand %p2740_p13, %p2704_p12 }
  0x32   : > { %p2749_p8 = por %p2748_p6, %p2747_p2 }
  0x33   : > { %p2743_p4 = pneg %p2742_p0 }
  0x34   : > { %2339 = dma.hbm_to_vmem [thread:$0]  (!%p3088_p11), %s3501_s2, 18432, %s266_s23, [#allocation6], %s3467_s17, %s3467_s17, %s3468_s22  }
  0x35   : > { %p2750_p10 = pnand %p2749_p8, %p2743_p4 }
  0x37   : > { %2753 = shalt.err (!%p2750_p10)
}
  0x38   : > { %s3470_s30 = smov 64   ;;  %s3471_s20 = smov 4  }
  0x39   : > { %s3502_s4 = sld [smem:[#allocation27_spill]]  ;;  %p240_p12 = scmp.eq.s32.totalorder %s3055_s16, 3 }
  0x3a   : > { %p54_p13 = scmp.ne.s32.totalorder %s2922_s10, %s2918_s9  ;;  %p3474_p0 = scmp.eq.s32.totalorder %s2942_s15, 0 }
  0x3b   : > { %p3473_p4 = scmp.lt.s32.totalorder %s2942_s15, 4  ;;  %s304_s17 = sand.u32 1, %s2922_s10  }
  0x3c   : > { %p56_p2 = por %p3474_p0, %p54_p13  ;;  %s2319_s22 = smul.u32 36, %s304_s17 }
  0x3d   : > { %s2320_s2 = smul.u32 576, %s2938_s14  ;;  %s3504_s0 = sld [smem:[#allocation24_spill]] }
  0x3e   : > { %p3128_p6 = pnand %p3473_p4, %p56_p2  ;;  %s308_s27 = scalar_lea.vmem [#allocation2], %s2319_s22 }
  0x3f   : > { %2342 = dma.hbm_to_vmem [thread:$0]  (!%p3088_p11), %s3502_s4, 2048, %s282_s26, [#allocation9], %s3470_s30, %s3470_s30, %s3471_s20  }
  0x40   : > { %s315_s23 = sshll.u32 %s308_s27, 4  ;;  %s305_s25 = scalar_lea.sflag [#allocation3], %s304_s17  ;;  %s316_s23 = int_to_ptr.vmem [resolvable:$true] %s315_s23 }
  0x41   : > { %p2756_p11 = pneg %p3128_p6  ;;  %s2767_s30 = scalar_lea.vmem %s316_s23, 576 }
  0x42   : > { %p2768_p8 = scmp.ne.s32.totalorder %s316_s23, %s2767_s30  ;;  %s2950_s20 = smov [#allocation2]  }
  0x43   : > { %s314_s26 = scalar_lea.hbm %s3504_s0, %s2320_s2  ;;  %s2772_s4 = sshll.u32 %s2950_s20, 4  ;;  %s2773_s4 = int_to_ptr.vmem [resolvable:$false] %s2772_s4 }
  0x44   : > { %p2770_p10 = pnand %p2768_p8, %p2756_p11  ;;  %s2774_s6 = scalar_lea.vmem %s2773_s4, 1152 }
  0x45   : > { %p2775_p2 = scmp.lt.s32.totalorder %s316_s23, %s2773_s4  ;;  %p2776_p1 = scmp.lt.s32.totalorder %s2774_s6, %s2767_s30 }
  0x46   : > { %p2771_p13 = pneg %p2770_p10 }
  0x47   : > { %p2777_p4 = por %p2776_p1, %p2775_p2 }
  0x49   : > { %p2778_p0 = pnand %p2777_p4, %p2771_p13 }
  0x4b   : > { %2781 = shalt.err (!%p2778_p0)
}
  0x4c   : > { %s3505_s2 = smov 4   ;;  %s3506_s7 = smov 64  }
  0x4d   : > { %2346 = dma.hbm_to_vmem [thread:$0]  (!%p3128_p6), %s314_s26, 576, %s316_s23, %s305_s25, %s3506_s7, %s3506_s7, %s3505_s2  }
  0x4e   : > { %s47_s4 = sadd.s32 1, %s2922_s10  ;;  %s37_s6 = sadd.s32 1, %s2934_s13 }
  0x4f   : > { %p38_p1 = scmp.ge.s32.totalorder %s37_s6, 2  ;;  %s75_s8 = sadd.s32 1, %s2910_s29 }
  0x50   : > { %p82_p0 = scmp.ne.s32.totalorder %s2910_s29, %s2906_s28  ;;  %s327_s17 = sand.u32 1, %s2910_s29  }
  0x51   : > { %s3549_s6 = smov (%p38_p1, %s37_s6), 0  ;;  %s3508_s22 = sadd.s32 1, %s2938_s14 }
  0x52   : > { %3507 = sst [smem:[#allocation21_spill]] %s3549_s6  ;;  %s3551_s22 = smov (!%p38_p1, %s3508_s22), %s2938_s14 }
  0x53   : > { %s71_s30 = ssub.s32 %s2934_s13, %s3549_s6  ;;  %s325_s20 = sand.u32 1, %s2942_s15  }
  0x54   : > { %p42_p4 = scmp.ge.s32.totalorder %s3551_s22, 2  ;;  %p3158_p6 = por %p240_p12, %p82_p0 }
  0x55   : > { %p3511_p11 = scmp.eq.s32.totalorder %s2942_s15, 0  ;;  %s2106_s26 = sshll.u32 %s327_s17, 5 }
  0x56   : > { %s3509_s25 = scalar_select %p3158_p6, 1, 0 }
  0x57   : > { %p3164_p8 = por %p82_p0, %p3511_p11  ;;  %s3553_s22 = smov (%p42_p4, %s3551_s22), 0 }
  0x58   : > { %3510 = sst [smem:[#allocation22_spill]] %s3509_s25  ;;  %s2107_s27 = sshll.u32 %s2934_s13, 2 }
  0x59   : > { %3513 = sst [smem:[#allocation23_spill]] %s3553_s22  ;;  %s44_s23 = ssub.s32 %s2938_s14, %s3553_s22 }
  0x5a   : > { %s2108_s2 = sshll.u32 %s2938_s14, 3  ;;  %p45_p10 = scmp.eq.s32.totalorder %s44_s23, 0 }
  0x5b   : > { %s72_s7 = sor.u32 %s71_s30, %s44_s23  ;;  %s335_s0 = sadd.s32 %s2108_s2, %s2107_s27 }
  0x5c   : > { %p73_p12 = scmp.eq.s32.totalorder %s72_s7, 0  ;;  %s2109_s12 = sshll.u32 %s335_s0, 7 }
  0x5d   : > { %s3175_s6 = scalar_select %p45_p10, %s2922_s10, %s47_s4  }
  0x5e   : > { %s3178_s25 = scalar_select %p73_p12, %s2910_s29, %s75_s8  }
  0x5f   : > { %s329_s5 = scalar_lea.vmem [#allocation5], %s2106_s26  ;;  %s337_s19 = scalar_lea.hbm %s3457_s1, %s2109_s12 }
  0x60   : > { %s338_s3 = sshll.u32 %s329_s5, 4  ;;  %p3514_p13 = scmp.lt.s32.totalorder %s2942_s15, 4  ;;  %s339_s3 = int_to_ptr.vmem [resolvable:$true] %s338_s3 }
  0x61   : > { %s326_s30 = scalar_lea.sflag [#allocation6], %s325_s20  ;;  %s2795_s4 = scalar_lea.vmem %s339_s3, 512 }
  0x62   : > { %p3187_p2 = pnand %p3514_p13, %p3164_p8  ;;  %p2796_p0 = scmp.ne.s32.totalorder %s339_s3, %s2795_s4 }
  0x63   : > { %s2951_s0 = smov [#allocation5]  }
  0x64   : > { %p2784_p1 = pneg %p3187_p2  ;;  %s2800_s5 = sshll.u32 %s2951_s0, 4  ;;  %s2801_s5 = int_to_ptr.vmem [resolvable:$false] %s2800_s5 }
  0x65   : > { %s2802_s11 = scalar_lea.vmem %s2801_s5, 1024  ;;  %p2803_p10 = scmp.lt.s32.totalorder %s339_s3, %s2801_s5 }
  0x66   : > { %p2798_p4 = pnand %p2796_p0, %p2784_p1  ;;  %p2804_p12 = scmp.lt.s32.totalorder %s2802_s11, %s2795_s4 }
  0x68   : > { %p2799_p11 = pneg %p2798_p4  ;;  %p2805_p7 = por %p2804_p12, %p2803_p10 }
  0x6a   : > { %p2806_p6 = pnand %p2805_p7, %p2799_p11 }
  0x6c   : > { %2809 = shalt.err (!%p2806_p6)
}
  0x6d   : > { %s3516_s12 = smov 8   ;;  %s3517_s8 = smov 128  }
  0x6e   : > { %2349 = dma.hbm_to_vmem [thread:$0]  (!%p3187_p2), %s337_s19, 512, %s339_s3, %s326_s30, %s3517_s8, %s3517_s8, %s3516_s12  }
  0x6f   : > { %350 = sbr.rel (%p3080_p9) target bundleno = 1027 (0x403), region = 52  ;;  %s352_s20 = sand.u32 (!%p3080_p9), 1, %s2918_s9  }
  0x70   : > { %s3201_s24 = smul.u32 (!%p3080_p9), 36, %s352_s20  ;;  %s353_s26 = scalar_lea.sflag (!%p3080_p9), [#allocation3], %s352_s20 }
  0x72   : > { %s356_s27 = scalar_lea.vmem (!%p3080_p9), [#allocation2], %s3201_s24 }
  0x74   : > { %2881 = dma.done.wait (%p3064_p3), %s353_s26, 576  }
  0x75   : > { %2883 = vsyncadd (%p3064_p3), %s353_s26, 4294966720  ;;  %s361_s19 = sand.u32 1, %s3055_s16   ;;  %s363_s21 = sand.u32 1, %s2906_s28  }
  0x76   : > { %s3212_s22 = sshll.u32 %s363_s21, 5  ;;  %s362_s23 = scalar_lea.sflag [#allocation6], %s361_s19 }
  0x77   : > { %s3215_s2 = scalar_lea.vmem [#allocation5], %s3212_s22 }
  0x78   : > { %2885 = dma.done.wait (%p3070_p5), %s362_s23, 512  }
  0x79   : > { %2887 = vsyncadd (%p3070_p5), %s362_s23, 4294966784  ;;  %p3519_p3 = scmp.eq.s32.totalorder %s3055_s16, 0 }
  0x7b   : > { %2889 = dma.done.wait (%p3519_p3), [#allocation6], 18432   ;;  %p3520_p7 = pmov %p3519_p3 }
  0x7c   : > { %p3521_p9 = pmov %p3519_p3 }
  0x7d   : > { %2891 = vsyncadd (%p3520_p7), [#allocation6], 4294948864 }
  0x7e   : > { %2893 = dma.done.wait (%p3521_p9), [#allocation9], 2048   ;;  %p3522_p6 = pmov %p3519_p3 }
  0x7f   : > { %v2457_v0 = vld [vmem:[#allocation7 + $0x74] ss:$8 sps:$4 sm:$0xff]   ;;  %v2459_v1 = vld [vmem:[#allocation7 + $0x70] ss:$8 sps:$4 sm:$0xff]   ;;  %v2463_v4 = vld [vmem:[#allocation7 + $0x64] ss:$8 sps:$4 sm:$0xff]  }
  0x80   : > { %2895 = vsyncadd (%p3522_p6), [#allocation9], 4294965248  ;;  %1410 = vmatprep.subr.bf16.mxu0 %v2457_v0  ;;  %v2460_v2 = vld [vmem:[#allocation7 + $0x174] ss:$8 sps:$4 sm:$0xff]   ;;  %v2462_v3 = vld [vmem:[#allocation7 + $0x170] ss:$8 sps:$4 sm:$0xff]  }
  0x81   : > { %1411 = vmatpush1.bf16.msra.mxu0 %v2459_v1  ;;  %v2465_v5 = vld [vmem:[#allocation7 + $0x60] ss:$8 sps:$4 sm:$0xff]   ;;  %1463 = vmatprep.subr.bf16.mxu1 %v2460_v2  ;;  %v2466_v6 = vld [vmem:[#allocation7 + $0x164] ss:$8 sps:$4 sm:$0xff]   ;;  %v2469_v8 = vld [vmem:[#allocation7 + $0x54] ss:$8 sps:$4 sm:$0xff]  }
  0x82   : > { %1464 = vmatpush1.bf16.msra.mxu1 %v2462_v3  ;;  %1412 = vmatprep.subr.bf16.mxu0 %v2463_v4  ;;  %v2468_v7 = vld [vmem:[#allocation7 + $0x160] ss:$8 sps:$4 sm:$0xff]   ;;  %v2471_v9 = vld [vmem:[#allocation7 + $0x50] ss:$8 sps:$4 sm:$0xff]   ;;  %v2472_v10 = vld [vmem:[#allocation7 + $0x154] ss:$8 sps:$4 sm:$0xff]  }
  0x83   : > { %1465 = vmatprep.subr.bf16.mxu1 %v2466_v6  ;;  %v2475_v11 = vld [vmem:[#allocation7 + $0x44] ss:$8 sps:$4 sm:$0xff]   ;;  %v2474_v12 = vld [vmem:[#allocation7 + $0x150] ss:$8 sps:$4 sm:$0xff]   ;;  %v2477_v14 = vld [vmem:[#allocation7 + $0x40] ss:$8 sps:$4 sm:$0xff]  }
  0x84   : > { %v2478_v13 = vld [vmem:[#allocation7 + $0x144] ss:$8 sps:$4 sm:$0xff]   ;;  %v2481_v15 = vld [vmem:[#allocation7 + $0x34] ss:$8 sps:$4 sm:$0xff]   ;;  %v2480_v16 = vld [vmem:[#allocation7 + $0x140] ss:$8 sps:$4 sm:$0xff]  }
  0x85   : > { %1413 = vmatpush1.bf16.msra.mxu0 %v2465_v5  ;;  %v2484_v17 = vld [vmem:[#allocation7 + $0x134] ss:$8 sps:$4 sm:$0xff]   ;;  %v2483_v18 = vld [vmem:[#allocation7 + $0x30] ss:$8 sps:$4 sm:$0xff]   ;;  %v2487_v19 = vld [vmem:[#allocation7 + $0x24] ss:$8 sps:$4 sm:$0xff]  }
  0x86   : > { %1414 = vmatprep.subr.bf16.mxu0 %v2469_v8  ;;  %1466 = vmatpush1.bf16.msra.mxu1 %v2468_v7  ;;  %v2486_v20 = vld [vmem:[#allocation7 + $0x130] ss:$8 sps:$4 sm:$0xff]   ;;  %v2490_v21 = vld [vmem:[#allocation7 + $0x124] ss:$8 sps:$4 sm:$0xff]   ;;  %v2489_v22 = vld [vmem:[#allocation7 + $0x20] ss:$8 sps:$4 sm:$0xff]  }
  0x87   : > { %1467 = vmatprep.subr.bf16.mxu1 %v2472_v10  ;;  %v2493_v23 = vld [vmem:[#allocation7 + $0x14] ss:$8 sps:$4 sm:$0xff]   ;;  %v2492_v24 = vld [vmem:[#allocation7 + $0x120] ss:$8 sps:$4 sm:$0xff]   ;;  %s3523_s16 = sld [smem:[#allocation17_spill]]  ;;  %vm486_vm2 = vcmask 1045504  }
  0x88   : > { %v2496_v25 = vld [vmem:[#allocation7 + $0x114] ss:$8 sps:$4 sm:$0xff]   ;;  %v2495_v26 = vld [vmem:[#allocation7 + $0x10] ss:$8 sps:$4 sm:$0xff]   ;;  %v2499_v27 = vld [vmem:[#allocation7 + $0x4] ss:$8 sps:$4 sm:$0xff]  }
  0x89   : > { %1415 = vmatpush1.bf16.msra.mxu0 %v2471_v9  ;;  %v2498_v28 = vld [vmem:[#allocation7 + $0x110] ss:$8 sps:$4 sm:$0xff]   ;;  %v2502_v29 = vld [vmem:[#allocation7 + $0x104] ss:$8 sps:$4 sm:$0xff]   ;;  %v2501_v30 = vld [vmem:[#allocation7] ss:$8 sps:$4 sm:$0xff]  }
  0x8a   : > { %1416 = vmatprep.subr.bf16.mxu0 %v2475_v11  ;;  %1468 = vmatpush1.bf16.msra.mxu1 %v2474_v12  ;;  %v2505_v31 = vld [vmem:[#allocation7 + $0xf4] ss:$8 sps:$4 sm:$0xff]   ;;  %v2504_v32 = vld [vmem:[#allocation7 + $0x100] ss:$8 sps:$4 sm:$0xff]   ;;  %v2507_v34 = vld [vmem:[#allocation7 + $0xf0] ss:$8 sps:$4 sm:$0xff]  }
  0x8b   : > { %1469 = vmatprep.subr.bf16.mxu1 %v2478_v13  ;;  %v2508_v33 = vld [vmem:[#allocation7 + $0x1f4] ss:$8 sps:$4 sm:$0xff]   ;;  %v2511_v35 = vld [vmem:[#allocation7 + $0xe4] ss:$8 sps:$4 sm:$0xff]   ;;  %v2510_v36 = vld [vmem:[#allocation7 + $0x1f0] ss:$8 sps:$4 sm:$0xff]  }
  0x8c   : > { %v2514_v37 = vld [vmem:[#allocation7 + $0x1e4] ss:$8 sps:$4 sm:$0xff]   ;;  %v2513_v38 = vld [vmem:[#allocation7 + $0xe0] ss:$8 sps:$4 sm:$0xff]   ;;  %v2517_v39 = vld [vmem:[#allocation7 + $0xd4] ss:$8 sps:$4 sm:$0xff]  }
  0x8d   : > { %1417 = vmatpush1.bf16.msra.mxu0 %v2477_v14  ;;  %s2115_s18 = sshll.u32 %s3523_s16, 5  ;;  %v2516_v40 = vld [vmem:[#allocation7 + $0x1e0] ss:$8 sps:$4 sm:$0xff]   ;;  %v2520_v41 = vld [vmem:[#allocation7 + $0x1d4] ss:$8 sps:$4 sm:$0xff]   ;;  %vm508_vm3 = vcmask 1044480  }
  0x8e   : > { %1418 = vmatprep.subr.bf16.mxu0 %v2481_v15  ;;  %1470 = vmatpush1.bf16.msra.mxu1 %v2480_v16  ;;  %s415_s7 = sshra.s32 %s2115_s18, 3  ;;  %v2519_v42 = vld [vmem:[#allocation7 + $0xd0] ss:$8 sps:$4 sm:$0xff]   ;;  %v2523_v43 = vld [vmem:[#allocation7 + $0xc4] ss:$8 sps:$4 sm:$0xff]   ;;  %vm462_vm4 = vcmask 1046528  }
  0x8f   : > { %1471 = vmatprep.subr.bf16.mxu1 %v2484_v17  ;;  %s2116_s17 = sshll.u32 %s415_s7, 2  ;;  %v2522_v44 = vld [vmem:[#allocation7 + $0x1d0] ss:$8 sps:$4 sm:$0xff]   ;;  %v2526_v45 = vld [vmem:[#allocation7 + $0x1c4] ss:$8 sps:$4 sm:$0xff]   ;;  %s3524_s5 = sld [smem:[#allocation26_spill]] }
  0x90   : > { %s3232_s30 = scalar_lea.vmem %s356_s27, %s2116_s17 [#allocation2]  ;;  %v2525_v48 = vld [vmem:[#allocation7 + $0xc0] ss:$8 sps:$4 sm:$0xff]   ;;  %v2529_v52 = vld [vmem:[#allocation7 + $0xb4] ss:$8 sps:$4 sm:$0xff]   ;;  %vm439_vm0 = vsmask.f32 7424 }
  0x91   : > { %1419 = vmatpush1.bf16.msra.mxu0 %v2483_v18  ;;  %v419_v46 = vld [vmem:[%s3232_s30] sm:$0xf]  ;;  %v3236_v47 = vld [vmem:[%s3232_s30 + $0x4] sm:$0xf]  ;;  %v3239_v49 = vld [vmem:[%s3232_s30 + $0x8] sm:$0xf] }
  0x92   : > { %1420 = vmatprep.subr.bf16.mxu0 %v2487_v19  ;;  %1472 = vmatpush1.bf16.msra.mxu1 %v2486_v20  ;;  %v3242_v50 = vld [vmem:[%s3232_s30 + $0xc] sm:$0xf]  ;;  %v3245_v51 = vcombine.low %v419_v46, %v3236_v47  ;;  %v2120_v54 = vcombine.low %v3236_v47, %v3239_v49  ;;  %v2528_v55 = vld [vmem:[#allocation7 + $0x1c0] ss:$8 sps:$4 sm:$0xff]   ;;  %v2532_v58 = vld [vmem:[#allocation7 + $0x1b4] ss:$8 sps:$4 sm:$0xff]  }
  0x93   : > { %1473 = vmatprep.subr.bf16.mxu1 %v2490_v21  ;;  %v3249_v53 = vcombine.low %v3239_v49, %v3242_v50  ;;  %v2531_v61 = vld [vmem:[#allocation7 + $0xb0] ss:$8 sps:$4 sm:$0xff]   ;;  %v2535_v1 = vld [vmem:[#allocation7 + $0xa4] ss:$8 sps:$4 sm:$0xff]   ;;  %vm470_vm1 = vsmask.f32 6400 }
  0x94   : > { %v3254_v56 = vshrl.u32 %v3245_v51, 16  ;;  %v3257_v57 = vshll.u32 %v3245_v51, 16  ;;  %v2534_v5 = vld [vmem:[#allocation7 + $0x1b0] ss:$8 sps:$4 sm:$0xff]   ;;  %v2538_v8 = vld [vmem:[#allocation7 + $0x1a4] ss:$8 sps:$4 sm:$0xff]  }
  0x95   : > { %1421 = vmatpush1.bf16.msra.mxu0 %v2489_v22  ;;  %v3260_v59 = vshll.u32 %v3249_v53, 16  ;;  %v3263_v60 = vshrl.u32 %v3249_v53, 16  ;;  %v2537_v10 = vld [vmem:[#allocation7 + $0xa0] ss:$8 sps:$4 sm:$0xff]   ;;  %v2541_v12 = vld [vmem:[#allocation7 + $0x94] ss:$8 sps:$4 sm:$0xff]  }
  0x96   : > { %1422 = vmatprep.subr.bf16.mxu0 %v2493_v23  ;;  %1474 = vmatpush1.bf16.msra.mxu1 %v2492_v24  ;;  %v445_v62 = vrot.slane %v3257_v57, 1  ;;  %v471_v63 = vrot.slane %v3254_v56, 1  ;;  %v472_v0 = vrot.slane %v3257_v57, 2  ;;  %v487_v14 = vrot.slane %v3245_v51, 2  ;;  %v2540_v16 = vld [vmem:[#allocation7 + $0x1a0] ss:$8 sps:$4 sm:$0xff]  }
  0x97   : > { %1475 = vmatprep.subr.bf16.mxu1 %v2496_v25  ;;  %v450_v2 = vrot.slane %v3260_v59, 1  ;;  %v474_v3 = vrot.slane %v3263_v60, 1  ;;  %v475_v4 = vrot.slane %v3260_v59, 2  ;;  %v488_v15 = vrot.slane %v3249_v53, 2  ;;  %v2544_v17 = vld [vmem:[#allocation7 + $0x194] ss:$8 sps:$4 sm:$0xff]  }
  0x98   : > { %v446_v6 = vor.u32 %v445_v62, %v3254_v56  ;;  %v473_v7 = vor.u32 %v472_v0, %v471_v63  ;;  %v2543_v19 = vld [vmem:[#allocation7 + $0x90] ss:$8 sps:$4 sm:$0xff]   ;;  %v2547_v20 = vld [vmem:[#allocation7 + $0x84] ss:$8 sps:$4 sm:$0xff]   ;;  %v509_v21 = vrot.slane %v3245_v51, 3  ;;  %v510_v22 = vrot.slane %v3249_v53, 3 }
  0x99   : > { %1423 = vmatpush1.bf16.msra.mxu0 %v2495_v26  ;;  %v3272_v9 = vor.u32 %v475_v4, %v474_v3  ;;  %v3284_v18 = vsel %vm486_vm2, %v487_v14, %v488_v15  ;;  %v2546_v23 = vld [vmem:[#allocation7 + $0x190] ss:$8 sps:$4 sm:$0xff]   ;;  %v2550_v24 = vld [vmem:[#allocation7 + $0x184] ss:$8 sps:$4 sm:$0xff]   ;;  %v2549_v26 = vld [vmem:[#allocation7 + $0x80] ss:$8 sps:$4 sm:$0xff]  }
  0x9a   : > { %1424 = vmatprep.subr.bf16.mxu0 %v2499_v27  ;;  %1476 = vmatpush1.bf16.msra.mxu1 %v2498_v28  ;;  %v451_v11 = vsel %vm439_vm0, %v446_v6, %v450_v2  ;;  %v3291_v25 = vsel %vm508_vm3, %v509_v21, %v510_v22  ;;  %v2557_v27 = vld [vmem:[#allocation7 + $0x274] ss:$8 sps:$4 sm:$0xff]   ;;  %v2554_v28 = vld [vmem:[#allocation7 + $0x180] ss:$8 sps:$4 sm:$0xff]   ;;  %v499_v62 = vrot.slane %v3260_v59, 3  ;;  %v518_v3 = vrot.slane %v3257_v57, 4 }
  0x9b   : > { %1477 = vmatprep.subr.bf16.mxu1 %v2502_v29  ;;  %1442 = vmatprep.mubr.bf16.mxu0 %v451_v11  ;;  %v477_v13 = vsel %vm470_vm1, %v473_v7, %v3272_v9  ;;  %v463_v29 = vrot.slane %v3245_v51, 1  ;;  %v2581_v46 = vld [vmem:[#allocation7 + $0x234] ss:$8 sps:$4 sm:$0xff]   ;;  %v2579_v63 = vld [vmem:[#allocation7 + $0x230] ss:$8 sps:$4 sm:$0xff]   ;;  %v520_v6 = vrot.slane %v3263_v60, 3  ;;  %v454_v11 = vor.u32 %v3263_v60, %v450_v2 }
  0x9c   : > { %1495 = vmatprep.mubr.bf16.mxu1 %v477_v13  ;;  %v521_v7 = vrot.slane %v3260_v59, 4  ;;  %v2593_v59 = vld [vmem:[#allocation7 + $0x214] ss:$8 sps:$4 sm:$0xff]   ;;  %vm494_vm5 = vsmask.f32 5376  ;;  %v2685_v47 = vld [vmem:[#allocation8 + $0x20] sm:$0xff]  }
  0x9d   : > { %1425 = vmatpush1.bf16.msra.mxu0 %v2501_v30  ;;  %v464_v30 = vrot.slane %v3249_v53, 1  ;;  %vm516_vm6 = vsmask.f32 4352  ;;  %v2686_v49 = vld [vmem:[#allocation8 + $0x58] sm:$0xff]   ;;  %s3525_s8 = sld [smem:[#allocation28_spill]]  ;;  %s2286_s18 = sshll.u32 %s3523_s16, 2 }
  0x9e   : > { %1426 = vmatprep.subr.bf16.mxu0 %v2505_v31  ;;  %1478 = vmatpush1.bf16.msra.mxu1 %v2504_v32  ;;  %v2560_v31 = vld [vmem:[#allocation7 + $0x374] ss:$8 sps:$4 sm:$0xff]   ;;  %v2555_v32 = vld [vmem:[#allocation7 + $0x270] ss:$8 sps:$4 sm:$0xff]   ;;  %s3526_s20 = sld [smem:[#allocation18_spill]]  ;;  %s3396_s12 = scalar_lea.sflag [#allocation4], %s363_s21 }
  0x9f   : > { %1479 = vmatprep.subr.bf16.mxu1 %v2508_v33  ;;  %v2563_v33 = vld [vmem:[#allocation7 + $0x264] ss:$8 sps:$4 sm:$0xff]   ;;  %s3527_s27 = sld [smem:[#allocation29_spill]]  ;;  %s2953_s24 = smov [#allocation10]  }
  0xa0   : > { %s3528_s23 = sld [smem:[#allocation30_spill]]  ;;  %s2814_s26 = sshll.u32 %s2953_s24, 4  ;;  %s2815_s26 = int_to_ptr.vmem [resolvable:$false] %s2814_s26 }
  0xa1   : > { %1427 = vmatpush2.bf16.msra.mxu0 %v2507_v34  ;;  %v465_v34 = vsel %vm462_vm4, %v463_v29, %v464_v30  ;;  %s3530_s11 = sld [smem:[#allocation31_spill]] }
  0xa2   : > { %1428 = vmatprep.subr.bf16.mxu0 %v2511_v35  ;;  %1480 = vmatpush2.bf16.msra.mxu1 %v2510_v36  ;;  %v2558_v35 = vld [vmem:[#allocation7 + $0x370] ss:$8 sps:$4 sm:$0xff]   ;;  %v2566_v36 = vld [vmem:[#allocation7 + $0x364] ss:$8 sps:$4 sm:$0xff]  }
  0xa3   : > { %1481 = vmatprep.subr.bf16.mxu1 %v2514_v37  ;;  %v2561_v37 = vld [vmem:[#allocation7 + $0x260] ss:$8 sps:$4 sm:$0xff]  }
  0xa4   : > { %s2287_s7 = sshll.u32 %s3526_s20, 3 }
  0xa5   : > { %1429 = vmatpush2.bf16.msra.mxu0 %v2513_v38  ;;  %v2569_v38 = vld [vmem:[#allocation7 + $0x254] ss:$8 sps:$4 sm:$0xff]   ;;  %s1962_s17 = sadd.s32 %s2287_s7, %s2286_s18 }
  0xa6   : > { %1430 = vmatprep.subr.bf16.mxu0 %v2517_v39  ;;  %1482 = vmatpush2.bf16.msra.mxu1 %v2516_v40  ;;  %v2564_v39 = vld [vmem:[#allocation7 + $0x360] ss:$8 sps:$4 sm:$0xff]   ;;  %v2572_v40 = vld [vmem:[#allocation7 + $0x354] ss:$8 sps:$4 sm:$0xff]   ;;  %s2288_s4 = sshll.u32 %s1962_s17, 7 }
  0xa7   : > { %1483 = vmatprep.subr.bf16.mxu1 %v2520_v41  ;;  %v2567_v41 = vld [vmem:[#allocation7 + $0x250] ss:$8 sps:$4 sm:$0xff]   ;;  %s3390_s16 = scalar_lea.hbm %s3530_s11, %s2288_s4 }
  0xa9   : > { %1431 = vmatpush2.bf16.msra.mxu0 %v2519_v42  ;;  %v2575_v42 = vld [vmem:[#allocation7 + $0x244] ss:$8 sps:$4 sm:$0xff]  }
  0xaa   : > { %1432 = vmatprep.subr.bf16.mxu0 %v2523_v43  ;;  %1484 = vmatpush2.bf16.msra.mxu1 %v2522_v44  ;;  %v2570_v43 = vld [vmem:[#allocation7 + $0x350] ss:$8 sps:$4 sm:$0xff]   ;;  %v2578_v44 = vld [vmem:[#allocation7 + $0x344] ss:$8 sps:$4 sm:$0xff]  }
  0xab   : > { %1485 = vmatprep.subr.bf16.mxu1 %v2526_v45  ;;  %v2573_v45 = vld [vmem:[#allocation7 + $0x240] ss:$8 sps:$4 sm:$0xff]  }
  0xad   : > { %1433 = vmatpush2.bf16.msra.mxu0 %v2525_v48  ;;  %v2576_v48 = vld [vmem:[#allocation7 + $0x340] ss:$8 sps:$4 sm:$0xff]  }
  0xae   : > { %1434 = vmatprep.subr.bf16.mxu0 %v2529_v52  ;;  %1486 = vmatpush2.bf16.msra.mxu1 %v2528_v55  ;;  %v496_v52 = vrot.slane %v3257_v57, 3  ;;  %v2584_v55 = vld [vmem:[#allocation7 + $0x334] ss:$8 sps:$4 sm:$0xff]  }
  0xaf   : > { %1487 = vmatprep.subr.bf16.mxu1 %v2532_v58  ;;  %v3302_v58 = vld [vmem:[%s3232_s30 + $0x10] sm:$0xf]  ;;  %s3529_s30 = sld [smem:[#allocation22_spill]] }
  0xb0   : > { %v3308_v0 = vcombine.low %v3302_v58, %v3302_v58  ;;  %v2121_v4 = vcombine.low %v3242_v50, %v3302_v58  ;;  %v2688_v50 = vld [vmem:[#allocation8 + $0x50] sm:$0xff]  }
  0xb1   : > { %1435 = vmatpush2.bf16.msra.mxu0 %v2531_v61  ;;  %v498_v61 = vrot.slane %v3263_v60, 2  ;;  %v2689_v58 = vld [vmem:[#allocation8 + $0x10] sm:$0xff]  }
  0xb2   : > { %1436 = vmatprep.subr.bf16.mxu0 %v2535_v1  ;;  %1488 = vmatpush2.bf16.msra.mxu1 %v2534_v5  ;;  %v517_v1 = vrot.slane %v3254_v56, 3  ;;  %v2587_v5 = vld [vmem:[#allocation7 + $0x224] ss:$8 sps:$4 sm:$0xff]   ;;  %v3323_v57 = vshrl.u32 %v3308_v0, 16 }
  0xb3   : > { %1489 = vmatprep.subr.bf16.mxu1 %v2538_v8  ;;  %v2582_v8 = vld [vmem:[#allocation7 + $0x330] ss:$8 sps:$4 sm:$0xff]   ;;  %v3329_v2 = vor.u32 %v499_v62, %v498_v61  ;;  %v2629_v61 = vld [vmem:[#allocation7 + $0x2b4] ss:$8 sps:$4 sm:$0xff]   ;;  %v2624_v62 = vld [vmem:[#allocation7 + $0x3c0] ss:$8 sps:$4 sm:$0xff]  }
  0xb4   : > { %v480_v14 = vrot.slane %v3323_v57, 1 }
  0xb5   : > { %1437 = vmatpush2.bf16.msra.mxu0 %v2537_v10  ;;  %v2585_v10 = vld [vmem:[#allocation7 + $0x220] ss:$8 sps:$4 sm:$0xff]   ;;  %p3532_p8 = scmp.ne.s32.totalorder %s3529_s30, 0 }
  0xb6   : > { %1438 = vmatprep.subr.bf16.mxu0 %v2541_v12  ;;  %1490 = vmatpush2.bf16.msra.mxu1 %v2540_v16  ;;  %v2590_v12 = vld [vmem:[#allocation7 + $0x324] ss:$8 sps:$4 sm:$0xff]  }
  0xb7   : > { %1491 = vmatprep.subr.bf16.mxu1 %v2544_v17  ;;  %v466_v17 = vrot.slane %v3308_v0, 1 }
  0xb9   : > { %1439 = vmatpush2.bf16.msra.mxu0 %v2543_v19  ;;  %v2588_v19 = vld [vmem:[#allocation7 + $0x320] ss:$8 sps:$4 sm:$0xff]   ;;  %v467_v29 = vsel %vm462_vm4, %v464_v30, %v466_v17  ;;  %v2605_v30 = vld [vmem:[#allocation7 + $0x2f4] ss:$8 sps:$4 sm:$0xff]   ;;  %v2643_v17 = vld [vmem:[#allocation7 + $0x390] ss:$8 sps:$4 sm:$0xff]  }
  0xba   : > { %1440 = vmatprep.subr.bf16.mxu0 %v2547_v20  ;;  %1492 = vmatpush2.bf16.msra.mxu1 %v2546_v23  ;;  %v519_v23 = vor.u32 %v518_v3, %v517_v1  ;;  %v2627_v1 = vld [vmem:[#allocation7 + $0x2b0] ss:$8 sps:$4 sm:$0xff]   ;;  %v2636_v3 = vld [vmem:[#allocation7 + $0x2a4] ss:$8 sps:$4 sm:$0xff]  }
  0xbb   : > { %1493 = vmatprep.subr.bf16.mxu1 %v2550_v24  ;;  %v3332_v24 = vor.u32 %v521_v7, %v520_v6  ;;  %v2639_v6 = vld [vmem:[#allocation7 + $0x3a4] ss:$8 sps:$4 sm:$0xff]   ;;  %v2634_v7 = vld [vmem:[#allocation7 + $0x2a0] ss:$8 sps:$4 sm:$0xff]  }
  0xbd   : > { %1441 = vmatpush2.bf16.msra.mxu0 %v2549_v26  ;;  %v2596_v26 = vld [vmem:[#allocation7 + $0x314] ss:$8 sps:$4 sm:$0xff]  }
  0xbe   : > { %1516 = vmatprep.subr.bf16.mxu0 %v2557_v27  ;;  %1494 = vmatpush2.bf16.msra.mxu1 %v2554_v28  ;;  %v2591_v27 = vld [vmem:[#allocation7 + $0x210] ss:$8 sps:$4 sm:$0xff]  }
  0xbf   : > { %1569 = vmatprep.subr.bf16.mxu1 %v2560_v31  ;;  %v2599_v31 = vld [vmem:[#allocation7 + $0x204] ss:$8 sps:$4 sm:$0xff]  }
  0xc0   : > { %1443 = vmatmul.mubr.bf16.vlgmr.msra.gmra.mxu0 %v3245_v51  ;;  %v495_v51 = vrot.slane %v3254_v56, 2  ;;  %v3320_v56 = vshll.u32 %v3308_v0, 16 }
  0xc1   : > { %1517 = vmatpush1.bf16.msra.mxu0 %v2555_v32  ;;  %1496 = vmatmul.mubr.bf16.vlgmr.msra.gmra.mxu1 %v465_v34  ;;  %v523_v34 = vsel %vm516_vm6, %v519_v23, %v3332_v24 }
  0xc2   : > { %1518 = vmatprep.subr.bf16.mxu0 %v2563_v33  ;;  %1570 = vmatpush1.bf16.msra.mxu1 %v2558_v35  ;;  %v458_v13 = vrot.slane %v3320_v56, 1  ;;  %v481_v16 = vrot.slane %v3320_v56, 2  ;;  %v497_v60 = vor.u32 %v496_v52, %v495_v51  ;;  %v2594_v33 = vld [vmem:[#allocation7 + $0x310] ss:$8 sps:$4 sm:$0xff]   ;;  %v2602_v35 = vld [vmem:[#allocation7 + $0x304] ss:$8 sps:$4 sm:$0xff]  }
  0xc3   : > { %1571 = vmatprep.subr.bf16.mxu1 %v2566_v36  ;;  %v2600_v36 = vld [vmem:[#allocation7 + $0x300] ss:$8 sps:$4 sm:$0xff]   ;;  %v2618_v51 = vld [vmem:[#allocation7 + $0x3d0] ss:$8 sps:$4 sm:$0xff]   ;;  %v2626_v52 = vld [vmem:[#allocation7 + $0x3c4] ss:$8 sps:$4 sm:$0xff]  }
  0xc4   : > { %v459_v20 = vsel %vm439_vm0, %v454_v11, %v458_v13  ;;  %v482_v21 = vor.u32 %v481_v16, %v480_v14  ;;  %v501_v32 = vsel %vm494_vm5, %v497_v60, %v3329_v2  ;;  %v2645_v11 = vld [vmem:[#allocation7 + $0x394] ss:$8 sps:$4 sm:$0xff]   ;;  %v2648_v13 = vld [vmem:[#allocation7 + $0x284] ss:$8 sps:$4 sm:$0xff]   ;;  %v502_v14 = vrot.slane %v3323_v57, 2 }
  0xc5   : > { %1519 = vmatpush1.bf16.msra.mxu0 %v2561_v37  ;;  %1452 = vmatprep.mubr.bf16.mxu0 %v459_v20  ;;  %v2608_v37 = vld [vmem:[#allocation7 + $0x3f4] ss:$8 sps:$4 sm:$0xff]   ;;  %v503_v16 = vrot.slane %v3320_v56, 3  ;;  %v524_v60 = vrot.slane %v3323_v57, 3  ;;  %v2646_v20 = vld [vmem:[#allocation7 + $0x280] ss:$8 sps:$4 sm:$0xff]  }
  0xc6   : > { %1520 = vmatprep.subr.bf16.mxu0 %v2569_v38  ;;  %1572 = vmatpush1.bf16.msra.mxu1 %v2564_v39  ;;  %v483_v28 = vsel %vm470_vm1, %v3272_v9, %v482_v21  ;;  %v2597_v9 = vld [vmem:[#allocation7 + $0x200] ss:$8 sps:$4 sm:$0xff]   ;;  %v2603_v38 = vld [vmem:[#allocation7 + $0x2f0] ss:$8 sps:$4 sm:$0xff]   ;;  %v2611_v39 = vld [vmem:[#allocation7 + $0x2e4] ss:$8 sps:$4 sm:$0xff]  }
  0xc7   : > { %1573 = vmatprep.subr.bf16.mxu1 %v2572_v40  ;;  %1505 = vmatprep.mubr.bf16.mxu1 %v483_v28  ;;  %v2606_v40 = vld [vmem:[#allocation7 + $0x3f0] ss:$8 sps:$4 sm:$0xff]   ;;  %v2654_v21 = vld [vmem:[#allocation7 + $0x474] ss:$8 sps:$4 sm:$0xff]   ;;  %v504_v23 = vor.u32 %v503_v16, %v502_v14  ;;  %v2655_v57 = vld [vmem:[#allocation7 + $0x460] ss:$8 sps:$4 sm:$0xff]  }
  0xc8   : > { %1453 = vmatmul.mubr.bf16.gmra.mxu0 %v3249_v53  ;;  %v2652_v28 = vld [vmem:[#allocation7 + $0x470] ss:$8 sps:$4 sm:$0xff]  }
  0xc9   : > { %1521 = vmatpush1.bf16.msra.mxu0 %v2567_v41  ;;  %1506 = vmatmul.mubr.bf16.gmra.mxu1 %v467_v29  ;;  %v2614_v41 = vld [vmem:[#allocation7 + $0x3e4] ss:$8 sps:$4 sm:$0xff]   ;;  %v2670_v53 = vld [vmem:[#allocation7 + $0x410] ss:$8 sps:$4 sm:$0xff]  }
  0xca   : > { %1522 = vmatprep.subr.bf16.mxu0 %v2575_v42  ;;  %1574 = vmatpush1.bf16.msra.mxu1 %v2570_v43  ;;  %v2609_v42 = vld [vmem:[#allocation7 + $0x2e0] ss:$8 sps:$4 sm:$0xff]   ;;  %v2657_v29 = vld [vmem:[#allocation7 + $0x464] ss:$8 sps:$4 sm:$0xff]  }
  0xcb   : > { %1575 = vmatprep.subr.bf16.mxu1 %v2578_v44  ;;  %1548 = vmatprep.mubr.bf16.mxu0 %v501_v32  ;;  %v2612_v43 = vld [vmem:[#allocation7 + $0x3e0] ss:$8 sps:$4 sm:$0xff]   ;;  %v2617_v44 = vld [vmem:[#allocation7 + $0x2d4] ss:$8 sps:$4 sm:$0xff]   ;;  %v490_v32 = vrot.slane %v3308_v0, 2 }
  0xcc   : > { %1601 = vmatprep.mubr.bf16.mxu1 %v523_v34  ;;  %v512_v34 = vrot.slane %v3308_v0, 3  ;;  %v2666_v0 = vld [vmem:[#allocation7 + $0x434] ss:$8 sps:$4 sm:$0xff]  }
  0xcd   : > { %1523 = vmatpush1.bf16.msra.mxu0 %v2573_v45  ;;  %v2620_v45 = vld [vmem:[#allocation7 + $0x3d4] ss:$8 sps:$4 sm:$0xff]  }
  0xce   : > { %1524 = vmatprep.subr.bf16.mxu0 %v2581_v46  ;;  %1576 = vmatpush1.bf16.msra.mxu1 %v2576_v48  ;;  %v2615_v46 = vld [vmem:[#allocation7 + $0x2d0] ss:$8 sps:$4 sm:$0xff]   ;;  %v2623_v48 = vld [vmem:[#allocation7 + $0x2c4] ss:$8 sps:$4 sm:$0xff]  }
  0xcf   : > { %1577 = vmatprep.subr.bf16.mxu1 %v2584_v55  ;;  %v2621_v55 = vld [vmem:[#allocation7 + $0x2c0] ss:$8 sps:$4 sm:$0xff]  }
  0xd1   : > { %1525 = vmatpush1.bf16.msra.mxu0 %v2579_v63  ;;  %v2633_v63 = vld [vmem:[#allocation7 + $0x3b4] ss:$8 sps:$4 sm:$0xff]  }
  0xd2   : > { %1526 = vmatprep.subr.bf16.mxu0 %v2587_v5  ;;  %1578 = vmatpush1.bf16.msra.mxu1 %v2582_v8  ;;  %v2631_v5 = vld [vmem:[#allocation7 + $0x3b0] ss:$8 sps:$4 sm:$0xff]   ;;  %v2642_v8 = vld [vmem:[#allocation7 + $0x294] ss:$8 sps:$4 sm:$0xff]  }
  0xd3   : > { %1579 = vmatprep.subr.bf16.mxu1 %v2590_v12  ;;  %v2640_v12 = vld [vmem:[#allocation7 + $0x290] ss:$8 sps:$4 sm:$0xff]  }
  0xd5   : > { %1527 = vmatpush1.bf16.msra.mxu0 %v2585_v10  ;;  %v2637_v10 = vld [vmem:[#allocation7 + $0x3a0] ss:$8 sps:$4 sm:$0xff]  }
  0xd6   : > { %1528 = vmatprep.subr.bf16.mxu0 %v2593_v59  ;;  %1580 = vmatpush1.bf16.msra.mxu1 %v2588_v19  ;;  %v2651_v59 = vld [vmem:[#allocation7 + $0x384] ss:$8 sps:$4 sm:$0xff]   ;;  %v525_v19 = vrot.slane %v3320_v56, 4 }
  0xd7   : > { %1581 = vmatprep.subr.bf16.mxu1 %v2596_v26  ;;  %v2649_v26 = vld [vmem:[#allocation7 + $0x380] ss:$8 sps:$4 sm:$0xff]  }
  0xd9   : > { %1529 = vmatpush1.bf16.msra.mxu0 %v2591_v27  ;;  %v526_v27 = vor.u32 %v525_v19, %v524_v60 }
  0xda   : > { %1530 = vmatprep.subr.bf16.mxu0 %v2599_v31  ;;  %1582 = vmatpush1.bf16.msra.mxu1 %v2594_v33  ;;  %v505_v31 = vsel %vm494_vm5, %v3329_v2, %v504_v23  ;;  %v2660_v33 = vld [vmem:[#allocation7 + $0x454] ss:$8 sps:$4 sm:$0xff]   ;;  %v2658_v2 = vld [vmem:[#allocation7 + $0x450] ss:$8 sps:$4 sm:$0xff]  }
  0xdb   : > { %1583 = vmatprep.subr.bf16.mxu1 %v2602_v35  ;;  %v527_v56 = vsel %vm516_vm6, %v3332_v24, %v526_v27  ;;  %v2663_v24 = vld [vmem:[#allocation7 + $0x444] ss:$8 sps:$4 sm:$0xff]   ;;  %v513_v35 = vsel %vm508_vm3, %v510_v22, %v512_v34 }
  0xdc   : > { %v2675_v22 = vld [vmem:[#allocation7 + $0x404] ss:$8 sps:$4 sm:$0xff]  }
  0xdd   : > { %1531 = vmatpush1.bf16.msra.mxu0 %v2597_v9  ;;  %v2952_v9 = vmov 0  }
  0xde   : > { %1532 = vmatprep.subr.bf16.mxu0 %v2605_v30  ;;  %1584 = vmatpush1.bf16.msra.mxu1 %v2600_v36  ;;  %v2664_v30 = vld [vmem:[#allocation7 + $0x430] ss:$8 sps:$4 sm:$0xff]   ;;  %v2669_v36 = vld [vmem:[#allocation7 + $0x424] ss:$8 sps:$4 sm:$0xff]  }
  0xdf   : > { %1585 = vmatprep.subr.bf16.mxu1 %v2608_v37  ;;  %v2672_v37 = vld [vmem:[#allocation7 + $0x414] ss:$8 sps:$4 sm:$0xff]  }
  0xe1   : > { %1533 = vmatpush2.bf16.msra.mxu0 %v2603_v38  ;;  %v2673_v38 = vld [vmem:[#allocation7 + $0x400] ss:$8 sps:$4 sm:$0xff]  }
  0xe2   : > { %1534 = vmatprep.subr.bf16.mxu0 %v2611_v39  ;;  %1586 = vmatpush2.bf16.msra.mxu1 %v2606_v40  ;;  %v2678_v39 = vld [vmem:[#allocation8 + $0x78] sm:$0xff]  }
  0xe3   : > { %1587 = vmatprep.subr.bf16.mxu1 %v2614_v41  ;;  %v2679_v40 = vld [vmem:[#allocation8 + $0x38] sm:$0xff]   ;;  %v2680_v41 = vld [vmem:[#allocation8 + $0x70] sm:$0xff]  }
  0xe5   : > { %1535 = vmatpush2.bf16.msra.mxu0 %v2609_v42  ;;  %v2681_v42 = vld [vmem:[#allocation8 + $0x30] sm:$0xff]  }
  0xe6   : > { %1536 = vmatprep.subr.bf16.mxu0 %v2617_v44  ;;  %1588 = vmatpush2.bf16.msra.mxu1 %v2612_v43  ;;  %v2682_v43 = vld [vmem:[#allocation8 + $0x68] sm:$0xff]  }
  0xe7   : > { %1589 = vmatprep.subr.bf16.mxu1 %v2620_v45  ;;  %v2683_v44 = vld [vmem:[#allocation8 + $0x28] sm:$0xff]   ;;  %v2684_v45 = vld [vmem:[#allocation8 + $0x60] sm:$0xff]  }
  0xe9   : > { %1537 = vmatpush2.bf16.msra.mxu0 %v2615_v46  ;;  %v2691_v46 = vld [vmem:[#allocation8 + $0x8] sm:$0xff]  }
  0xea   : > { %1538 = vmatprep.subr.bf16.mxu0 %v2623_v48  ;;  %1590 = vmatpush2.bf16.msra.mxu1 %v2618_v51  ;;  %v2692_v48 = vld [vmem:[#allocation8 + $0x40] sm:$0xff]  }
  0xeb   : > { %1591 = vmatprep.subr.bf16.mxu1 %v2626_v52  ;;  %v2693_v51 = vld [vmem:[#allocation8] sm:$0xff]  }
  0xed   : > { %1539 = vmatpush2.bf16.msra.mxu0 %v2621_v55 }
  0xee   : > { %1540 = vmatprep.subr.bf16.mxu0 %v2629_v61  ;;  %1592 = vmatpush2.bf16.msra.mxu1 %v2624_v62 }
  0xef   : > { %1593 = vmatprep.subr.bf16.mxu1 %v2633_v63 }
  0xf1   : > { %1541 = vmatpush2.bf16.msra.mxu0 %v2627_v1 }
  0xf2   : > { %1542 = vmatprep.subr.bf16.mxu0 %v2636_v3  ;;  %1594 = vmatpush2.bf16.msra.mxu1 %v2631_v5 }
  0xf3   : > { %1595 = vmatprep.subr.bf16.mxu1 %v2639_v6 }
  0xf5   : > { %1543 = vmatpush2.bf16.msra.mxu0 %v2634_v7 }
  0xf6   : > { %1544 = vmatprep.subr.bf16.mxu0 %v2642_v8  ;;  %1596 = vmatpush2.bf16.msra.mxu1 %v2637_v10 }
  0xf7   : > { %1597 = vmatprep.subr.bf16.mxu1 %v2645_v11 }
  0xf9   : > { %1545 = vmatpush2.bf16.msra.mxu0 %v2640_v12 }
  0xfa   : > { %1546 = vmatprep.subr.bf16.mxu0 %v2648_v13  ;;  %1598 = vmatpush2.bf16.msra.mxu1 %v2643_v17  ;;  %v680_v17 = vlaneseq }
  0xfb   : > { %1599 = vmatprep.subr.bf16.mxu1 %v2651_v59 }
  0xfc   : > { %v681_v19 = vshrl.u32 %v680_v17, 7 }
  0xfd   : > { %1547 = vmatpush2.bf16.msra.mxu0 %v2646_v20 }
  0xfe   : > { %1622 = vmatprep.subr.bf16.mxu0 %v2654_v21  ;;  %1600 = vmatpush2.bf16.msra.mxu1 %v2649_v26  ;;  %v686_v23 = vsub.s32 1, %v681_v19  ;;  %v678_v26 = vld [vmem:[%s3524_s5] sm:$0x3]  ;;  %v682_v27 = vsub.s32 0, %v681_v19 }
  0xff   : > { %2291 = vmatprep.subr.bf16.mxu1 %v2678_v39 }
 0x100   : > { %1549 = vmatmul.mubr.bf16.vlgmr.msra.gmra.mxu0 %v3284_v18  ;;  %v491_v18 = vsel %vm486_vm2, %v488_v15, %v490_v32  ;;  %v2667_v15 = vld [vmem:[#allocation7 + $0x420] ss:$8 sps:$4 sm:$0xff]  }
 0x101   : > { %1623 = vmatpush1.bf16.msra.mxu0 %v2652_v28  ;;  %1558 = vmatprep.mubr.bf16.mxu0 %v505_v31  ;;  %v687_v31 = vrot.slane %v678_v26, %v686_v23 }
 0x102   : > { %1602 = vmatmul.mubr.bf16.vlgmr.msra.gmra.mxu1 %v3291_v25  ;;  %1624 = vmatprep.subr.bf16.mxu0 %v2657_v29  ;;  %v2661_v25 = vld [vmem:[#allocation7 + $0x440] ss:$8 sps:$4 sm:$0xff]  }
 0x103   : > { %1611 = vmatprep.mubr.bf16.mxu1 %v527_v56  ;;  %2292 = vmatpush3.bf16.msra.mxu1 %v2679_v40  ;;  %v683_v56 = vrot.slane %v678_v26, %v682_v27 }
 0x104   : > { %2293 = vmatprep.subr.bf16.mxu1 %v2680_v41 }
 0x105   : > { %1625 = vmatpush1.bf16.msra.mxu0 %v2655_v57 }
 0x106   : > { %1626 = vmatprep.subr.bf16.mxu0 %v2660_v33 }
 0x107   : > { %2294 = vmatpush3.bf16.msra.mxu1 %v2681_v42 }
 0x108   : > { %1559 = vmatmul.mubr.bf16.gmra.mxu0 %v491_v18  ;;  %2295 = vmatprep.subr.bf16.mxu1 %v2682_v43 }
 0x109   : > { %1627 = vmatpush1.bf16.msra.mxu0 %v2658_v2  ;;  %1654 = vmatprep.mubr.bf16.mxu0 %v2952_v9 }
 0x10a   : > { %1612 = vmatmul.mubr.bf16.gmra.mxu1 %v513_v35  ;;  %1628 = vmatprep.subr.bf16.mxu0 %v2663_v24 }
 0x10b   : > { %2296 = vmatpush3.bf16.msra.mxu1 %v2683_v44 }
 0x10c   : > { %2297 = vmatprep.subr.bf16.mxu1 %v2684_v45 }
 0x10d   : > { %1629 = vmatpush1.bf16.msra.mxu0 %v2661_v25 }
 0x10e   : > { %1630 = vmatprep.subr.bf16.mxu0 %v2666_v0 }
 0x10f   : > { %2298 = vmatpush3.bf16.msra.mxu1 %v2685_v47 }
 0x110   : > { %2299 = vmatprep.subr.bf16.mxu1 %v2686_v49 }
 0x111   : > { %1631 = vmatpush1.bf16.msra.mxu0 %v2664_v30 }
 0x112   : > { %1632 = vmatprep.subr.bf16.mxu0 %v2669_v36 }
 0x115   : > { %1633 = vmatpush1.bf16.msra.mxu0 %v2667_v15 }
 0x116   : > { %1634 = vmatprep.subr.bf16.mxu0 %v2672_v37 }
 0x119   : > { %1635 = vmatpush1.bf16.msra.mxu0 %v2670_v53 }
 0x11a   : > { %1636 = vmatprep.subr.bf16.mxu0 %v2675_v22 }
 0x11d   : > { %1637 = vmatpush1.bf16.msra.mxu0 %v2673_v38 }
 0x120   : > { %1655 = vmatmul.mubr.bf16.vlgmr.msra.gmra.mxu0 %v2120_v54  ;;  %v2687_v54 = vld [vmem:[#allocation8 + $0x18] sm:$0xff]  }
 0x121   : > { %1664 = vmatprep.mubr.bf16.mxu0 %v2952_v9  ;;  %2300 = vmatpush3.bf16.msra.mxu1 %v2687_v54 }
 0x122   : > { %2301 = vmatprep.subr.bf16.mxu1 %v2688_v50 }
 0x125   : > { %2302 = vmatpush3.bf16.msra.mxu1 %v2689_v58 }
 0x128   : > { %1665 = vmatmul.mubr.bf16.gmra.mxu0 %v2121_v4  ;;  %v2690_v4 = vld [vmem:[#allocation8 + $0x48] sm:$0xff]  }
 0x129   : > { %2303 = vmatprep.subr.bf16.mxu1 %v2690_v4 }
 0x12a   : > { %2304 = vmatpush3.bf16.msra.mxu1 %v2691_v46 }
 0x12b   : > { %2305 = vmatprep.subr.bf16.mxu1 %v2692_v48 }
 0x12e   : > { %2306 = vmatpush3.bf16.msra.mxu1 %v2693_v51 }
 0x180   : > { %v1444_v52 = vpop.f32.mrf.mxu0 }
 0x181   : > { %v1497_v62 = vpop.f32.mrf.mxu1  ;;  %v1445_v18 = vadd.f32 %v1444_v52, %v683_v56 }
 0x182   : > { %v1446_v55 = vpop.f32.mrf.mxu0 }
 0x183   : > { %v1499_v3 = vpop.f32.mrf.mxu1  ;;  %v1447_v33 = vadd.f32 %v1446_v55, %v687_v31  ;;  %v1498_v0 = vadd.f32 %v1497_v62, %v1445_v18 }
 0x184   : > { %v1448_v61 = vpop.f32.mrf.mxu0 }
 0x185   : > { %v1501_v6 = vpop.f32.mrf.mxu1  ;;  %v1449_v34 = vadd.f32 %v1448_v61, %v683_v56  ;;  %v1500_v25 = vadd.f32 %v1499_v3, %v1447_v33 }
 0x186   : > { %v1450_v63 = vpop.f32.mrf.mxu0 }
 0x187   : > { %v1503_v8 = vpop.f32.mrf.mxu1  ;;  %v1451_v35 = vadd.f32 %v1450_v63, %v687_v31  ;;  %v1502_v9 = vadd.f32 %v1501_v6, %v1449_v34 }
 0x188   : > { %v1454_v1 = vpop.f32.mrf.mxu0 }
 0x189   : > { %v1507_v10 = vpop.f32.mrf.mxu1  ;;  %v1504_v15 = vadd.f32 %v1503_v8, %v1451_v35  ;;  %v1455_v42 = vadd.f32 %v1454_v1, %v683_v56 }
 0x18a   : > { %v1456_v5 = vpop.f32.mrf.mxu0 }
 0x18b   : > { %v1509_v13 = vpop.f32.mrf.mxu1  ;;  %v1457_v22 = vadd.f32 %v1456_v5, %v687_v31  ;;  %v1508_v52 = vadd.f32 %v1507_v10, %v1455_v42 }
 0x18c   : > { %v1458_v7 = vpop.f32.mrf.mxu0 }
 0x18d   : > { %v1511_v16 = vpop.f32.mrf.mxu1  ;;  %v1459_v40 = vadd.f32 %v1458_v7, %v683_v56  ;;  %v1510_v54 = vadd.f32 %v1509_v13, %v1457_v22  ;;  %v1872_v22 = vld [vmem:[%s3215_s2 + $0x8] sm:$0xff] }
 0x18e   : > { %v1460_v11 = vpop.f32.mrf.mxu0 }
 0x18f   : > { %v1513_v60 = vpop.f32.mrf.mxu1  ;;  %v1461_v45 = vadd.f32 %v1460_v11, %v687_v31  ;;  %v1512_v4 = vadd.f32 %v1511_v16, %v1459_v40 }
 0x191   : > { %v1514_v63 = vadd.f32 %v1513_v60, %v1461_v45 }
 0x1c0   : > { %v1550_v12 = vpop.f32.mrf.mxu0 }
 0x1c1   : > { %v1551_v38 = vadd.f32 %v1550_v12, %v1498_v0  ;;  %v1871_v0 = vld [vmem:[%s3215_s2] sm:$0xff] }
 0x1c2   : > { %v1552_v14 = vpop.f32.mrf.mxu0  ;;  %v1603_v20 = vpop.f32.mrf.mxu1 }
 0x1c3   : > { %v1553_v37 = vadd.f32 %v1552_v14, %v1500_v25  ;;  %v1604_v50 = vadd.f32 %v1603_v20, %v1551_v38 }
 0x1c4   : > { %v1554_v59 = vpop.f32.mrf.mxu0  ;;  %v1605_v28 = vpop.f32.mrf.mxu1 }
 0x1c5   : > { %v1555_v53 = vadd.f32 %v1554_v59, %v1502_v9  ;;  %v1606_v47 = vadd.f32 %v1605_v28, %v1553_v37 }
 0x1c6   : > { %v1556_v21 = vpop.f32.mrf.mxu0  ;;  %v1607_v57 = vpop.f32.mrf.mxu1 }
 0x1c7   : > { %v1557_v41 = vadd.f32 %v1556_v21, %v1504_v15  ;;  %v1608_v49 = vadd.f32 %v1607_v57, %v1555_v53 }
 0x1c8   : > { %v1560_v29 = vpop.f32.mrf.mxu0  ;;  %v1609_v2 = vpop.f32.mrf.mxu1 }
 0x1c9   : > { %v1610_v46 = vadd.f32 %v1609_v2, %v1557_v41  ;;  %v1561_v6 = vadd.f32 %v1560_v29, %v1508_v52 }
 0x1ca   : > { %v1562_v32 = vpop.f32.mrf.mxu0  ;;  %v1613_v30 = vpop.f32.mrf.mxu1 }
 0x1cb   : > { %v1563_v3 = vadd.f32 %v1562_v32, %v1510_v54  ;;  %v1614_v10 = vadd.f32 %v1613_v30, %v1561_v6  ;;  %v1874_v54 = vld [vmem:[%s3215_s2 + $0x18] sm:$0xff] }
 0x1cc   : > { %v1564_v24 = vpop.f32.mrf.mxu0  ;;  %v1615_v43 = vpop.f32.mrf.mxu1 }
 0x1cd   : > { %v1565_v5 = vadd.f32 %v1564_v24, %v1512_v4  ;;  %v1616_v59 = vadd.f32 %v1615_v43, %v1563_v3  ;;  %v2266_v24 = vld [vmem:[%s3525_s8] ss:$0 sm:$0xff]  ;;  %v1873_v43 = vld [vmem:[%s3215_s2 + $0x10] sm:$0xff]  ;;  %s410_s2 = scalar_lea.vmem [#allocation10], %s3212_s22  ;;  %s3531_s8 = smov %s3530_s11 }
 0x1ce   : > { %v1566_v36 = vpop.f32.mrf.mxu0  ;;  %v1617_v55 = vpop.f32.mrf.mxu1  ;;  %s1965_s0 = sshll.u32 %s410_s2, 4  ;;  %s3392_s0 = int_to_ptr.vmem [resolvable:$true] %s1965_s0 }
 0x1cf   : > { %v1567_v11 = vadd.f32 %v1566_v36, %v1514_v63  ;;  %v1618_v19 = vadd.f32 %v1617_v55, %v1565_v5  ;;  %s2810_s20 = scalar_lea.vmem %s3392_s0, 512  ;;  %p2817_p1 = scmp.lt.s32.totalorder %s3392_s0, %s2815_s26 }
 0x1d0   : > { %v1619_v14 = vpop.f32.mrf.mxu1  ;;  %p2811_p5 = scmp.ne.s32.totalorder %s3392_s0, %s2810_s20 }
 0x1d1   : > { %v1620_v26 = vadd.f32 %v1619_v14, %v1567_v11 }
 0x1d2   : > { %p2812_p13 = pnand %p2811_p5, %p3532_p8 }
 0x1d4   : > { %p2813_p2 = pneg %p2812_p13 }
 0x1e0   : > { %v1656_v39 = vpop.f32.mrf.mxu0 }
 0x1e1   : > { %v1657_v61 = vadd.f32 %v1656_v39, %v1604_v50 }
 0x1e2   : > { %v1658_v44 = vpop.f32.mrf.mxu0 }
 0x1e3   : > { %v1659_v48 = vadd.f32 %v1658_v44, %v1606_v47  ;;  %v1675_v17 = vmax.f32 %v1657_v61, 0.0 }
 0x1e4   : > { %v1660_v58 = vpop.f32.mrf.mxu0 }
 0x1e5   : > { %v1661_v51 = vadd.f32 %v1660_v58, %v1608_v49  ;;  %v1676_v12 = vmax.f32 %v1659_v48, 0.0 }
 0x1e6   : > { %v1662_v62 = vpop.f32.mrf.mxu0 }
 0x1e7   : > { %v1663_v1 = vadd.f32 %v1662_v62, %v1610_v46  ;;  %v1677_v7 = vmax.f32 %v1661_v51, 0.0 }
 0x1e8   : > { %v1666_v8 = vpop.f32.mrf.mxu0 }
 0x1e9   : > { %v1678_v13 = vmax.f32 %v1663_v1, 0.0  ;;  %v1683_v21 = vpack.c.bf16 %v1677_v7, %v1675_v17  ;;  %v1667_v28 = vadd.f32 %v1666_v8, %v1614_v10 }
 0x1ea   : > { %v1668_v16 = vpop.f32.mrf.mxu0 }
 0x1eb   : > { %v1684_v20 = vpack.c.bf16 %v1678_v13, %v1676_v12  ;;  %v1669_v60 = vadd.f32 %v1668_v16, %v1616_v59  ;;  %v1679_v33 = vmax.f32 %v1667_v28, 0.0 }
 0x1ec   : > { %v1670_v23 = vpop.f32.mrf.mxu0 }
 0x1ed   : > { %v1671_v27 = vadd.f32 %v1670_v23, %v1618_v19  ;;  %1854 = vmatprep.mubr.bf16.mxu1 %v1684_v20  ;;  %v1680_v57 = vmax.f32 %v1669_v60, 0.0 }
 0x1ee   : > { %v1672_v29 = vpop.f32.mrf.mxu0  ;;  %1855 = vmatmul.mubr.bf16.vlgmr.msra.gmra.mxu1 %v1683_v21 }
 0x1ef   : > { %v1673_v31 = vadd.f32 %v1672_v29, %v1620_v26  ;;  %v1681_v56 = vmax.f32 %v1671_v27, 0.0  ;;  %v2283_v27 = vld [vmem:[%s3527_s27] ss:$0 sm:$0xff]  ;;  %s2816_s27 = scalar_lea.vmem %s2815_s26, 1024 }
 0x1f0   : > { %v2284_v29 = vld [vmem:[%s3528_s23] ss:$0 sm:$0xff]  ;;  %p2818_p0 = scmp.lt.s32.totalorder %s2816_s27, %s2810_s20 }
 0x1f1   : > { %v1682_v32 = vmax.f32 %v1673_v31, 0.0  ;;  %v1685_v18 = vpack.c.bf16 %v1681_v56, %v1679_v33 }
 0x1f2   : > { %p2819_p4 = por %p2818_p0, %p2817_p1 }
 0x1f3   : > { %v1686_v34 = vpack.c.bf16 %v1682_v32, %v1680_v57 }
 0x1f4   : > { %p2820_p11 = pnand %p2819_p4, %p2813_p2 }
 0x1f5   : > { %1862 = vmatprep.mubr.bf16.mxu1 %v1686_v34 }
 0x1f6   : > { %1863 = vmatmul.mubr.bf16.gmra.mxu1 %v1685_v18 }
 0x2ae   : > { %v2307_v2 = vpop.f32.mrf.mxu1 }
 0x2b0   : > { %v2308_v35 = vpop.f32.mrf.mxu1 }
 0x2b1   : > { %v2309_v25 = vadd.f32 %v2308_v35, %v2307_v2 }
 0x2b2   : > { %v2310_v9 = vpop.f32.mrf.mxu1 }
 0x2b3   : > { %v1857_v30 = vadd.f32 %v2309_v25, %v2266_v24 }
 0x2b4   : > { %v2311_v36 = vpop.f32.mrf.mxu1 }
 0x2b5   : > { %v2312_v15 = vadd.f32 %v2311_v36, %v2310_v9  ;;  %v1875_v37 = vadd.f32 %v1871_v0, %v1857_v30 }
 0x2b6   : > { %v2313_v53 = vpop.f32.mrf.mxu1 }
 0x2b7   : > { %v1860_v38 = vadd.f32 %v2312_v15, %v2266_v24  ;;  %1879 = vadd.xlane.f32.xlu0 %v1875_v37 }
 0x2b8   : > { %v2314_v39 = vpop.f32.mrf.mxu1 }
 0x2b9   : > { %v2315_v40 = vadd.f32 %v2314_v39, %v2313_v53  ;;  %v1876_v41 = vadd.f32 %v1872_v22, %v1860_v38 }
 0x2ba   : > { %v2316_v42 = vpop.f32.mrf.mxu1 }
 0x2bb   : > { %v1865_v44 = vadd.f32 %v2315_v40, %v2266_v24  ;;  %1881 = vadd.xlane.f32.xlu0 %v1876_v41 }
 0x2bc   : > { %v2317_v45 = vpop.f32.mrf.mxu1 }
 0x2bd   : > { %v2318_v47 = vadd.f32 %v2317_v45, %v2316_v42  ;;  %v1877_v49 = vadd.f32 %v1873_v43, %v1865_v44 }
 0x2bf   : > { %v1868_v50 = vadd.f32 %v2318_v47, %v2266_v24  ;;  %1883 = vadd.xlane.f32.xlu1 %v1877_v49 }
 0x2c1   : > { %v1878_v58 = vadd.f32 %v1874_v54, %v1868_v50 }
 0x2c3   : > { %1885 = vadd.xlane.f32.xlu1 %v1878_v58 }
 0x340   : > { %v1880_v4 = vpop.xlane.xlu0 %1879 }
 0x341   : > { %v1887_v46 = vmul.f32 0.0078125, %v1880_v4 }
 0x343   : > { %v1891_v48 = vsub.f32 %v1875_v37, %v1887_v46 }
 0x344   : > { %v1882_v51 = vpop.xlane.xlu0 %1881 }
 0x345   : > { %v1888_v52 = vmul.f32 0.0078125, %v1882_v51  ;;  %v1895_v55 = vmul.f32 %v1891_v48, %v1891_v48 }
 0x347   : > { %v1892_v61 = vsub.f32 %v1876_v41, %v1888_v52  ;;  %1899 = vadd.xlane.f32.xlu0 %v1895_v55 }
 0x348   : > { %v1884_v62 = vpop.xlane.xlu1 %1883 }
 0x349   : > { %v1889_v63 = vmul.f32 0.0078125, %v1884_v62  ;;  %v1896_v3 = vmul.f32 %v1892_v61, %v1892_v61 }
 0x34b   : > { %v1893_v5 = vsub.f32 %v1877_v49, %v1889_v63  ;;  %1901 = vadd.xlane.f32.xlu1 %v1896_v3 }
 0x34c   : > { %v1886_v1 = vpop.xlane.xlu1 %1885 }
 0x34d   : > { %v1890_v6 = vmul.f32 0.0078125, %v1886_v1  ;;  %v1897_v7 = vmul.f32 %v1893_v5, %v1893_v5 }
 0x34f   : > { %v1894_v8 = vsub.f32 %v1878_v58, %v1890_v6  ;;  %1903 = vadd.xlane.f32.xlu0 %v1897_v7 }
 0x351   : > { %v1898_v11 = vmul.f32 %v1894_v8, %v1894_v8 }
 0x353   : > { %1905 = vadd.xlane.f32.xlu1 %v1898_v11 }
 0x3d0   : > { %v1900_v12 = vpop.xlane.xlu0 %1899 }
 0x3d1   : > { %v1907_v13 = vmul.f32 0.0078125, %v1900_v12 }
 0x3d3   : > { %v1911_v14 = vadd.f32 1e-05, %v1907_v13 }
 0x3d4   : > { %v1902_v17 = vpop.xlane.xlu1 %1901 }
 0x3d5   : > { %2694 = vrsqrt.f32 %v1911_v14  ;;  %v1908_v16 = vmul.f32 0.0078125, %v1902_v17 }
 0x3d7   : > { %v1912_v59 = vadd.f32 1e-05, %v1908_v16 }
 0x3d8   : > { %v1904_v19 = vpop.xlane.xlu0 %1903 }
 0x3d9   : > { %2696 = vrsqrt.f32 %v1912_v59  ;;  %v1909_v20 = vmul.f32 0.0078125, %v1904_v19 }
 0x3db   : > { %v1913_v10 = vadd.f32 1e-05, %v1909_v20 }
 0x3dc   : > { %v1906_v21 = vpop.xlane.xlu1 %1905 }
 0x3dd   : > { %2698 = vrsqrt.f32 %v1913_v10  ;;  %v1910_v23 = vmul.f32 0.0078125, %v1906_v21 }
 0x3df   : > { %v1914_v26 = vadd.f32 1e-05, %v1910_v23 }
 0x3e1   : > { %2700 = vrsqrt.f32 %v1914_v26 }
 0x3e2   : > { %v2695_v60 = vpop.eup %2694 }
 0x3e3   : > { %v1919_v28 = vmul.f32 %v2695_v60, %v1891_v48 }
 0x3e5   : > { %v1930_v31 = vmul.f32 %v2283_v27, %v1919_v28 }
 0x3e6   : > { %v2697_v56 = vpop.eup %2696 }
 0x3e7   : > { %v1941_v57 = vadd.f32 %v2284_v29, %v1930_v31  ;;  %v1920_v32 = vmul.f32 %v2697_v56, %v1892_v61 }
 0x3e9   : > { %1945 = vst [vmem:[%s410_s2] sm:$0xff] %v1941_v57  ;;  %v1931_v33 = vmul.f32 %v2283_v27, %v1920_v32 }
 0x3ea   : > { %v2699_v34 = vpop.eup %2698 }
 0x3eb   : > { %v1942_v18 = vadd.f32 %v2284_v29, %v1931_v33  ;;  %v1921_v2 = vmul.f32 %v2699_v34, %v1893_v5 }
 0x3ed   : > { %1946 = vst [vmem:[%s410_s2 + $0x8] sm:$0xff] %v1942_v18  ;;  %v1932_v24 = vmul.f32 %v2283_v27, %v1921_v2 }
 0x3ee   : > { %v2701_v35 = vpop.eup %2700 }
 0x3ef   : > { %v1943_v25 = vadd.f32 %v2284_v29, %v1932_v24  ;;  %v1922_v9 = vmul.f32 %v2701_v35, %v1894_v8 }
 0x3f1   : > { %1947 = vst [vmem:[%s410_s2 + $0x10] sm:$0xff] %v1943_v25  ;;  %v1933_v0 = vmul.f32 %v2283_v27, %v1922_v9 }
 0x3f3   : > { %v1944_v30 = vadd.f32 %v2284_v29, %v1933_v0 }
 0x3f5   : > { %1948 = vst [vmem:[%s410_s2 + $0x18] sm:$0xff] %v1944_v30 }
 0x3f6   : > { %2823 = shalt.err (!%p2820_p11)
}
 0x3f7   : > { %s2824_s21 = scalar_lea.hbm %s3390_s16, 512  ;;  %s2828_s23 = scalar_lea.hbm %s3531_s8, 2048 }
 0x3f8   : > { %p2825_p10 = scmp.ne.s32.totalorder %s3390_s16, %s2824_s21  ;;  %p2829_p7 = scmp.lt.s32.totalorder %s3390_s16, %s3531_s8 }
 0x3f9   : > { %p2830_p9 = scmp.lt.s32.totalorder %s2828_s23, %s2824_s21 }
 0x3fa   : > { %p2826_p12 = pnand %p2825_p10, %p3532_p8 }
 0x3fb   : > { %p2831_p6 = por %p2830_p9, %p2829_p7 }
 0x3fc   : > { %p2827_p3 = pneg %p2826_p12 }
 0x3fe   : > { %p2832_p5 = pnand %p2831_p6, %p2827_p3 }
 0x400   : > { %2835 = shalt.err (!%p2832_p5)
}
 0x401   : > { %s2954_s7 = smov 128   ;;  %s2955_s17 = smov 8  }
 0x402   : > { %2334 = dma.vmem_to_hbm [thread:$0]  (%p3532_p8), %s3392_s0, 512, %s3390_s16, %s3396_s12, %s2954_s7, %s2954_s7, %s2955_s17  }
 0x403 PF: > { %s3533_s4 = sld [smem:[#allocation16_spill]]  ;;  %p2359_p13 = scmp.ge.s32.totalorder %s2942_s15, 2 }
 0x404   : > { %s3534_s22 = sld [smem:[#allocation20_spill]] }
 0x409   : > { %s1980_s5 = sand.u32 1, %s3533_s4  }
 0x40a   : > { %p3535_p2 = scmp.ne.s32.totalorder %s3534_s22, 0  ;;  %s1981_s11 = scalar_lea.sflag [#allocation4], %s1980_s5 }
 0x40c   : > { %p2351_p1 = pnand %p2359_p13, %p3535_p2 }
 0x40e   : > { %p2352_p0 = pneg %p2351_p1 }
 0x410   : > { %2897 = dma.done.wait (%p2352_p0), %s1981_s11, 512  }
 0x411   : > { %2899 = vsyncadd (%p2352_p0), %s1981_s11, 4294966784  ;;  %s28_s15 = sadd.s32 1, %s2942_s15   ;;  %s3536_s0 = sld [smem:[#allocation21_spill]] }
 0x412   : > { %p25_p4 = scmp.ge.s32.totalorder %s28_s15, 6   ;;  %s3537_s16 = sld [smem:[#allocation23_spill]] }
 0x413   : > { %s3538_s27 = smov %s2906_s28  ;;  %s3539_s28 = smov %s2910_s29 }
 0x414   : > { %s3540_s29 = smov %s3178_s25  ;;  %s3541_s30 = smov %s2918_s9 }
 0x415   : > { %s3542_s9 = smov %s2922_s10  ;;  %s3543_s10 = smov %s3175_s6 }
 0x416   : > { %s3544_s11 = smov %s2934_s13  ;;  %s3545_s12 = smov %s2938_s14 }
 0x417   : > { %s3546_s13 = smov %s3536_s0  ;;  %27 = sbr.rel (!%p25_p4) target bundleno = 21 (0x15), region = 119 }
 0x418   : > { %s3547_s14 = smov %s3537_s16 }
 0x41c   :  { %1986 = vsyncpa [#allocation3], 1 }
 0x41d   :  { %1988 = vsyncpa [#allocation3 + $0x1], 1 }
 0x41e   :  { %1989 = vsyncpa [#allocation6], 1 }
 0x41f   :  { %1991 = vsyncpa [#allocation6 + $0x1], 1 }
 0x420   :  { %1992 = vsyncpa [#allocation9], 1 }
 0x421   :  { %1993 = vsyncpa [#allocation4], 1 }
 0x422   :  { %1995 = vsyncpa [#allocation4 + $0x1], 1 }

// kernel: tpu_custom_call.1
= control target key start
LH: loop header
LB: loop body
LE: loop exit
PB: predicated region body
PF: predicated region fallthrough
CT: control target
= control target key end

     0   :  { %s3456_s0 = inlined_call_operand.hbm [shape: bf16[2,72,128], index: 0, kind: input, shape index: {}]   ;;  %s3457_s1 = inlined_call_operand.hbm [shape: f32[2,64,128], index: 1, kind: input, shape index: {}]   ;;  %s3458_s2 = inlined_call_operand.hbm [shape: bf16[1152,256], index: 2, kind: input, shape index: {}]   ;;  %s3459_s3 = inlined_call_operand.vmem [shape: f32[1,256], index: 3, kind: input, shape index: {}]   ;;  %s3460_s4 = inlined_call_operand.hbm [shape: bf16[256,128], index: 4, kind: input, shape index: {}]   ;;  %s3461_s5 = inlined_call_operand.vmem [shape: f32[1,128], index: 5, kind: input, shape index: {}]   ;;  %s3462_s6 = inlined_call_operand.vmem [shape: f32[1,128], index: 6, kind: input, shape index: {}]   ;;  %s3463_s7 = inlined_call_operand.vmem [shape: f32[1,128], index: 7, kind: input, shape index: {}]   ;;  %s3464_s8 = inlined_call_operand.hbm [shape: f32[2,64,128], index: 8, kind: output, shape index: {}]  }
   0x1   :  { %3483 = sst [smem:[#allocation24_spill]] %s3456_s0 }
   0x2   :  { %3484 = sst [smem:[#allocation25_spill]] %s3458_s2 }
   0x3   :  { %3485 = sst [smem:[#allocation26_spill]] %s3459_s3 }
   0x4   :  { %3486 = sst [smem:[#allocation27_spill]] %s3460_s4 }
   0x5   :  { %3487 = sst [smem:[#allocation28_spill]] %s3461_s5 }
   0x6   :  { %3488 = sst [smem:[#allocation29_spill]] %s3462_s6 }
   0x7   :  { %3489 = sst [smem:[#allocation30_spill]] %s3463_s7 }
   0x8   :  { %3490 = sst [smem:[#allocation31_spill]] %s3464_s8 }
   0x9   :  { %13 = vsyncpa [#allocation3], 0 }
   0xa   :  { %15 = vsyncpa [#allocation3 + $0x1], 0 }
   0xb   :  { %16 = vsyncpa [#allocation6], 0 }
   0xc   :  { %18 = vsyncpa [#allocation6 + $0x1], 0 }
   0xd   :  { %19 = vsyncpa [#allocation9], 0 }
   0xe   :  { %20 = vsyncpa [#allocation4], 0 }
   0xf   :  { %22 = vsyncpa [#allocation4 + $0x1], 0  ;;  %s3001_s27 = smov 0   ;;  %s3003_s28 = smov 0  }
  0x10   :  { %s3005_s29 = smov 0   ;;  %s3007_s30 = smov 0  }
  0x11   :  { %s3009_s9 = smov 0   ;;  %s3011_s10 = smov 0  }
  0x12   :  { %s3013_s11 = smov 0   ;;  %s3015_s12 = smov 0  }
  0x13   :  { %s3017_s13 = smov 0   ;;  %s3019_s14 = smov 0  }
  0x14   :  { %s3021_s15 = smov 0  }
  0x15 LB: > { %3491 = sst [smem:[#allocation16_spill]] %s2902_s27  ;;  %s3055_s16 = sadd.s32 4294967295, %s2942_s15   ;;  %s2942_s15 = sphi %s3021_s15, %s28_s15   ;;  %s2938_s14 = sphi %s3019_s14, %s3547_s14   ;;  %s2934_s13 = sphi %s3017_s13, %s3546_s13   ;;  %s2930_s12 = sphi %s3015_s12, %s3545_s12   ;;  %s2926_s11 = sphi %s3013_s11, %s3544_s11   ;;  %s2922_s10 = sphi %s3011_s10, %s3543_s10   ;;  %s2918_s9 = sphi %s3009_s9, %s3542_s9   ;;  %s2914_s30 = sphi %s3007_s30, %s3541_s30   ;;  %s2910_s29 = sphi %s3005_s29, %s3540_s29   ;;  %s2906_s28 = sphi %s3003_s28, %s3539_s28   ;;  %s2902_s27 = sphi %s3001_s27, %s3538_s27  }
  0x16   : > { %3492 = sst [smem:[#allocation17_spill]] %s2926_s11  ;;  %s2100_s17 = sadd.s32 4294967294, %s2942_s15  }
  0x17   : > { %3493 = sst [smem:[#allocation18_spill]] %s2930_s12  ;;  %p60_p0 = scmp.ne.s32.totalorder %s2918_s9, %s2914_s30 }
  0x18   : > { %p3472_p1 = scmp.eq.s32.totalorder %s3055_s16, 0  ;;  %p88_p2 = scmp.ne.s32.totalorder %s2906_s28, %s2902_s27 }
  0x19   : > { %p246_p4 = scmp.eq.s32.totalorder %s2100_s17, 3  ;;  %p2101_p6 = scmp.ge.s32.totalorder %s2942_s15, 1 }
  0x1a   : > { %p3064_p3 = por %p3472_p1, %p60_p0  ;;  %p3070_p5 = por %p88_p2, %p3472_p1 }
  0x1b   : > { %p3075_p7 = por %p246_p4, %p88_p2  ;;  %p253_p8 = scmp.lt.s32.totalorder %s2942_s15, 5 }
  0x1c   : > { %s3495_s19 = scalar_select %p3070_p5, 1, 0 }
  0x1d   : > { %s3497_s20 = scalar_select %p3075_p7, 1, 0 }
  0x1e   : > { %3496 = sst [smem:[#allocation19_spill]] %s3495_s19  ;;  %p3080_p9 = pnand %p2101_p6, %p253_p8 }
  0x1f   : > { %3498 = sst [smem:[#allocation20_spill]] %s3497_s20  ;;  %s2944_s22 = smov [#allocation7]  }
  0x20   : > { %s265_s23 = sshll.u32 %s2944_s22, 4  ;;  %p2336_p10 = pneg %p3080_p9  ;;  %s266_s23 = int_to_ptr.vmem [resolvable:$true] %s265_s23 }
  0x21   : > { %s2945_s25 = smov [#allocation8]   ;;  %s2713_s30 = scalar_lea.vmem %s266_s23, 18432 }
  0x22   : > { %p3088_p11 = pnand %p2336_p10, %p3472_p1  ;;  %s281_s26 = sshll.u32 %s2945_s25, 4  ;;  %s282_s26 = int_to_ptr.vmem [resolvable:$true] %s281_s26 }
  0x23   : > { %p2714_p13 = scmp.ne.s32.totalorder %s266_s23, %s2713_s30  ;;  %p2721_p4 = scmp.lt.s32.totalorder %s266_s23, %s266_s23 }
  0x24   : > { %p2704_p12 = pneg %p3088_p11  ;;  %p2722_p6 = scmp.lt.s32.totalorder %s2713_s30, %s2713_s30 }
  0x26   : > { %p2716_p0 = pnand %p2714_p13, %p2704_p12  ;;  %p2723_p8 = por %p2722_p6, %p2721_p4 }
  0x28   : > { %p2717_p2 = pneg %p2716_p0 }
  0x2a   : > { %p2724_p10 = pnand %p2723_p8, %p2717_p2 }
  0x2c   : > { %2727 = shalt.err (!%p2724_p10)
}
  0x2d   : > { %s3467_s17 = smov 128   ;;  %s3468_s22 = smov 8  }
  0x2e   : > { %s3501_s2 = sld [smem:[#allocation25_spill]]  ;;  %s2739_s27 = scalar_lea.vmem %s282_s26, 2048 }
  0x2f   : > { %p2740_p13 = scmp.ne.s32.totalorder %s282_s26, %s2739_s27  ;;  %p2747_p2 = scmp.lt.s32.totalorder %s282_s26, %s282_s26 }
  0x30   : > { %p2748_p6 = scmp.lt.s32.totalorder %s2739_s27, %s2739_s27 }
  0x31   : > { %p2742_p0 = pnand %p2740_p13, %p2704_p12 }
  0x32   : > { %p2749_p8 = por %p2748_p6, %p2747_p2 }
  0x33   : > { %p2743_p4 = pneg %p2742_p0 }
  0x34   : > { %2339 = dma.hbm_to_vmem [thread:$0]  (!%p3088_p11), %s3501_s2, 18432, %s266_s23, [#allocation6], %s3467_s17, %s3467_s17, %s3468_s22  }
  0x35   : > { %p2750_p10 = pnand %p2749_p8, %p2743_p4 }
  0x37   : > { %2753 = shalt.err (!%p2750_p10)
}
  0x38   : > { %s3470_s30 = smov 64   ;;  %s3471_s20 = smov 4  }
  0x39   : > { %s3502_s4 = sld [smem:[#allocation27_spill]]  ;;  %p240_p12 = scmp.eq.s32.totalorder %s3055_s16, 3 }
  0x3a   : > { %p54_p13 = scmp.ne.s32.totalorder %s2922_s10, %s2918_s9  ;;  %p3474_p0 = scmp.eq.s32.totalorder %s2942_s15, 0 }
  0x3b   : > { %p3473_p4 = scmp.lt.s32.totalorder %s2942_s15, 4  ;;  %s304_s17 = sand.u32 1, %s2922_s10  }
  0x3c   : > { %p56_p2 = por %p3474_p0, %p54_p13  ;;  %s2319_s22 = smul.u32 36, %s304_s17 }
  0x3d   : > { %s2320_s2 = smul.u32 576, %s2938_s14  ;;  %s3504_s0 = sld [smem:[#allocation24_spill]] }
  0x3e   : > { %p3128_p6 = pnand %p3473_p4, %p56_p2  ;;  %s308_s27 = scalar_lea.vmem [#allocation2], %s2319_s22 }
  0x3f   : > { %2342 = dma.hbm_to_vmem [thread:$0]  (!%p3088_p11), %s3502_s4, 2048, %s282_s26, [#allocation9], %s3470_s30, %s3470_s30, %s3471_s20  }
  0x40   : > { %s315_s23 = sshll.u32 %s308_s27, 4  ;;  %s305_s25 = scalar_lea.sflag [#allocation3], %s304_s17  ;;  %s316_s23 = int_to_ptr.vmem [resolvable:$true] %s315_s23 }
  0x41   : > { %p2756_p11 = pneg %p3128_p6  ;;  %s2767_s30 = scalar_lea.vmem %s316_s23, 576 }
  0x42   : > { %p2768_p8 = scmp.ne.s32.totalorder %s316_s23, %s2767_s30  ;;  %s2950_s20 = smov [#allocation2]  }
  0x43   : > { %s314_s26 = scalar_lea.hbm %s3504_s0, %s2320_s2  ;;  %s2772_s4 = sshll.u32 %s2950_s20, 4  ;;  %s2773_s4 = int_to_ptr.vmem [resolvable:$false] %s2772_s4 }
  0x44   : > { %p2770_p10 = pnand %p2768_p8, %p2756_p11  ;;  %s2774_s6 = scalar_lea.vmem %s2773_s4, 1152 }
  0x45   : > { %p2775_p2 = scmp.lt.s32.totalorder %s316_s23, %s2773_s4  ;;  %p2776_p1 = scmp.lt.s32.totalorder %s2774_s6, %s2767_s30 }
  0x46   : > { %p2771_p13 = pneg %p2770_p10 }
  0x47   : > { %p2777_p4 = por %p2776_p1, %p2775_p2 }
  0x49   : > { %p2778_p0 = pnand %p2777_p4, %p2771_p13 }
  0x4b   : > { %2781 = shalt.err (!%p2778_p0)
}
  0x4c   : > { %s3505_s2 = smov 4   ;;  %s3506_s7 = smov 64  }
  0x4d   : > { %2346 = dma.hbm_to_vmem [thread:$0]  (!%p3128_p6), %s314_s26, 576, %s316_s23, %s305_s25, %s3506_s7, %s3506_s7, %s3505_s2  }
  0x4e   : > { %s47_s4 = sadd.s32 1, %s2922_s10  ;;  %s37_s6 = sadd.s32 1, %s2934_s13 }
  0x4f   : > { %p38_p1 = scmp.ge.s32.totalorder %s37_s6, 2  ;;  %s75_s8 = sadd.s32 1, %s2910_s29 }
  0x50   : > { %p82_p0 = scmp.ne.s32.totalorder %s2910_s29, %s2906_s28  ;;  %s327_s17 = sand.u32 1, %s2910_s29  }
  0x51   : > { %s3549_s6 = smov (%p38_p1, %s37_s6), 0  ;;  %s3508_s22 = sadd.s32 1, %s2938_s14 }
  0x52   : > { %3507 = sst [smem:[#allocation21_spill]] %s3549_s6  ;;  %s3551_s22 = smov (!%p38_p1, %s3508_s22), %s2938_s14 }
  0x53   : > { %s71_s30 = ssub.s32 %s2934_s13, %s3549_s6  ;;  %s325_s20 = sand.u32 1, %s2942_s15  }
  0x54   : > { %p42_p4 = scmp.ge.s32.totalorder %s3551_s22, 2  ;;  %p3158_p6 = por %p240_p12, %p82_p0 }
  0x55   : > { %p3511_p11 = scmp.eq.s32.totalorder %s2942_s15, 0  ;;  %s2106_s26 = sshll.u32 %s327_s17, 5 }
  0x56   : > { %s3509_s25 = scalar_select %p3158_p6, 1, 0 }
  0x57   : > { %p3164_p8 = por %p82_p0, %p3511_p11  ;;  %s3553_s22 = smov (%p42_p4, %s3551_s22), 0 }
  0x58   : > { %3510 = sst [smem:[#allocation22_spill]] %s3509_s25  ;;  %s2107_s27 = sshll.u32 %s2934_s13, 2 }
  0x59   : > { %3513 = sst [smem:[#allocation23_spill]] %s3553_s22  ;;  %s44_s23 = ssub.s32 %s2938_s14, %s3553_s22 }
  0x5a   : > { %s2108_s2 = sshll.u32 %s2938_s14, 3  ;;  %p45_p10 = scmp.eq.s32.totalorder %s44_s23, 0 }
  0x5b   : > { %s72_s7 = sor.u32 %s71_s30, %s44_s23  ;;  %s335_s0 = sadd.s32 %s2108_s2, %s2107_s27 }
  0x5c   : > { %p73_p12 = scmp.eq.s32.totalorder %s72_s7, 0  ;;  %s2109_s12 = sshll.u32 %s335_s0, 7 }
  0x5d   : > { %s3175_s6 = scalar_select %p45_p10, %s2922_s10, %s47_s4  }
  0x5e   : > { %s3178_s25 = scalar_select %p73_p12, %s2910_s29, %s75_s8  }
  0x5f   : > { %s329_s5 = scalar_lea.vmem [#allocation5], %s2106_s26  ;;  %s337_s19 = scalar_lea.hbm %s3457_s1, %s2109_s12 }
  0x60   : > { %s338_s3 = sshll.u32 %s329_s5, 4  ;;  %p3514_p13 = scmp.lt.s32.totalorder %s2942_s15, 4  ;;  %s339_s3 = int_to_ptr.vmem [resolvable:$true] %s338_s3 }
  0x61   : > { %s326_s30 = scalar_lea.sflag [#allocation6], %s325_s20  ;;  %s2795_s4 = scalar_lea.vmem %s339_s3, 512 }
  0x62   : > { %p3187_p2 = pnand %p3514_p13, %p3164_p8  ;;  %p2796_p0 = scmp.ne.s32.totalorder %s339_s3, %s2795_s4 }
  0x63   : > { %s2951_s0 = smov [#allocation5]  }
  0x64   : > { %p2784_p1 = pneg %p3187_p2  ;;  %s2800_s5 = sshll.u32 %s2951_s0, 4  ;;  %s2801_s5 = int_to_ptr.vmem [resolvable:$false] %s2800_s5 }
  0x65   : > { %s2802_s11 = scalar_lea.vmem %s2801_s5, 1024  ;;  %p2803_p10 = scmp.lt.s32.totalorder %s339_s3, %s2801_s5 }
  0x66   : > { %p2798_p4 = pnand %p2796_p0, %p2784_p1  ;;  %p2804_p12 = scmp.lt.s32.totalorder %s2802_s11, %s2795_s4 }
  0x68   : > { %p2799_p11 = pneg %p2798_p4  ;;  %p2805_p7 = por %p2804_p12, %p2803_p10 }
  0x6a   : > { %p2806_p6 = pnand %p2805_p7, %p2799_p11 }
  0x6c   : > { %2809 = shalt.err (!%p2806_p6)
}
  0x6d   : > { %s3516_s12 = smov 8   ;;  %s3517_s8 = smov 128  }
  0x6e   : > { %2349 = dma.hbm_to_vmem [thread:$0]  (!%p3187_p2), %s337_s19, 512, %s339_s3, %s326_s30, %s3517_s8, %s3517_s8, %s3516_s12  }
  0x6f   : > { %350 = sbr.rel (%p3080_p9) target bundleno = 1027 (0x403), region = 52  ;;  %s352_s20 = sand.u32 (!%p3080_p9), 1, %s2918_s9  }
  0x70   : > { %s3201_s24 = smul.u32 (!%p3080_p9), 36, %s352_s20  ;;  %s353_s26 = scalar_lea.sflag (!%p3080_p9), [#allocation3], %s352_s20 }
  0x72   : > { %s356_s27 = scalar_lea.vmem (!%p3080_p9), [#allocation2], %s3201_s24 }
  0x74   : > { %2881 = dma.done.wait (%p3064_p3), %s353_s26, 576  }
  0x75   : > { %2883 = vsyncadd (%p3064_p3), %s353_s26, 4294966720  ;;  %s361_s19 = sand.u32 1, %s3055_s16   ;;  %s363_s21 = sand.u32 1, %s2906_s28  }
  0x76   : > { %s3212_s22 = sshll.u32 %s363_s21, 5  ;;  %s362_s23 = scalar_lea.sflag [#allocation6], %s361_s19 }
  0x77   : > { %s3215_s2 = scalar_lea.vmem [#allocation5], %s3212_s22 }
  0x78   : > { %2885 = dma.done.wait (%p3070_p5), %s362_s23, 512  }
  0x79   : > { %2887 = vsyncadd (%p3070_p5), %s362_s23, 4294966784  ;;  %p3519_p3 = scmp.eq.s32.totalorder %s3055_s16, 0 }
  0x7b   : > { %2889 = dma.done.wait (%p3519_p3), [#allocation6], 18432   ;;  %p3520_p7 = pmov %p3519_p3 }
  0x7c   : > { %p3521_p9 = pmov %p3519_p3 }
  0x7d   : > { %2891 = vsyncadd (%p3520_p7), [#allocation6], 4294948864 }
  0x7e   : > { %2893 = dma.done.wait (%p3521_p9), [#allocation9], 2048   ;;  %p3522_p6 = pmov %p3519_p3 }
  0x7f   : > { %v2457_v0 = vld [vmem:[#allocation7 + $0x74] ss:$8 sps:$4 sm:$0xff]   ;;  %v2459_v1 = vld [vmem:[#allocation7 + $0x70] ss:$8 sps:$4 sm:$0xff]   ;;  %v2463_v4 = vld [vmem:[#allocation7 + $0x64] ss:$8 sps:$4 sm:$0xff]  }
  0x80   : > { %2895 = vsyncadd (%p3522_p6), [#allocation9], 4294965248  ;;  %1410 = vmatprep.subr.bf16.mxu0 %v2457_v0  ;;  %v2460_v2 = vld [vmem:[#allocation7 + $0x174] ss:$8 sps:$4 sm:$0xff]   ;;  %v2462_v3 = vld [vmem:[#allocation7 + $0x170] ss:$8 sps:$4 sm:$0xff]  }
  0x81   : > { %1411 = vmatpush1.bf16.msra.mxu0 %v2459_v1  ;;  %v2465_v5 = vld [vmem:[#allocation7 + $0x60] ss:$8 sps:$4 sm:$0xff]   ;;  %1463 = vmatprep.subr.bf16.mxu1 %v2460_v2  ;;  %v2466_v6 = vld [vmem:[#allocation7 + $0x164] ss:$8 sps:$4 sm:$0xff]   ;;  %v2469_v8 = vld [vmem:[#allocation7 + $0x54] ss:$8 sps:$4 sm:$0xff]  }
  0x82   : > { %1464 = vmatpush1.bf16.msra.mxu1 %v2462_v3  ;;  %1412 = vmatprep.subr.bf16.mxu0 %v2463_v4  ;;  %v2468_v7 = vld [vmem:[#allocation7 + $0x160] ss:$8 sps:$4 sm:$0xff]   ;;  %v2471_v9 = vld [vmem:[#allocation7 + $0x50] ss:$8 sps:$4 sm:$0xff]   ;;  %v2472_v10 = vld [vmem:[#allocation7 + $0x154] ss:$8 sps:$4 sm:$0xff]  }
  0x83   : > { %1465 = vmatprep.subr.bf16.mxu1 %v2466_v6  ;;  %v2475_v11 = vld [vmem:[#allocation7 + $0x44] ss:$8 sps:$4 sm:$0xff]   ;;  %v2474_v12 = vld [vmem:[#allocation7 + $0x150] ss:$8 sps:$4 sm:$0xff]   ;;  %v2477_v14 = vld [vmem:[#allocation7 + $0x40] ss:$8 sps:$4 sm:$0xff]  }
  0x84   : > { %v2478_v13 = vld [vmem:[#allocation7 + $0x144] ss:$8 sps:$4 sm:$0xff]   ;;  %v2481_v15 = vld [vmem:[#allocation7 + $0x34] ss:$8 sps:$4 sm:$0xff]   ;;  %v2480_v16 = vld [vmem:[#allocation7 + $0x140] ss:$8 sps:$4 sm:$0xff]  }
  0x85   : > { %1413 = vmatpush1.bf16.msra.mxu0 %v2465_v5  ;;  %v2484_v17 = vld [vmem:[#allocation7 + $0x134] ss:$8 sps:$4 sm:$0xff]   ;;  %v2483_v18 = vld [vmem:[#allocation7 + $0x30] ss:$8 sps:$4 sm:$0xff]   ;;  %v2487_v19 = vld [vmem:[#allocation7 + $0x24] ss:$8 sps:$4 sm:$0xff]  }
  0x86   : > { %1414 = vmatprep.subr.bf16.mxu0 %v2469_v8  ;;  %1466 = vmatpush1.bf16.msra.mxu1 %v2468_v7  ;;  %v2486_v20 = vld [vmem:[#allocation7 + $0x130] ss:$8 sps:$4 sm:$0xff]   ;;  %v2490_v21 = vld [vmem:[#allocation7 + $0x124] ss:$8 sps:$4 sm:$0xff]   ;;  %v2489_v22 = vld [vmem:[#allocation7 + $0x20] ss:$8 sps:$4 sm:$0xff]  }
  0x87   : > { %1467 = vmatprep.subr.bf16.mxu1 %v2472_v10  ;;  %v2493_v23 = vld [vmem:[#allocation7 + $0x14] ss:$8 sps:$4 sm:$0xff]   ;;  %v2492_v24 = vld [vmem:[#allocation7 + $0x120] ss:$8 sps:$4 sm:$0xff]   ;;  %s3523_s16 = sld [smem:[#allocation17_spill]]  ;;  %vm486_vm2 = vcmask 1045504  }
  0x88   : > { %v2496_v25 = vld [vmem:[#allocation7 + $0x114] ss:$8 sps:$4 sm:$0xff]   ;;  %v2495_v26 = vld [vmem:[#allocation7 + $0x10] ss:$8 sps:$4 sm:$0xff]   ;;  %v2499_v27 = vld [vmem:[#allocation7 + $0x4] ss:$8 sps:$4 sm:$0xff]  }
  0x89   : > { %1415 = vmatpush1.bf16.msra.mxu0 %v2471_v9  ;;  %v2498_v28 = vld [vmem:[#allocation7 + $0x110] ss:$8 sps:$4 sm:$0xff]   ;;  %v2502_v29 = vld [vmem:[#allocation7 + $0x104] ss:$8 sps:$4 sm:$0xff]   ;;  %v2501_v30 = vld [vmem:[#allocation7] ss:$8 sps:$4 sm:$0xff]  }
  0x8a   : > { %1416 = vmatprep.subr.bf16.mxu0 %v2475_v11  ;;  %1468 = vmatpush1.bf16.msra.mxu1 %v2474_v12  ;;  %v2505_v31 = vld [vmem:[#allocation7 + $0xf4] ss:$8 sps:$4 sm:$0xff]   ;;  %v2504_v32 = vld [vmem:[#allocation7 + $0x100] ss:$8 sps:$4 sm:$0xff]   ;;  %v2507_v34 = vld [vmem:[#allocation7 + $0xf0] ss:$8 sps:$4 sm:$0xff]  }
  0x8b   : > { %1469 = vmatprep.subr.bf16.mxu1 %v2478_v13  ;;  %v2508_v33 = vld [vmem:[#allocation7 + $0x1f4] ss:$8 sps:$4 sm:$0xff]   ;;  %v2511_v35 = vld [vmem:[#allocation7 + $0xe4] ss:$8 sps:$4 sm:$0xff]   ;;  %v2510_v36 = vld [vmem:[#allocation7 + $0x1f0] ss:$8 sps:$4 sm:$0xff]  }
  0x8c   : > { %v2514_v37 = vld [vmem:[#allocation7 + $0x1e4] ss:$8 sps:$4 sm:$0xff]   ;;  %v2513_v38 = vld [vmem:[#allocation7 + $0xe0] ss:$8 sps:$4 sm:$0xff]   ;;  %v2517_v39 = vld [vmem:[#allocation7 + $0xd4] ss:$8 sps:$4 sm:$0xff]  }
  0x8d   : > { %1417 = vmatpush1.bf16.msra.mxu0 %v2477_v14  ;;  %s2115_s18 = sshll.u32 %s3523_s16, 5  ;;  %v2516_v40 = vld [vmem:[#allocation7 + $0x1e0] ss:$8 sps:$4 sm:$0xff]   ;;  %v2520_v41 = vld [vmem:[#allocation7 + $0x1d4] ss:$8 sps:$4 sm:$0xff]   ;;  %vm508_vm3 = vcmask 1044480  }
  0x8e   : > { %1418 = vmatprep.subr.bf16.mxu0 %v2481_v15  ;;  %1470 = vmatpush1.bf16.msra.mxu1 %v2480_v16  ;;  %s415_s7 = sshra.s32 %s2115_s18, 3  ;;  %v2519_v42 = vld [vmem:[#allocation7 + $0xd0] ss:$8 sps:$4 sm:$0xff]   ;;  %v2523_v43 = vld [vmem:[#allocation7 + $0xc4] ss:$8 sps:$4 sm:$0xff]   ;;  %vm462_vm4 = vcmask 1046528  }
  0x8f   : > { %1471 = vmatprep.subr.bf16.mxu1 %v2484_v17  ;;  %s2116_s17 = sshll.u32 %s415_s7, 2  ;;  %v2522_v44 = vld [vmem:[#allocation7 + $0x1d0] ss:$8 sps:$4 sm:$0xff]   ;;  %v2526_v45 = vld [vmem:[#allocation7 + $0x1c4] ss:$8 sps:$4 sm:$0xff]   ;;  %s3524_s5 = sld [smem:[#allocation26_spill]] }
  0x90   : > { %s3232_s30 = scalar_lea.vmem %s356_s27, %s2116_s17 [#allocation2]  ;;  %v2525_v48 = vld [vmem:[#allocation7 + $0xc0] ss:$8 sps:$4 sm:$0xff]   ;;  %v2529_v52 = vld [vmem:[#allocation7 + $0xb4] ss:$8 sps:$4 sm:$0xff]   ;;  %vm439_vm0 = vsmask.f32 7424 }
  0x91   : > { %1419 = vmatpush1.bf16.msra.mxu0 %v2483_v18  ;;  %v419_v46 = vld [vmem:[%s3232_s30] sm:$0xf]  ;;  %v3236_v47 = vld [vmem:[%s3232_s30 + $0x4] sm:$0xf]  ;;  %v3239_v49 = vld [vmem:[%s3232_s30 + $0x8] sm:$0xf] }
  0x92   : > { %1420 = vmatprep.subr.bf16.mxu0 %v2487_v19  ;;  %1472 = vmatpush1.bf16.msra.mxu1 %v2486_v20  ;;  %v3242_v50 = vld [vmem:[%s3232_s30 + $0xc] sm:$0xf]  ;;  %v3245_v51 = vcombine.low %v419_v46, %v3236_v47  ;;  %v2120_v54 = vcombine.low %v3236_v47, %v3239_v49  ;;  %v2528_v55 = vld [vmem:[#allocation7 + $0x1c0] ss:$8 sps:$4 sm:$0xff]   ;;  %v2532_v58 = vld [vmem:[#allocation7 + $0x1b4] ss:$8 sps:$4 sm:$0xff]  }
  0x93   : > { %1473 = vmatprep.subr.bf16.mxu1 %v2490_v21  ;;  %v3249_v53 = vcombine.low %v3239_v49, %v3242_v50  ;;  %v2531_v61 = vld [vmem:[#allocation7 + $0xb0] ss:$8 sps:$4 sm:$0xff]   ;;  %v2535_v1 = vld [vmem:[#allocation7 + $0xa4] ss:$8 sps:$4 sm:$0xff]   ;;  %vm470_vm1 = vsmask.f32 6400 }
  0x94   : > { %v3254_v56 = vshrl.u32 %v3245_v51, 16  ;;  %v3257_v57 = vshll.u32 %v3245_v51, 16  ;;  %v2534_v5 = vld [vmem:[#allocation7 + $0x1b0] ss:$8 sps:$4 sm:$0xff]   ;;  %v2538_v8 = vld [vmem:[#allocation7 + $0x1a4] ss:$8 sps:$4 sm:$0xff]  }
  0x95   : > { %1421 = vmatpush1.bf16.msra.mxu0 %v2489_v22  ;;  %v3260_v59 = vshll.u32 %v3249_v53, 16  ;;  %v3263_v60 = vshrl.u32 %v3249_v53, 16  ;;  %v2537_v10 = vld [vmem:[#allocation7 + $0xa0] ss:$8 sps:$4 sm:$0xff]   ;;  %v2541_v12 = vld [vmem:[#allocation7 + $0x94] ss:$8 sps:$4 sm:$0xff]  }
  0x96   : > { %1422 = vmatprep.subr.bf16.mxu0 %v2493_v23  ;;  %1474 = vmatpush1.bf16.msra.mxu1 %v2492_v24  ;;  %v445_v62 = vrot.slane %v3257_v57, 1  ;;  %v471_v63 = vrot.slane %v3254_v56, 1  ;;  %v472_v0 = vrot.slane %v3257_v57, 2  ;;  %v487_v14 = vrot.slane %v3245_v51, 2  ;;  %v2540_v16 = vld [vmem:[#allocation7 + $0x1a0] ss:$8 sps:$4 sm:$0xff]  }
  0x97   : > { %1475 = vmatprep.subr.bf16.mxu1 %v2496_v25  ;;  %v450_v2 = vrot.slane %v3260_v59, 1  ;;  %v474_v3 = vrot.slane %v3263_v60, 1  ;;  %v475_v4 = vrot.slane %v3260_v59, 2  ;;  %v488_v15 = vrot.slane %v3249_v53, 2  ;;  %v2544_v17 = vld [vmem:[#allocation7 + $0x194] ss:$8 sps:$4 sm:$0xff]  }
  0x98   : > { %v446_v6 = vor.u32 %v445_v62, %v3254_v56  ;;  %v473_v7 = vor.u32 %v472_v0, %v471_v63  ;;  %v2543_v19 = vld [vmem:[#allocation7 + $0x90] ss:$8 sps:$4 sm:$0xff]   ;;  %v2547_v20 = vld [vmem:[#allocation7 + $0x84] ss:$8 sps:$4 sm:$0xff]   ;;  %v509_v21 = vrot.slane %v3245_v51, 3  ;;  %v510_v22 = vrot.slane %v3249_v53, 3 }
  0x99   : > { %1423 = vmatpush1.bf16.msra.mxu0 %v2495_v26  ;;  %v3272_v9 = vor.u32 %v475_v4, %v474_v3  ;;  %v3284_v18 = vsel %vm486_vm2, %v487_v14, %v488_v15  ;;  %v2546_v23 = vld [vmem:[#allocation7 + $0x190] ss:$8 sps:$4 sm:$0xff]   ;;  %v2550_v24 = vld [vmem:[#allocation7 + $0x184] ss:$8 sps:$4 sm:$0xff]   ;;  %v2549_v26 = vld [vmem:[#allocation7 + $0x80] ss:$8 sps:$4 sm:$0xff]  }
  0x9a   : > { %1424 = vmatprep.subr.bf16.mxu0 %v2499_v27  ;;  %1476 = vmatpush1.bf16.msra.mxu1 %v2498_v28  ;;  %v451_v11 = vsel %vm439_vm0, %v446_v6, %v450_v2  ;;  %v3291_v25 = vsel %vm508_vm3, %v509_v21, %v510_v22  ;;  %v2557_v27 = vld [vmem:[#allocation7 + $0x274] ss:$8 sps:$4 sm:$0xff]   ;;  %v2554_v28 = vld [vmem:[#allocation7 + $0x180] ss:$8 sps:$4 sm:$0xff]   ;;  %v499_v62 = vrot.slane %v3260_v59, 3  ;;  %v518_v3 = vrot.slane %v3257_v57, 4 }
  0x9b   : > { %1477 = vmatprep.subr.bf16.mxu1 %v2502_v29  ;;  %1442 = vmatprep.mubr.bf16.mxu0 %v451_v11  ;;  %v477_v13 = vsel %vm470_vm1, %v473_v7, %v3272_v9  ;;  %v463_v29 = vrot.slane %v3245_v51, 1  ;;  %v2581_v46 = vld [vmem:[#allocation7 + $0x234] ss:$8 sps:$4 sm:$0xff]   ;;  %v2579_v63 = vld [vmem:[#allocation7 + $0x230] ss:$8 sps:$4 sm:$0xff]   ;;  %v520_v6 = vrot.slane %v3263_v60, 3  ;;  %v454_v11 = vor.u32 %v3263_v60, %v450_v2 }
  0x9c   : > { %1495 = vmatprep.mubr.bf16.mxu1 %v477_v13  ;;  %v521_v7 = vrot.slane %v3260_v59, 4  ;;  %v2593_v59 = vld [vmem:[#allocation7 + $0x214] ss:$8 sps:$4 sm:$0xff]   ;;  %vm494_vm5 = vsmask.f32 5376  ;;  %v2685_v47 = vld [vmem:[#allocation8 + $0x20] sm:$0xff]  }
  0x9d   : > { %1425 = vmatpush1.bf16.msra.mxu0 %v2501_v30  ;;  %v464_v30 = vrot.slane %v3249_v53, 1  ;;  %vm516_vm6 = vsmask.f32 4352  ;;  %v2686_v49 = vld [vmem:[#allocation8 + $0x58] sm:$0xff]   ;;  %s3525_s8 = sld [smem:[#allocation28_spill]]  ;;  %s2286_s18 = sshll.u32 %s3523_s16, 2 }
  0x9e   : > { %1426 = vmatprep.subr.bf16.mxu0 %v2505_v31  ;;  %1478 = vmatpush1.bf16.msra.mxu1 %v2504_v32  ;;  %v2560_v31 = vld [vmem:[#allocation7 + $0x374] ss:$8 sps:$4 sm:$0xff]   ;;  %v2555_v32 = vld [vmem:[#allocation7 + $0x270] ss:$8 sps:$4 sm:$0xff]   ;;  %s3526_s20 = sld [smem:[#allocation18_spill]]  ;;  %s3396_s12 = scalar_lea.sflag [#allocation4], %s363_s21 }
  0x9f   : > { %1479 = vmatprep.subr.bf16.mxu1 %v2508_v33  ;;  %v2563_v33 = vld [vmem:[#allocation7 + $0x264] ss:$8 sps:$4 sm:$0xff]   ;;  %s3527_s27 = sld [smem:[#allocation29_spill]]  ;;  %s2953_s24 = smov [#allocation10]  }
  0xa0   : > { %s3528_s23 = sld [smem:[#allocation30_spill]]  ;;  %s2814_s26 = sshll.u32 %s2953_s24, 4  ;;  %s2815_s26 = int_to_ptr.vmem [resolvable:$false] %s2814_s26 }
  0xa1   : > { %1427 = vmatpush2.bf16.msra.mxu0 %v2507_v34  ;;  %v465_v34 = vsel %vm462_vm4, %v463_v29, %v464_v30  ;;  %s3530_s11 = sld [smem:[#allocation31_spill]] }
  0xa2   : > { %1428 = vmatprep.subr.bf16.mxu0 %v2511_v35  ;;  %1480 = vmatpush2.bf16.msra.mxu1 %v2510_v36  ;;  %v2558_v35 = vld [vmem:[#allocation7 + $0x370] ss:$8 sps:$4 sm:$0xff]   ;;  %v2566_v36 = vld [vmem:[#allocation7 + $0x364] ss:$8 sps:$4 sm:$0xff]  }
  0xa3   : > { %1481 = vmatprep.subr.bf16.mxu1 %v2514_v37  ;;  %v2561_v37 = vld [vmem:[#allocation7 + $0x260] ss:$8 sps:$4 sm:$0xff]  }
  0xa4   : > { %s2287_s7 = sshll.u32 %s3526_s20, 3 }
  0xa5   : > { %1429 = vmatpush2.bf16.msra.mxu0 %v2513_v38  ;;  %v2569_v38 = vld [vmem:[#allocation7 + $0x254] ss:$8 sps:$4 sm:$0xff]   ;;  %s1962_s17 = sadd.s32 %s2287_s7, %s2286_s18 }
  0xa6   : > { %1430 = vmatprep.subr.bf16.mxu0 %v2517_v39  ;;  %1482 = vmatpush2.bf16.msra.mxu1 %v2516_v40  ;;  %v2564_v39 = vld [vmem:[#allocation7 + $0x360] ss:$8 sps:$4 sm:$0xff]   ;;  %v2572_v40 = vld [vmem:[#allocation7 + $0x354] ss:$8 sps:$4 sm:$0xff]   ;;  %s2288_s4 = sshll.u32 %s1962_s17, 7 }
  0xa7   : > { %1483 = vmatprep.subr.bf16.mxu1 %v2520_v41  ;;  %v2567_v41 = vld [vmem:[#allocation7 + $0x250] ss:$8 sps:$4 sm:$0xff]   ;;  %s3390_s16 = scalar_lea.hbm %s3530_s11, %s2288_s4 }
  0xa9   : > { %1431 = vmatpush2.bf16.msra.mxu0 %v2519_v42  ;;  %v2575_v42 = vld [vmem:[#allocation7 + $0x244] ss:$8 sps:$4 sm:$0xff]  }
  0xaa   : > { %1432 = vmatprep.subr.bf16.mxu0 %v2523_v43  ;;  %1484 = vmatpush2.bf16.msra.mxu1 %v2522_v44  ;;  %v2570_v43 = vld [vmem:[#allocation7 + $0x350] ss:$8 sps:$4 sm:$0xff]   ;;  %v2578_v44 = vld [vmem:[#allocation7 + $0x344] ss:$8 sps:$4 sm:$0xff]  }
  0xab   : > { %1485 = vmatprep.subr.bf16.mxu1 %v2526_v45  ;;  %v2573_v45 = vld [vmem:[#allocation7 + $0x240] ss:$8 sps:$4 sm:$0xff]  }
  0xad   : > { %1433 = vmatpush2.bf16.msra.mxu0 %v2525_v48  ;;  %v2576_v48 = vld [vmem:[#allocation7 + $0x340] ss:$8 sps:$4 sm:$0xff]  }
  0xae   : > { %1434 = vmatprep.subr.bf16.mxu0 %v2529_v52  ;;  %1486 = vmatpush2.bf16.msra.mxu1 %v2528_v55  ;;  %v496_v52 = vrot.slane %v3257_v57, 3  ;;  %v2584_v55 = vld [vmem:[#allocation7 + $0x334] ss:$8 sps:$4 sm:$0xff]  }
  0xaf   : > { %1487 = vmatprep.subr.bf16.mxu1 %v2532_v58  ;;  %v3302_v58 = vld [vmem:[%s3232_s30 + $0x10] sm:$0xf]  ;;  %s3529_s30 = sld [smem:[#allocation22_spill]] }
  0xb0   : > { %v3308_v0 = vcombine.low %v3302_v58, %v3302_v58  ;;  %v2121_v4 = vcombine.low %v3242_v50, %v3302_v58  ;;  %v2688_v50 = vld [vmem:[#allocation8 + $0x50] sm:$0xff]  }
  0xb1   : > { %1435 = vmatpush2.bf16.msra.mxu0 %v2531_v61  ;;  %v498_v61 = vrot.slane %v3263_v60, 2  ;;  %v2689_v58 = vld [vmem:[#allocation8 + $0x10] sm:$0xff]  }
  0xb2   : > { %1436 = vmatprep.subr.bf16.mxu0 %v2535_v1  ;;  %1488 = vmatpush2.bf16.msra.mxu1 %v2534_v5  ;;  %v517_v1 = vrot.slane %v3254_v56, 3  ;;  %v2587_v5 = vld [vmem:[#allocation7 + $0x224] ss:$8 sps:$4 sm:$0xff]   ;;  %v3323_v57 = vshrl.u32 %v3308_v0, 16 }
  0xb3   : > { %1489 = vmatprep.subr.bf16.mxu1 %v2538_v8  ;;  %v2582_v8 = vld [vmem:[#allocation7 + $0x330] ss:$8 sps:$4 sm:$0xff]   ;;  %v3329_v2 = vor.u32 %v499_v62, %v498_v61  ;;  %v2629_v61 = vld [vmem:[#allocation7 + $0x2b4] ss:$8 sps:$4 sm:$0xff]   ;;  %v2624_v62 = vld [vmem:[#allocation7 + $0x3c0] ss:$8 sps:$4 sm:$0xff]  }
  0xb4   : > { %v480_v14 = vrot.slane %v3323_v57, 1 }
  0xb5   : > { %1437 = vmatpush2.bf16.msra.mxu0 %v2537_v10  ;;  %v2585_v10 = vld [vmem:[#allocation7 + $0x220] ss:$8 sps:$4 sm:$0xff]   ;;  %p3532_p8 = scmp.ne.s32.totalorder %s3529_s30, 0 }
  0xb6   : > { %1438 = vmatprep.subr.bf16.mxu0 %v2541_v12  ;;  %1490 = vmatpush2.bf16.msra.mxu1 %v2540_v16  ;;  %v2590_v12 = vld [vmem:[#allocation7 + $0x324] ss:$8 sps:$4 sm:$0xff]  }
  0xb7   : > { %1491 = vmatprep.subr.bf16.mxu1 %v2544_v17  ;;  %v466_v17 = vrot.slane %v3308_v0, 1 }
  0xb9   : > { %1439 = vmatpush2.bf16.msra.mxu0 %v2543_v19  ;;  %v2588_v19 = vld [vmem:[#allocation7 + $0x320] ss:$8 sps:$4 sm:$0xff]   ;;  %v467_v29 = vsel %vm462_vm4, %v464_v30, %v466_v17  ;;  %v2605_v30 = vld [vmem:[#allocation7 + $0x2f4] ss:$8 sps:$4 sm:$0xff]   ;;  %v2643_v17 = vld [vmem:[#allocation7 + $0x390] ss:$8 sps:$4 sm:$0xff]  }
  0xba   : > { %1440 = vmatprep.subr.bf16.mxu0 %v2547_v20  ;;  %1492 = vmatpush2.bf16.msra.mxu1 %v2546_v23  ;;  %v519_v23 = vor.u32 %v518_v3, %v517_v1  ;;  %v2627_v1 = vld [vmem:[#allocation7 + $0x2b0] ss:$8 sps:$4 sm:$0xff]   ;;  %v2636_v3 = vld [vmem:[#allocation7 + $0x2a4] ss:$8 sps:$4 sm:$0xff]  }
  0xbb   : > { %1493 = vmatprep.subr.bf16.mxu1 %v2550_v24  ;;  %v3332_v24 = vor.u32 %v521_v7, %v520_v6  ;;  %v2639_v6 = vld [vmem:[#allocation7 + $0x3a4] ss:$8 sps:$4 sm:$0xff]   ;;  %v2634_v7 = vld [vmem:[#allocation7 + $0x2a0] ss:$8 sps:$4 sm:$0xff]  }
  0xbd   : > { %1441 = vmatpush2.bf16.msra.mxu0 %v2549_v26  ;;  %v2596_v26 = vld [vmem:[#allocation7 + $0x314] ss:$8 sps:$4 sm:$0xff]  }
  0xbe   : > { %1516 = vmatprep.subr.bf16.mxu0 %v2557_v27  ;;  %1494 = vmatpush2.bf16.msra.mxu1 %v2554_v28  ;;  %v2591_v27 = vld [vmem:[#allocation7 + $0x210] ss:$8 sps:$4 sm:$0xff]  }
  0xbf   : > { %1569 = vmatprep.subr.bf16.mxu1 %v2560_v31  ;;  %v2599_v31 = vld [vmem:[#allocation7 + $0x204] ss:$8 sps:$4 sm:$0xff]  }
  0xc0   : > { %1443 = vmatmul.mubr.bf16.vlgmr.msra.gmra.mxu0 %v3245_v51  ;;  %v495_v51 = vrot.slane %v3254_v56, 2  ;;  %v3320_v56 = vshll.u32 %v3308_v0, 16 }
  0xc1   : > { %1517 = vmatpush1.bf16.msra.mxu0 %v2555_v32  ;;  %1496 = vmatmul.mubr.bf16.vlgmr.msra.gmra.mxu1 %v465_v34  ;;  %v523_v34 = vsel %vm516_vm6, %v519_v23, %v3332_v24 }
  0xc2   : > { %1518 = vmatprep.subr.bf16.mxu0 %v2563_v33  ;;  %1570 = vmatpush1.bf16.msra.mxu1 %v2558_v35  ;;  %v458_v13 = vrot.slane %v3320_v56, 1  ;;  %v481_v16 = vrot.slane %v3320_v56, 2  ;;  %v497_v60 = vor.u32 %v496_v52, %v495_v51  ;;  %v2594_v33 = vld [vmem:[#allocation7 + $0x310] ss:$8 sps:$4 sm:$0xff]   ;;  %v2602_v35 = vld [vmem:[#allocation7 + $0x304] ss:$8 sps:$4 sm:$0xff]  }
  0xc3   : > { %1571 = vmatprep.subr.bf16.mxu1 %v2566_v36  ;;  %v2600_v36 = vld [vmem:[#allocation7 + $0x300] ss:$8 sps:$4 sm:$0xff]   ;;  %v2618_v51 = vld [vmem:[#allocation7 + $0x3d0] ss:$8 sps:$4 sm:$0xff]   ;;  %v2626_v52 = vld [vmem:[#allocation7 + $0x3c4] ss:$8 sps:$4 sm:$0xff]  }
  0xc4   : > { %v459_v20 = vsel %vm439_vm0, %v454_v11, %v458_v13  ;;  %v482_v21 = vor.u32 %v481_v16, %v480_v14  ;;  %v501_v32 = vsel %vm494_vm5, %v497_v60, %v3329_v2  ;;  %v2645_v11 = vld [vmem:[#allocation7 + $0x394] ss:$8 sps:$4 sm:$0xff]   ;;  %v2648_v13 = vld [vmem:[#allocation7 + $0x284] ss:$8 sps:$4 sm:$0xff]   ;;  %v502_v14 = vrot.slane %v3323_v57, 2 }
  0xc5   : > { %1519 = vmatpush1.bf16.msra.mxu0 %v2561_v37  ;;  %1452 = vmatprep.mubr.bf16.mxu0 %v459_v20  ;;  %v2608_v37 = vld [vmem:[#allocation7 + $0x3f4] ss:$8 sps:$4 sm:$0xff]   ;;  %v503_v16 = vrot.slane %v3320_v56, 3  ;;  %v524_v60 = vrot.slane %v3323_v57, 3  ;;  %v2646_v20 = vld [vmem:[#allocation7 + $0x280] ss:$8 sps:$4 sm:$0xff]  }
  0xc6   : > { %1520 = vmatprep.subr.bf16.mxu0 %v2569_v38  ;;  %1572 = vmatpush1.bf16.msra.mxu1 %v2564_v39  ;;  %v483_v28 = vsel %vm470_vm1, %v3272_v9, %v482_v21  ;;  %v2597_v9 = vld [vmem:[#allocation7 + $0x200] ss:$8 sps:$4 sm:$0xff]   ;;  %v2603_v38 = vld [vmem:[#allocation7 + $0x2f0] ss:$8 sps:$4 sm:$0xff]   ;;  %v2611_v39 = vld [vmem:[#allocation7 + $0x2e4] ss:$8 sps:$4 sm:$0xff]  }
  0xc7   : > { %1573 = vmatprep.subr.bf16.mxu1 %v2572_v40  ;;  %1505 = vmatprep.mubr.bf16.mxu1 %v483_v28  ;;  %v2606_v40 = vld [vmem:[#allocation7 + $0x3f0] ss:$8 sps:$4 sm:$0xff]   ;;  %v2654_v21 = vld [vmem:[#allocation7 + $0x474] ss:$8 sps:$4 sm:$0xff]   ;;  %v504_v23 = vor.u32 %v503_v16, %v502_v14  ;;  %v2655_v57 = vld [vmem:[#allocation7 + $0x460] ss:$8 sps:$4 sm:$0xff]  }
  0xc8   : > { %1453 = vmatmul.mubr.bf16.gmra.mxu0 %v3249_v53  ;;  %v2652_v28 = vld [vmem:[#allocation7 + $0x470] ss:$8 sps:$4 sm:$0xff]  }
  0xc9   : > { %1521 = vmatpush1.bf16.msra.mxu0 %v2567_v41  ;;  %1506 = vmatmul.mubr.bf16.gmra.mxu1 %v467_v29  ;;  %v2614_v41 = vld [vmem:[#allocation7 + $0x3e4] ss:$8 sps:$4 sm:$0xff]   ;;  %v2670_v53 = vld [vmem:[#allocation7 + $0x410] ss:$8 sps:$4 sm:$0xff]  }
  0xca   : > { %1522 = vmatprep.subr.bf16.mxu0 %v2575_v42  ;;  %1574 = vmatpush1.bf16.msra.mxu1 %v2570_v43  ;;  %v2609_v42 = vld [vmem:[#allocation7 + $0x2e0] ss:$8 sps:$4 sm:$0xff]   ;;  %v2657_v29 = vld [vmem:[#allocation7 + $0x464] ss:$8 sps:$4 sm:$0xff]  }
  0xcb   : > { %1575 = vmatprep.subr.bf16.mxu1 %v2578_v44  ;;  %1548 = vmatprep.mubr.bf16.mxu0 %v501_v32  ;;  %v2612_v43 = vld [vmem:[#allocation7 + $0x3e0] ss:$8 sps:$4 sm:$0xff]   ;;  %v2617_v44 = vld [vmem:[#allocation7 + $0x2d4] ss:$8 sps:$4 sm:$0xff]   ;;  %v490_v32 = vrot.slane %v3308_v0, 2 }
  0xcc   : > { %1601 = vmatprep.mubr.bf16.mxu1 %v523_v34  ;;  %v512_v34 = vrot.slane %v3308_v0, 3  ;;  %v2666_v0 = vld [vmem:[#allocation7 + $0x434] ss:$8 sps:$4 sm:$0xff]  }
  0xcd   : > { %1523 = vmatpush1.bf16.msra.mxu0 %v2573_v45  ;;  %v2620_v45 = vld [vmem:[#allocation7 + $0x3d4] ss:$8 sps:$4 sm:$0xff]  }
  0xce   : > { %1524 = vmatprep.subr.bf16.mxu0 %v2581_v46  ;;  %1576 = vmatpush1.bf16.msra.mxu1 %v2576_v48  ;;  %v2615_v46 = vld [vmem:[#allocation7 + $0x2d0] ss:$8 sps:$4 sm:$0xff]   ;;  %v2623_v48 = vld [vmem:[#allocation7 + $0x2c4] ss:$8 sps:$4 sm:$0xff]  }
  0xcf   : > { %1577 = vmatprep.subr.bf16.mxu1 %v2584_v55  ;;  %v2621_v55 = vld [vmem:[#allocation7 + $0x2c0] ss:$8 sps:$4 sm:$0xff]  }
  0xd1   : > { %1525 = vmatpush1.bf16.msra.mxu0 %v2579_v63  ;;  %v2633_v63 = vld [vmem:[#allocation7 + $0x3b4] ss:$8 sps:$4 sm:$0xff]  }
  0xd2   : > { %1526 = vmatprep.subr.bf16.mxu0 %v2587_v5  ;;  %1578 = vmatpush1.bf16.msra.mxu1 %v2582_v8  ;;  %v2631_v5 = vld [vmem:[#allocation7 + $0x3b0] ss:$8 sps:$4 sm:$0xff]   ;;  %v2642_v8 = vld [vmem:[#allocation7 + $0x294] ss:$8 sps:$4 sm:$0xff]  }
  0xd3   : > { %1579 = vmatprep.subr.bf16.mxu1 %v2590_v12  ;;  %v2640_v12 = vld [vmem:[#allocation7 + $0x290] ss:$8 sps:$4 sm:$0xff]  }
  0xd5   : > { %1527 = vmatpush1.bf16.msra.mxu0 %v2585_v10  ;;  %v2637_v10 = vld [vmem:[#allocation7 + $0x3a0] ss:$8 sps:$4 sm:$0xff]  }
  0xd6   : > { %1528 = vmatprep.subr.bf16.mxu0 %v2593_v59  ;;  %1580 = vmatpush1.bf16.msra.mxu1 %v2588_v19  ;;  %v2651_v59 = vld [vmem:[#allocation7 + $0x384] ss:$8 sps:$4 sm:$0xff]   ;;  %v525_v19 = vrot.slane %v3320_v56, 4 }
  0xd7   : > { %1581 = vmatprep.subr.bf16.mxu1 %v2596_v26  ;;  %v2649_v26 = vld [vmem:[#allocation7 + $0x380] ss:$8 sps:$4 sm:$0xff]  }
  0xd9   : > { %1529 = vmatpush1.bf16.msra.mxu0 %v2591_v27  ;;  %v526_v27 = vor.u32 %v525_v19, %v524_v60 }
  0xda   : > { %1530 = vmatprep.subr.bf16.mxu0 %v2599_v31  ;;  %1582 = vmatpush1.bf16.msra.mxu1 %v2594_v33  ;;  %v505_v31 = vsel %vm494_vm5, %v3329_v2, %v504_v23  ;;  %v2660_v33 = vld [vmem:[#allocation7 + $0x454] ss:$8 sps:$4 sm:$0xff]   ;;  %v2658_v2 = vld [vmem:[#allocation7 + $0x450] ss:$8 sps:$4 sm:$0xff]  }
  0xdb   : > { %1583 = vmatprep.subr.bf16.mxu1 %v2602_v35  ;;  %v527_v56 = vsel %vm516_vm6, %v3332_v24, %v526_v27  ;;  %v2663_v24 = vld [vmem:[#allocation7 + $0x444] ss:$8 sps:$4 sm:$0xff]   ;;  %v513_v35 = vsel %vm508_vm3, %v510_v22, %v512_v34 }
  0xdc   : > { %v2675_v22 = vld [vmem:[#allocation7 + $0x404] ss:$8 sps:$4 sm:$0xff]  }
  0xdd   : > { %1531 = vmatpush1.bf16.msra.mxu0 %v2597_v9  ;;  %v2952_v9 = vmov 0  }
  0xde   : > { %1532 = vmatprep.subr.bf16.mxu0 %v2605_v30  ;;  %1584 = vmatpush1.bf16.msra.mxu1 %v2600_v36  ;;  %v2664_v30 = vld [vmem:[#allocation7 + $0x430] ss:$8 sps:$4 sm:$0xff]   ;;  %v2669_v36 = vld [vmem:[#allocation7 + $0x424] ss:$8 sps:$4 sm:$0xff]  }
  0xdf   : > { %1585 = vmatprep.subr.bf16.mxu1 %v2608_v37  ;;  %v2672_v37 = vld [vmem:[#allocation7 + $0x414] ss:$8 sps:$4 sm:$0xff]  }
  0xe1   : > { %1533 = vmatpush2.bf16.msra.mxu0 %v2603_v38  ;;  %v2673_v38 = vld [vmem:[#allocation7 + $0x400] ss:$8 sps:$4 sm:$0xff]  }
  0xe2   : > { %1534 = vmatprep.subr.bf16.mxu0 %v2611_v39  ;;  %1586 = vmatpush2.bf16.msra.mxu1 %v2606_v40  ;;  %v2678_v39 = vld [vmem:[#allocation8 + $0x78] sm:$0xff]  }
  0xe3   : > { %1587 = vmatprep.subr.bf16.mxu1 %v2614_v41  ;;  %v2679_v40 = vld [vmem:[#allocation8 + $0x38] sm:$0xff]   ;;  %v2680_v41 = vld [vmem:[#allocation8 + $0x70] sm:$0xff]  }
  0xe5   : > { %1535 = vmatpush2.bf16.msra.mxu0 %v2609_v42  ;;  %v2681_v42 = vld [vmem:[#allocation8 + $0x30] sm:$0xff]  }
  0xe6   : > { %1536 = vmatprep.subr.bf16.mxu0 %v2617_v44  ;;  %1588 = vmatpush2.bf16.msra.mxu1 %v2612_v43  ;;  %v2682_v43 = vld [vmem:[#allocation8 + $0x68] sm:$0xff]  }
  0xe7   : > { %1589 = vmatprep.subr.bf16.mxu1 %v2620_v45  ;;  %v2683_v44 = vld [vmem:[#allocation8 + $0x28] sm:$0xff]   ;;  %v2684_v45 = vld [vmem:[#allocation8 + $0x60] sm:$0xff]  }
  0xe9   : > { %1537 = vmatpush2.bf16.msra.mxu0 %v2615_v46  ;;  %v2691_v46 = vld [vmem:[#allocation8 + $0x8] sm:$0xff]  }
  0xea   : > { %1538 = vmatprep.subr.bf16.mxu0 %v2623_v48  ;;  %1590 = vmatpush2.bf16.msra.mxu1 %v2618_v51  ;;  %v2692_v48 = vld [vmem:[#allocation8 + $0x40] sm:$0xff]  }
  0xeb   : > { %1591 = vmatprep.subr.bf16.mxu1 %v2626_v52  ;;  %v2693_v51 = vld [vmem:[#allocation8] sm:$0xff]  }
  0xed   : > { %1539 = vmatpush2.bf16.msra.mxu0 %v2621_v55 }
  0xee   : > { %1540 = vmatprep.subr.bf16.mxu0 %v2629_v61  ;;  %1592 = vmatpush2.bf16.msra.mxu1 %v2624_v62 }
  0xef   : > { %1593 = vmatprep.subr.bf16.mxu1 %v2633_v63 }
  0xf1   : > { %1541 = vmatpush2.bf16.msra.mxu0 %v2627_v1 }
  0xf2   : > { %1542 = vmatprep.subr.bf16.mxu0 %v2636_v3  ;;  %1594 = vmatpush2.bf16.msra.mxu1 %v2631_v5 }
  0xf3   : > { %1595 = vmatprep.subr.bf16.mxu1 %v2639_v6 }
  0xf5   : > { %1543 = vmatpush2.bf16.msra.mxu0 %v2634_v7 }
  0xf6   : > { %1544 = vmatprep.subr.bf16.mxu0 %v2642_v8  ;;  %1596 = vmatpush2.bf16.msra.mxu1 %v2637_v10 }
  0xf7   : > { %1597 = vmatprep.subr.bf16.mxu1 %v2645_v11 }
  0xf9   : > { %1545 = vmatpush2.bf16.msra.mxu0 %v2640_v12 }
  0xfa   : > { %1546 = vmatprep.subr.bf16.mxu0 %v2648_v13  ;;  %1598 = vmatpush2.bf16.msra.mxu1 %v2643_v17  ;;  %v680_v17 = vlaneseq }
  0xfb   : > { %1599 = vmatprep.subr.bf16.mxu1 %v2651_v59 }
  0xfc   : > { %v681_v19 = vshrl.u32 %v680_v17, 7 }
  0xfd   : > { %1547 = vmatpush2.bf16.msra.mxu0 %v2646_v20 }
  0xfe   : > { %1622 = vmatprep.subr.bf16.mxu0 %v2654_v21  ;;  %1600 = vmatpush2.bf16.msra.mxu1 %v2649_v26  ;;  %v686_v23 = vsub.s32 1, %v681_v19  ;;  %v678_v26 = vld [vmem:[%s3524_s5] sm:$0x3]  ;;  %v682_v27 = vsub.s32 0, %v681_v19 }
  0xff   : > { %2291 = vmatprep.subr.bf16.mxu1 %v2678_v39 }
 0x100   : > { %1549 = vmatmul.mubr.bf16.vlgmr.msra.gmra.mxu0 %v3284_v18  ;;  %v491_v18 = vsel %vm486_vm2, %v488_v15, %v490_v32  ;;  %v2667_v15 = vld [vmem:[#allocation7 + $0x420] ss:$8 sps:$4 sm:$0xff]  }
 0x101   : > { %1623 = vmatpush1.bf16.msra.mxu0 %v2652_v28  ;;  %1558 = vmatprep.mubr.bf16.mxu0 %v505_v31  ;;  %v687_v31 = vrot.slane %v678_v26, %v686_v23 }
 0x102   : > { %1602 = vmatmul.mubr.bf16.vlgmr.msra.gmra.mxu1 %v3291_v25  ;;  %1624 = vmatprep.subr.bf16.mxu0 %v2657_v29  ;;  %v2661_v25 = vld [vmem:[#allocation7 + $0x440] ss:$8 sps:$4 sm:$0xff]  }
 0x103   : > { %1611 = vmatprep.mubr.bf16.mxu1 %v527_v56  ;;  %2292 = vmatpush3.bf16.msra.mxu1 %v2679_v40  ;;  %v683_v56 = vrot.slane %v678_v26, %v682_v27 }
 0x104   : > { %2293 = vmatprep.subr.bf16.mxu1 %v2680_v41 }
 0x105   : > { %1625 = vmatpush1.bf16.msra.mxu0 %v2655_v57 }
 0x106   : > { %1626 = vmatprep.subr.bf16.mxu0 %v2660_v33 }
 0x107   : > { %2294 = vmatpush3.bf16.msra.mxu1 %v2681_v42 }
 0x108   : > { %1559 = vmatmul.mubr.bf16.gmra.mxu0 %v491_v18  ;;  %2295 = vmatprep.subr.bf16.mxu1 %v2682_v43 }
 0x109   : > { %1627 = vmatpush1.bf16.msra.mxu0 %v2658_v2  ;;  %1654 = vmatprep.mubr.bf16.mxu0 %v2952_v9 }
 0x10a   : > { %1612 = vmatmul.mubr.bf16.gmra.mxu1 %v513_v35  ;;  %1628 = vmatprep.subr.bf16.mxu0 %v2663_v24 }
 0x10b   : > { %2296 = vmatpush3.bf16.msra.mxu1 %v2683_v44 }
 0x10c   : > { %2297 = vmatprep.subr.bf16.mxu1 %v2684_v45 }
 0x10d   : > { %1629 = vmatpush1.bf16.msra.mxu0 %v2661_v25 }
 0x10e   : > { %1630 = vmatprep.subr.bf16.mxu0 %v2666_v0 }
 0x10f   : > { %2298 = vmatpush3.bf16.msra.mxu1 %v2685_v47 }
 0x110   : > { %2299 = vmatprep.subr.bf16.mxu1 %v2686_v49 }
 0x111   : > { %1631 = vmatpush1.bf16.msra.mxu0 %v2664_v30 }
 0x112   : > { %1632 = vmatprep.subr.bf16.mxu0 %v2669_v36 }
 0x115   : > { %1633 = vmatpush1.bf16.msra.mxu0 %v2667_v15 }
 0x116   : > { %1634 = vmatprep.subr.bf16.mxu0 %v2672_v37 }
 0x119   : > { %1635 = vmatpush1.bf16.msra.mxu0 %v2670_v53 }
 0x11a   : > { %1636 = vmatprep.subr.bf16.mxu0 %v2675_v22 }
 0x11d   : > { %1637 = vmatpush1.bf16.msra.mxu0 %v2673_v38 }
 0x120   : > { %1655 = vmatmul.mubr.bf16.vlgmr.msra.gmra.mxu0 %v2120_v54  ;;  %v2687_v54 = vld [vmem:[#allocation8 + $0x18] sm:$0xff]  }
 0x121   : > { %1664 = vmatprep.mubr.bf16.mxu0 %v2952_v9  ;;  %2300 = vmatpush3.bf16.msra.mxu1 %v2687_v54 }
 0x122   : > { %2301 = vmatprep.subr.bf16.mxu1 %v2688_v50 }
 0x125   : > { %2302 = vmatpush3.bf16.msra.mxu1 %v2689_v58 }
 0x128   : > { %1665 = vmatmul.mubr.bf16.gmra.mxu0 %v2121_v4  ;;  %v2690_v4 = vld [vmem:[#allocation8 + $0x48] sm:$0xff]  }
 0x129   : > { %2303 = vmatprep.subr.bf16.mxu1 %v2690_v4 }
 0x12a   : > { %2304 = vmatpush3.bf16.msra.mxu1 %v2691_v46 }
 0x12b   : > { %2305 = vmatprep.subr.bf16.mxu1 %v2692_v48 }
 0x12e   : > { %2306 = vmatpush3.bf16.msra.mxu1 %v2693_v51 }
 0x180   : > { %v1444_v52 = vpop.f32.mrf.mxu0 }
 0x181   : > { %v1497_v62 = vpop.f32.mrf.mxu1  ;;  %v1445_v18 = vadd.f32 %v1444_v52, %v683_v56 }
 0x182   : > { %v1446_v55 = vpop.f32.mrf.mxu0 }
 0x183   : > { %v1499_v3 = vpop.f32.mrf.mxu1  ;;  %v1447_v33 = vadd.f32 %v1446_v55, %v687_v31  ;;  %v1498_v0 = vadd.f32 %v1497_v62, %v1445_v18 }
 0x184   : > { %v1448_v61 = vpop.f32.mrf.mxu0 }
 0x185   : > { %v1501_v6 = vpop.f32.mrf.mxu1  ;;  %v1449_v34 = vadd.f32 %v1448_v61, %v683_v56  ;;  %v1500_v25 = vadd.f32 %v1499_v3, %v1447_v33 }
 0x186   : > { %v1450_v63 = vpop.f32.mrf.mxu0 }
 0x187   : > { %v1503_v8 = vpop.f32.mrf.mxu1  ;;  %v1451_v35 = vadd.f32 %v1450_v63, %v687_v31  ;;  %v1502_v9 = vadd.f32 %v1501_v6, %v1449_v34 }
 0x188   : > { %v1454_v1 = vpop.f32.mrf.mxu0 }
 0x189   : > { %v1507_v10 = vpop.f32.mrf.mxu1  ;;  %v1504_v15 = vadd.f32 %v1503_v8, %v1451_v35  ;;  %v1455_v42 = vadd.f32 %v1454_v1, %v683_v56 }
 0x18a   : > { %v1456_v5 = vpop.f32.mrf.mxu0 }
 0x18b   : > { %v1509_v13 = vpop.f32.mrf.mxu1  ;;  %v1457_v22 = vadd.f32 %v1456_v5, %v687_v31  ;;  %v1508_v52 = vadd.f32 %v1507_v10, %v1455_v42 }
 0x18c   : > { %v1458_v7 = vpop.f32.mrf.mxu0 }
 0x18d   : > { %v1511_v16 = vpop.f32.mrf.mxu1  ;;  %v1459_v40 = vadd.f32 %v1458_v7, %v683_v56  ;;  %v1510_v54 = vadd.f32 %v1509_v13, %v1457_v22  ;;  %v1872_v22 = vld [vmem:[%s3215_s2 + $0x8] sm:$0xff] }
 0x18e   : > { %v1460_v11 = vpop.f32.mrf.mxu0 }
 0x18f   : > { %v1513_v60 = vpop.f32.mrf.mxu1  ;;  %v1461_v45 = vadd.f32 %v1460_v11, %v687_v31  ;;  %v1512_v4 = vadd.f32 %v1511_v16, %v1459_v40 }
 0x191   : > { %v1514_v63 = vadd.f32 %v1513_v60, %v1461_v45 }
 0x1c0   : > { %v1550_v12 = vpop.f32.mrf.mxu0 }
 0x1c1   : > { %v1551_v38 = vadd.f32 %v1550_v12, %v1498_v0  ;;  %v1871_v0 = vld [vmem:[%s3215_s2] sm:$0xff] }
 0x1c2   : > { %v1552_v14 = vpop.f32.mrf.mxu0  ;;  %v1603_v20 = vpop.f32.mrf.mxu1 }
 0x1c3   : > { %v1553_v37 = vadd.f32 %v1552_v14, %v1500_v25  ;;  %v1604_v50 = vadd.f32 %v1603_v20, %v1551_v38 }
 0x1c4   : > { %v1554_v59 = vpop.f32.mrf.mxu0  ;;  %v1605_v28 = vpop.f32.mrf.mxu1 }
 0x1c5   : > { %v1555_v53 = vadd.f32 %v1554_v59, %v1502_v9  ;;  %v1606_v47 = vadd.f32 %v1605_v28, %v1553_v37 }
 0x1c6   : > { %v1556_v21 = vpop.f32.mrf.mxu0  ;;  %v1607_v57 = vpop.f32.mrf.mxu1 }
 0x1c7   : > { %v1557_v41 = vadd.f32 %v1556_v21, %v1504_v15  ;;  %v1608_v49 = vadd.f32 %v1607_v57, %v1555_v53 }
 0x1c8   : > { %v1560_v29 = vpop.f32.mrf.mxu0  ;;  %v1609_v2 = vpop.f32.mrf.mxu1 }
 0x1c9   : > { %v1610_v46 = vadd.f32 %v1609_v2, %v1557_v41  ;;  %v1561_v6 = vadd.f32 %v1560_v29, %v1508_v52 }
 0x1ca   : > { %v1562_v32 = vpop.f32.mrf.mxu0  ;;  %v1613_v30 = vpop.f32.mrf.mxu1 }
 0x1cb   : > { %v1563_v3 = vadd.f32 %v1562_v32, %v1510_v54  ;;  %v1614_v10 = vadd.f32 %v1613_v30, %v1561_v6  ;;  %v1874_v54 = vld [vmem:[%s3215_s2 + $0x18] sm:$0xff] }
 0x1cc   : > { %v1564_v24 = vpop.f32.mrf.mxu0  ;;  %v1615_v43 = vpop.f32.mrf.mxu1 }
 0x1cd   : > { %v1565_v5 = vadd.f32 %v1564_v24, %v1512_v4  ;;  %v1616_v59 = vadd.f32 %v1615_v43, %v1563_v3  ;;  %v2266_v24 = vld [vmem:[%s3525_s8] ss:$0 sm:$0xff]  ;;  %v1873_v43 = vld [vmem:[%s3215_s2 + $0x10] sm:$0xff]  ;;  %s410_s2 = scalar_lea.vmem [#allocation10], %s3212_s22  ;;  %s3531_s8 = smov %s3530_s11 }
 0x1ce   : > { %v1566_v36 = vpop.f32.mrf.mxu0  ;;  %v1617_v55 = vpop.f32.mrf.mxu1  ;;  %s1965_s0 = sshll.u32 %s410_s2, 4  ;;  %s3392_s0 = int_to_ptr.vmem [resolvable:$true] %s1965_s0 }
 0x1cf   : > { %v1567_v11 = vadd.f32 %v1566_v36, %v1514_v63  ;;  %v1618_v19 = vadd.f32 %v1617_v55, %v1565_v5  ;;  %s2810_s20 = scalar_lea.vmem %s3392_s0, 512  ;;  %p2817_p1 = scmp.lt.s32.totalorder %s3392_s0, %s2815_s26 }
 0x1d0   : > { %v1619_v14 = vpop.f32.mrf.mxu1  ;;  %p2811_p5 = scmp.ne.s32.totalorder %s3392_s0, %s2810_s20 }
 0x1d1   : > { %v1620_v26 = vadd.f32 %v1619_v14, %v1567_v11 }
 0x1d2   : > { %p2812_p13 = pnand %p2811_p5, %p3532_p8 }
 0x1d4   : > { %p2813_p2 = pneg %p2812_p13 }
 0x1e0   : > { %v1656_v39 = vpop.f32.mrf.mxu0 }
 0x1e1   : > { %v1657_v61 = vadd.f32 %v1656_v39, %v1604_v50 }
 0x1e2   : > { %v1658_v44 = vpop.f32.mrf.mxu0 }
 0x1e3   : > { %v1659_v48 = vadd.f32 %v1658_v44, %v1606_v47  ;;  %v1675_v17 = vmax.f32 %v1657_v61, 0.0 }
 0x1e4   : > { %v1660_v58 = vpop.f32.mrf.mxu0 }
 0x1e5   : > { %v1661_v51 = vadd.f32 %v1660_v58, %v1608_v49  ;;  %v1676_v12 = vmax.f32 %v1659_v48, 0.0 }
 0x1e6   : > { %v1662_v62 = vpop.f32.mrf.mxu0 }
 0x1e7   : > { %v1663_v1 = vadd.f32 %v1662_v62, %v1610_v46  ;;  %v1677_v7 = vmax.f32 %v1661_v51, 0.0 }
 0x1e8   : > { %v1666_v8 = vpop.f32.mrf.mxu0 }
 0x1e9   : > { %v1678_v13 = vmax.f32 %v1663_v1, 0.0  ;;  %v1683_v21 = vpack.c.bf16 %v1677_v7, %v1675_v17  ;;  %v1667_v28 = vadd.f32 %v1666_v8, %v1614_v10 }
 0x1ea   : > { %v1668_v16 = vpop.f32.mrf.mxu0 }
 0x1eb   : > { %v1684_v20 = vpack.c.bf16 %v1678_v13, %v1676_v12  ;;  %v1669_v60 = vadd.f32 %v1668_v16, %v1616_v59  ;;  %v1679_v33 = vmax.f32 %v1667_v28, 0.0 }
 0x1ec   : > { %v1670_v23 = vpop.f32.mrf.mxu0 }
 0x1ed   : > { %v1671_v27 = vadd.f32 %v1670_v23, %v1618_v19  ;;  %1854 = vmatprep.mubr.bf16.mxu1 %v1684_v20  ;;  %v1680_v57 = vmax.f32 %v1669_v60, 0.0 }
 0x1ee   : > { %v1672_v29 = vpop.f32.mrf.mxu0  ;;  %1855 = vmatmul.mubr.bf16.vlgmr.msra.gmra.mxu1 %v1683_v21 }
 0x1ef   : > { %v1673_v31 = vadd.f32 %v1672_v29, %v1620_v26  ;;  %v1681_v56 = vmax.f32 %v1671_v27, 0.0  ;;  %v2283_v27 = vld [vmem:[%s3527_s27] ss:$0 sm:$0xff]  ;;  %s2816_s27 = scalar_lea.vmem %s2815_s26, 1024 }
 0x1f0   : > { %v2284_v29 = vld [vmem:[%s3528_s23] ss:$0 sm:$0xff]  ;;  %p2818_p0 = scmp.lt.s32.totalorder %s2816_s27, %s2810_s20 }
 0x1f1   : > { %v1682_v32 = vmax.f32 %v1673_v31, 0.0  ;;  %v1685_v18 = vpack.c.bf16 %v1681_v56, %v1679_v33 }
 0x1f2   : > { %p2819_p4 = por %p2818_p0, %p2817_p1 }
 0x1f3   : > { %v1686_v34 = vpack.c.bf16 %v1682_v32, %v1680_v57 }
 0x1f4   : > { %p2820_p11 = pnand %p2819_p4, %p2813_p2 }
 0x1f5   : > { %1862 = vmatprep.mubr.bf16.mxu1 %v1686_v34 }
 0x1f6   : > { %1863 = vmatmul.mubr.bf16.gmra.mxu1 %v1685_v18 }
 0x2ae   : > { %v2307_v2 = vpop.f32.mrf.mxu1 }
 0x2b0   : > { %v2308_v35 = vpop.f32.mrf.mxu1 }
 0x2b1   : > { %v2309_v25 = vadd.f32 %v2308_v35, %v2307_v2 }
 0x2b2   : > { %v2310_v9 = vpop.f32.mrf.mxu1 }
 0x2b3   : > { %v1857_v30 = vadd.f32 %v2309_v25, %v2266_v24 }
 0x2b4   : > { %v2311_v36 = vpop.f32.mrf.mxu1 }
 0x2b5   : > { %v2312_v15 = vadd.f32 %v2311_v36, %v2310_v9  ;;  %v1875_v37 = vadd.f32 %v1871_v0, %v1857_v30 }
 0x2b6   : > { %v2313_v53 = vpop.f32.mrf.mxu1 }
 0x2b7   : > { %v1860_v38 = vadd.f32 %v2312_v15, %v2266_v24  ;;  %1879 = vadd.xlane.f32.xlu0 %v1875_v37 }
 0x2b8   : > { %v2314_v39 = vpop.f32.mrf.mxu1 }
 0x2b9   : > { %v2315_v40 = vadd.f32 %v2314_v39, %v2313_v53  ;;  %v1876_v41 = vadd.f32 %v1872_v22, %v1860_v38 }
 0x2ba   : > { %v2316_v42 = vpop.f32.mrf.mxu1 }
 0x2bb   : > { %v1865_v44 = vadd.f32 %v2315_v40, %v2266_v24  ;;  %1881 = vadd.xlane.f32.xlu0 %v1876_v41 }
 0x2bc   : > { %v2317_v45 = vpop.f32.mrf.mxu1 }
 0x2bd   : > { %v2318_v47 = vadd.f32 %v2317_v45, %v2316_v42  ;;  %v1877_v49 = vadd.f32 %v1873_v43, %v1865_v44 }
 0x2bf   : > { %v1868_v50 = vadd.f32 %v2318_v47, %v2266_v24  ;;  %1883 = vadd.xlane.f32.xlu1 %v1877_v49 }
 0x2c1   : > { %v1878_v58 = vadd.f32 %v1874_v54, %v1868_v50 }
 0x2c3   : > { %1885 = vadd.xlane.f32.xlu1 %v1878_v58 }
 0x340   : > { %v1880_v4 = vpop.xlane.xlu0 %1879 }
 0x341   : > { %v1887_v46 = vmul.f32 0.0078125, %v1880_v4 }
 0x343   : > { %v1891_v48 = vsub.f32 %v1875_v37, %v1887_v46 }
 0x344   : > { %v1882_v51 = vpop.xlane.xlu0 %1881 }
 0x345   : > { %v1888_v52 = vmul.f32 0.0078125, %v1882_v51  ;;  %v1895_v55 = vmul.f32 %v1891_v48, %v1891_v48 }
 0x347   : > { %v1892_v61 = vsub.f32 %v1876_v41, %v1888_v52  ;;  %1899 = vadd.xlane.f32.xlu0 %v1895_v55 }
 0x348   : > { %v1884_v62 = vpop.xlane.xlu1 %1883 }
 0x349   : > { %v1889_v63 = vmul.f32 0.0078125, %v1884_v62  ;;  %v1896_v3 = vmul.f32 %v1892_v61, %v1892_v61 }
 0x34b   : > { %v1893_v5 = vsub.f32 %v1877_v49, %v1889_v63  ;;  %1901 = vadd.xlane.f32.xlu1 %v1896_v3 }
 0x34c   : > { %v1886_v1 = vpop.xlane.xlu1 %1885 }
 0x34d   : > { %v1890_v6 = vmul.f32 0.0078125, %v1886_v1  ;;  %v1897_v7 = vmul.f32 %v1893_v5, %v1893_v5 }
 0x34f   : > { %v1894_v8 = vsub.f32 %v1878_v58, %v1890_v6  ;;  %1903 = vadd.xlane.f32.xlu0 %v1897_v7 }
 0x351   : > { %v1898_v11 = vmul.f32 %v1894_v8, %v1894_v8 }
 0x353   : > { %1905 = vadd.xlane.f32.xlu1 %v1898_v11 }
 0x3d0   : > { %v1900_v12 = vpop.xlane.xlu0 %1899 }
 0x3d1   : > { %v1907_v13 = vmul.f32 0.0078125, %v1900_v12 }
 0x3d3   : > { %v1911_v14 = vadd.f32 1e-05, %v1907_v13 }
 0x3d4   : > { %v1902_v17 = vpop.xlane.xlu1 %1901 }
 0x3d5   : > { %2694 = vrsqrt.f32 %v1911_v14  ;;  %v1908_v16 = vmul.f32 0.0078125, %v1902_v17 }
 0x3d7   : > { %v1912_v59 = vadd.f32 1e-05, %v1908_v16 }
 0x3d8   : > { %v1904_v19 = vpop.xlane.xlu0 %1903 }
 0x3d9   : > { %2696 = vrsqrt.f32 %v1912_v59  ;;  %v1909_v20 = vmul.f32 0.0078125, %v1904_v19 }
 0x3db   : > { %v1913_v10 = vadd.f32 1e-05, %v1909_v20 }
 0x3dc   : > { %v1906_v21 = vpop.xlane.xlu1 %1905 }
 0x3dd   : > { %2698 = vrsqrt.f32 %v1913_v10  ;;  %v1910_v23 = vmul.f32 0.0078125, %v1906_v21 }
 0x3df   : > { %v1914_v26 = vadd.f32 1e-05, %v1910_v23 }
 0x3e1   : > { %2700 = vrsqrt.f32 %v1914_v26 }
 0x3e2   : > { %v2695_v60 = vpop.eup %2694 }
 0x3e3   : > { %v1919_v28 = vmul.f32 %v2695_v60, %v1891_v48 }
 0x3e5   : > { %v1930_v31 = vmul.f32 %v2283_v27, %v1919_v28 }
 0x3e6   : > { %v2697_v56 = vpop.eup %2696 }
 0x3e7   : > { %v1941_v57 = vadd.f32 %v2284_v29, %v1930_v31  ;;  %v1920_v32 = vmul.f32 %v2697_v56, %v1892_v61 }
 0x3e9   : > { %1945 = vst [vmem:[%s410_s2] sm:$0xff] %v1941_v57  ;;  %v1931_v33 = vmul.f32 %v2283_v27, %v1920_v32 }
 0x3ea   : > { %v2699_v34 = vpop.eup %2698 }
 0x3eb   : > { %v1942_v18 = vadd.f32 %v2284_v29, %v1931_v33  ;;  %v1921_v2 = vmul.f32 %v2699_v34, %v1893_v5 }
 0x3ed   : > { %1946 = vst [vmem:[%s410_s2 + $0x8] sm:$0xff] %v1942_v18  ;;  %v1932_v24 = vmul.f32 %v2283_v27, %v1921_v2 }
 0x3ee   : > { %v2701_v35 = vpop.eup %2700 }
 0x3ef   : > { %v1943_v25 = vadd.f32 %v2284_v29, %v1932_v24  ;;  %v1922_v9 = vmul.f32 %v2701_v35, %v1894_v8 }
 0x3f1   : > { %1947 = vst [vmem:[%s410_s2 + $0x10] sm:$0xff] %v1943_v25  ;;  %v1933_v0 = vmul.f32 %v2283_v27, %v1922_v9 }
 0x3f3   : > { %v1944_v30 = vadd.f32 %v2284_v29, %v1933_v0 }
 0x3f5   : > { %1948 = vst [vmem:[%s410_s2 + $0x18] sm:$0xff] %v1944_v30 }
 0x3f6   : > { %2823 = shalt.err (!%p2820_p11)
}
 0x3f7   : > { %s2824_s21 = scalar_lea.hbm %s3390_s16, 512  ;;  %s2828_s23 = scalar_lea.hbm %s3531_s8, 2048 }
 0x3f8   : > { %p2825_p10 = scmp.ne.s32.totalorder %s3390_s16, %s2824_s21  ;;  %p2829_p7 = scmp.lt.s32.totalorder %s3390_s16, %s3531_s8 }
 0x3f9   : > { %p2830_p9 = scmp.lt.s32.totalorder %s2828_s23, %s2824_s21 }
 0x3fa   : > { %p2826_p12 = pnand %p2825_p10, %p3532_p8 }
 0x3fb   : > { %p2831_p6 = por %p2830_p9, %p2829_p7 }
 0x3fc   : > { %p2827_p3 = pneg %p2826_p12 }
 0x3fe   : > { %p2832_p5 = pnand %p2831_p6, %p2827_p3 }
 0x400   : > { %2835 = shalt.err (!%p2832_p5)
}
 0x401   : > { %s2954_s7 = smov 128   ;;  %s2955_s17 = smov 8  }
 0x402   : > { %2334 = dma.vmem_to_hbm [thread:$0]  (%p3532_p8), %s3392_s0, 512, %s3390_s16, %s3396_s12, %s2954_s7, %s2954_s7, %s2955_s17  }
 0x403 PF: > { %s3533_s4 = sld [smem:[#allocation16_spill]]  ;;  %p2359_p13 = scmp.ge.s32.totalorder %s2942_s15, 2 }
 0x404   : > { %s3534_s22 = sld [smem:[#allocation20_spill]] }
 0x409   : > { %s1980_s5 = sand.u32 1, %s3533_s4  }
 0x40a   : > { %p3535_p2 = scmp.ne.s32.totalorder %s3534_s22, 0  ;;  %s1981_s11 = scalar_lea.sflag [#allocation4], %s1980_s5 }
 0x40c   : > { %p2351_p1 = pnand %p2359_p13, %p3535_p2 }
 0x40e   : > { %p2352_p0 = pneg %p2351_p1 }
 0x410   : > { %2897 = dma.done.wait (%p2352_p0), %s1981_s11, 512  }
 0x411   : > { %2899 = vsyncadd (%p2352_p0), %s1981_s11, 4294966784  ;;  %s28_s15 = sadd.s32 1, %s2942_s15   ;;  %s3536_s0 = sld [smem:[#allocation21_spill]] }
 0x412   : > { %p25_p4 = scmp.ge.s32.totalorder %s28_s15, 6   ;;  %s3537_s16 = sld [smem:[#allocation23_spill]] }
 0x413   : > { %s3538_s27 = smov %s2906_s28  ;;  %s3539_s28 = smov %s2910_s29 }
 0x414   : > { %s3540_s29 = smov %s3178_s25  ;;  %s3541_s30 = smov %s2918_s9 }
 0x415   : > { %s3542_s9 = smov %s2922_s10  ;;  %s3543_s10 = smov %s3175_s6 }
 0x416   : > { %s3544_s11 = smov %s2934_s13  ;;  %s3545_s12 = smov %s2938_s14 }
 0x417   : > { %s3546_s13 = smov %s3536_s0  ;;  %27 = sbr.rel (!%p25_p4) target bundleno = 21 (0x15), region = 119 }
 0x418   : > { %s3547_s14 = smov %s3537_s16 }
 0x41c   :  { %1986 = vsyncpa [#allocation3], 1 }
 0x41d   :  { %1988 = vsyncpa [#allocation3 + $0x1], 1 }
 0x41e   :  { %1989 = vsyncpa [#allocation6], 1 }
 0x41f   :  { %1991 = vsyncpa [#allocation6 + $0x1], 1 }
 0x420   :  { %1992 = vsyncpa [#allocation9], 1 }
 0x421   :  { %1993 = vsyncpa [#allocation4], 1 }
 0x422   :  { %1995 = vsyncpa [#allocation4 + $0x1], 1 }

</bundles_post_ra>
